<compile_context>
chip_gen: v7x
topology: tpu7x:2x2x1
jax: 0.10.0
libtpu: 0.0.40
codegen_flags: <defaults>
</compile_context>

<pallas_src>
import functools

import jax
import jax.numpy as jnp
from jax.experimental import pallas as pl
from jax.experimental.pallas import tpu as pltpu

LN_EPS = 1e-5  # torch.nn.LayerNorm default eps


# ------------------------------ fused kernel ------------------------------- #

def _cmscm_kernel(
    # batch-tiled inputs
    x_ref, y_ref, nx_ref, ny_ref,
    # noise encoder X: Linear, LN, ReLU, Linear
    nex_w1, nex_p1, nex_w2, nex_b2,
    # noise encoder Y
    ney_w1, ney_p1, ney_w2, ney_b2,
    # fs: Linear(2H -> Sd) split along its input dim
    fs_wx, fs_wy, fs_p,
    # fzx / fzy: Linear(H -> H)
    fzx_w, fzx_p, fzy_w, fzy_p,
    # fx / fy: Linear(Sd+H -> H) split along input dim
    fx_ws, fx_wz, fx_p,
    fy_ws, fy_wz, fy_p,
    # fr: Linear(Sd -> 1) + Sigmoid (VPU head, f32 weights)
    fr_w, fr_b,
    # outputs
    s_out, zx_out, zy_out, xhat_out, yhat_out, r_out, stats_out,
    *, eps):

    j = pl.program_id(1)  # batch-tile index within this core's slice

    def mm(a_bf16, w_ref):
        # bf16 MXU matmul with f32 accumulation.
        return jnp.dot(a_bf16, w_ref[...], preferred_element_type=jnp.float32)

    def b16(a):
        return a.astype(jnp.bfloat16)

    def ln_relu(pre, p_ref):
        # p_ref rows: [linear bias, LN gamma, LN beta] — all f32.
        z = pre + p_ref[0:1, :]
        mu = jnp.mean(z, axis=-1, keepdims=True)
        # one-pass variance E[z^2] - mu^2 (saves a full (tile_b, D) subtract).
        var = jnp.maximum(jnp.mean(z * z, axis=-1, keepdims=True) - mu * mu, 0.0)
        zhat = (z - mu) * jax.lax.rsqrt(var + eps)
        return jnp.maximum(zhat * p_ref[1:2, :] + p_ref[2:3, :], 0.0)

    # Per-core partial-sum slab, accumulated in the resident output block:
    #   row 0: sum_b y_given_s      row 1: sum_b y_given_xsz
    #   row 2: sum_b (X_hat-X)^2    row 3: sum_b (Y_hat-Y)^2
    #   row 4: sum_b (Zx-Zy)^2      rows 5-7: unused (zero)
    @pl.when(j == 0)
    def _init():
        stats_out[...] = jnp.zeros(stats_out.shape, stats_out.dtype)

    x = x_ref[...].astype(jnp.float32)
    y = y_ref[...].astype(jnp.float32)

    # ---- add_noise: v + noise_encoder(randn_like(v)) ------------------------
    hx = ln_relu(mm(nx_ref[...], nex_w1), nex_p1)
    xn = x + mm(b16(hx), nex_w2) + nex_b2[...]
    hy = ln_relu(mm(ny_ref[...], ney_w1), ney_p1)
    yn = y + mm(b16(hy), ney_w2) + ney_b2[...]
    xn_bf = b16(xn)   # cast once, reused by fs_wx and fzx_w
    yn_bf = b16(yn)   # cast once, reused by fs_wy and fzy_w

    # ---- structural equations: store + reduce each result as soon as it is
    # produced so the live-activation set stays small -------------------------
    s = ln_relu(mm(xn_bf, fs_wx) + mm(yn_bf, fs_wy), fs_p)     # fs(cat[Xn, Yn])
    s_out[...] = s.astype(s_out.dtype)
    s_bf = b16(s)
    # fr head (Dout=1): VPU lane-reduce instead of an N=1 MXU matmul.
    r = jax.nn.sigmoid(
        jnp.sum(s * fr_w[...], axis=-1, keepdims=True) + fr_b[...])
    r_out[...] = r.astype(r_out.dtype)

    zx = ln_relu(mm(xn_bf, fzx_w), fzx_p)
    zx_out[...] = zx.astype(zx_out.dtype)
    zy = ln_relu(mm(yn_bf, fzy_w), fzy_p)
    zy_out[...] = zy.astype(zy_out.dtype)
    dz = zx - zy
    stats_out[4:5, :] = stats_out[4:5, :] + jnp.sum(dz * dz, axis=0, keepdims=True)

    x_hat = ln_relu(mm(s_bf, fx_ws) + mm(b16(zx), fx_wz), fx_p)  # fx(cat[S, Zx])
    xhat_out[...] = x_hat.astype(xhat_out.dtype)
    dx = x_hat - x
    stats_out[2:3, :] = stats_out[2:3, :] + jnp.sum(dx * dx, axis=0, keepdims=True)

    y_hat = ln_relu(mm(s_bf, fy_ws) + mm(b16(zy), fy_wz), fy_p)  # fy(cat[S, Zy])
    yhat_out[...] = y_hat.astype(yhat_out.dtype)
    dy = y_hat - y
    stats_out[3:4, :] = stats_out[3:4, :] + jnp.sum(dy * dy, axis=0, keepdims=True)

    # ---- causal-effect branches (plain X / Y; shared matmuls hoisted) -------
    x_bf = b16(x)
    y_bf = b16(y)
    zy_plain = ln_relu(mm(y_bf, fzy_w), fzy_p)   # fzy(Y), shared by both branches
    zyw = mm(b16(zy_plain), fy_wz)               # fzy(Y) @ fy_wz, reused twice
    xs = mm(x_bf, fs_wx)                         # X @ fs_wx,      reused twice
    # front-door: fs(cat[X, 0]) -> only the X half of the fs weight contributes.
    s_given_x = ln_relu(xs, fs_p)
    y_given_s = ln_relu(mm(b16(s_given_x), fy_ws) + zyw, fy_p)
    stats_out[0:1, :] = stats_out[0:1, :] + jnp.sum(y_given_s, axis=0, keepdims=True)
    # back-door: shape-consistent variant fy(cat[fs(cat[X, Y]), fzy(Y)]).mean(0)
    # TODO(synk): the reference fy(cat([S, Zy, X])) * cat([S, Zx, Zy]) is
    # shape-inconsistent; this substitute keeps the previous semantics.
    s_bd = ln_relu(xs + mm(y_bf, fs_wy), fs_p)
    y_given_xsz = ln_relu(mm(b16(s_bd), fy_ws) + zyw, fy_p)
    stats_out[1:2, :] = stats_out[1:2, :] + jnp.sum(y_given_xsz, axis=0, keepdims=True)


# ------------------------------ call wrapper -------------------------------- #

def _pick_tiling(batch):
    try:
        vmem_cap = pltpu.get_tpu_info().vmem_capacity_bytes
    except Exception:
        vmem_cap = 64 * 1024 * 1024
    # v5e/v6e have 128 MiB VMEM -> bigger batch tiles; v7x has 64 MiB.
    max_tile = 512 if vmem_cap >= 100 * 1024 * 1024 else 256
    vmem_limit = min(int(vmem_cap * 3 // 4), 96 * 1024 * 1024)
    if batch <= max_tile:
        tile_b = batch
    else:
        tile_b = max_tile
        while tile_b > 8 and batch % tile_b != 0:
            tile_b //= 2
    return tile_b, vmem_limit


def cmscm_forward(params, X, Y, noise_key):
    B, H = X.shape
    Sd = params['fs']['p'].shape[1]
    kx, ky = jax.random.split(noise_key)
    # NX / NY only ever feed bf16 MXU matmuls -> generate in bf16 (halves HBM I/O).
    NX = jax.random.normal(kx, X.shape, jnp.bfloat16)
    NY = jax.random.normal(ky, Y.shape, jnp.bfloat16)

    tile_b, vmem_limit = _pick_tiling(B)
    assert B % tile_b == 0, "batch must be a multiple of the batch tile"
    nb = B // tile_b
    # Split batch tiles across (up to) two TensorCores (v7x megacore). Each core
    # accumulates its own (8, H) partial-stats block; combined in JAX below.
    ncores = 2 if (nb >= 2 and nb % 2 == 0) else 1
    npc = nb // ncores

    p = params
    inputs = (
        X, Y, NX, NY,
        p['nex']['w1'], p['nex']['p1'], p['nex']['w2'], p['nex']['b2'],
        p['ney']['w1'], p['ney']['p1'], p['ney']['w2'], p['ney']['b2'],
        p['fs']['wx'], p['fs']['wy'], p['fs']['p'],
        p['fzx']['w'], p['fzx']['p'], p['fzy']['w'], p['fzy']['p'],
        p['fx']['ws'], p['fx']['wz'], p['fx']['p'],
        p['fy']['ws'], p['fy']['wz'], p['fy']['p'],
        p['fr']['w'], p['fr']['b'],
    )

    out_shape = (
        jax.ShapeDtypeStruct((B, Sd), X.dtype),             # S
        jax.ShapeDtypeStruct((B, H), X.dtype),              # Zx
        jax.ShapeDtypeStruct((B, H), X.dtype),              # Zy
        jax.ShapeDtypeStruct((B, H), X.dtype),              # X_hat
        jax.ShapeDtypeStruct((B, H), X.dtype),              # Y_hat
        jax.ShapeDtypeStruct((B, 1), X.dtype),              # R
        jax.ShapeDtypeStruct((ncores, 8, H), jnp.float32),  # per-core partial stats
    )

    weight_bytes = sum(int(a.size) * a.dtype.itemsize for a in inputs[4:])
    cost = pl.CostEstimate(
        flops=2 * B * (10 * H * H + 8 * H * Sd),
        transcendentals=13 * B,
        bytes_accessed=int(2 * B * H * 4 + 2 * B * H * 2 + B * Sd * 4
                           + 4 * B * H * 4 + B * 4 + ncores * 8 * H * 4
                           + weight_bytes),
    )

    def batch_spec(d):
        return pl.BlockSpec((tile_b, d), lambda c, j: (c * npc + j, 0))

    def run(single_buffer_weights):
        def const_spec(shape):
            zero = (0,) * len(shape)
            idx = lambda c, j: zero
            if single_buffer_weights:
                # Constant index_map -> second pipeline buffer is dead weight.
                return pl.BlockSpec(shape, idx, pipeline_mode=pl.Buffered(1))
            return pl.BlockSpec(shape, idx)

        in_specs = ([batch_spec(H)] * 4
                    + [const_spec(a.shape) for a in inputs[4:]])
        out_specs = (
            batch_spec(Sd),
            batch_spec(H), batch_spec(H), batch_spec(H), batch_spec(H),
            # TODO(synk): R block stays (tile_b, 1) (masked stores); a lane-dense
            # (1, tile_b) layout would need an in-kernel transpose of the reduce.
            pl.BlockSpec((tile_b, 1), lambda c, j: (c * npc + j, 0)),
            pl.BlockSpec((None, 8, H), lambda c, j: (c, 0, 0)),
        )
        kernel = functools.partial(_cmscm_kernel, eps=LN_EPS)
        return pl.pallas_call(
            kernel,
            grid=(ncores, npc),
            out_shape=out_shape,
            in_specs=in_specs,
            out_specs=out_specs,
            cost_estimate=cost,
            compiler_params=pltpu.CompilerParams(
                dimension_semantics=("parallel", "arbitrary"),
                vmem_limit_bytes=vmem_limit,
            ),
        )(*inputs)

    try:
        outs = run(True)
    except Exception:
        # pl.Buffered(1) (single-buffered constants) not supported on this JAX
        # version -> fall back to default double-buffered weight blocks.
        outs = run(False)

    S, Zx, Zy, X_hat, Y_hat, R, stats = outs

    # Tiny epilogue in plain JAX over the (ncores, 8, H) partial-sum slab.
    tot = jnp.sum(stats, axis=0)                    # (8, H)
    inv_b = 1.0 / B
    direct = tot[0] * inv_b
    total_eff = tot[1] * inv_b
    indirect = total_eff - direct
    recon = (jnp.sum(tot[2]) + jnp.sum(tot[3])) / (B * H)
    invariance = jnp.sum(tot[4]) / (B * H)
    # TODO(synk): reference consistency_loss compares a length-H vector to a
    # length-B R.squeeze(); implemented as the broadcast MSE over (B, H).
    d_vec = direct + indirect
    consistency = jnp.mean((d_vec[None, :] - R.astype(jnp.float32)) ** 2)

    return {
        'S': S, 'Zx': Zx, 'Zy': Zy, 'X_hat': X_hat, 'Y_hat': Y_hat, 'R': R,
        'direct_effect': direct,
        'indirect_effect': indirect,
        'recon_loss': recon,
        'consistency_loss': consistency,
        'invariance_loss': invariance,
    }


# ------------------------------ parameters ---------------------------------- #

def _uniform(key, shape, bound):
    return jax.random.uniform(key, shape, jnp.float32, -bound, bound)


def _pack_ln(bias, dout):
    # rows: [linear bias, LN gamma (ones), LN beta (zeros)]
    return jnp.stack([bias,
                      jnp.ones((dout,), jnp.float32),
                      jnp.zeros((dout,), jnp.float32)], axis=0)


def init_params(key, hidden_dim, shared_dim, w_dtype=jnp.bfloat16):
    H, Sd = hidden_dim, shared_dim
    keys = iter(jax.random.split(key, 16))

    def lin(kk, din, dout):
        kw, kb = jax.random.split(kk)
        bound = float(din) ** -0.5
        return _uniform(kw, (din, dout), bound), _uniform(kb, (dout,), bound)

    def noise_enc(kk):
        k1, k2 = jax.random.split(kk)
        w1, b1 = lin(k1, H, H)
        w2, b2 = lin(k2, H, H)
        return {'w1': w1.astype(w_dtype), 'p1': _pack_ln(b1, H),
                'w2': w2.astype(w_dtype), 'b2': b2.reshape(1, H)}

    ws, bs = lin(next(keys), 2 * H, Sd)        # fs: Linear(2H -> Sd)
    wx, bx = lin(next(keys), Sd + H, H)        # fx: Linear(Sd+H -> H)
    wy, by = lin(next(keys), Sd + H, H)        # fy: Linear(Sd+H -> H)
    wzx, bzx = lin(next(keys), H, H)
    wzy, bzy = lin(next(keys), H, H)
    wr, br = lin(next(keys), Sd, 1)            # fr: Linear(Sd -> 1)

    return {
        'nex': noise_enc(next(keys)),
        'ney': noise_enc(next(keys)),
        # TODO(synk): CausalVariable S exists in __init__ but is unused in forward().
        'fs': {'wx': ws[:H].astype(w_dtype), 'wy': ws[H:].astype(w_dtype),
               'p': _pack_ln(bs, Sd)},
        'fzx': {'w': wzx.astype(w_dtype), 'p': _pack_ln(bzx, H)},
        'fzy': {'w': wzy.astype(w_dtype), 'p': _pack_ln(bzy, H)},
        'fx': {'ws': wx[:Sd].astype(w_dtype), 'wz': wx[Sd:].astype(w_dtype),
               'p': _pack_ln(bx, H)},
        'fy': {'ws': wy[:Sd].astype(w_dtype), 'wz': wy[Sd:].astype(w_dtype),
               'p': _pack_ln(by, H)},
        'fr': {'w': wr.reshape(1, Sd), 'b': br.reshape(1, 1)},  # f32 (VPU head)
    }


# ------------------------------ demo ----------------------------------------- #

if __name__ == "__main__":
    HIDDEN, SHARED, BATCH = 32, 16, 8  # small stand-ins for (768, 256)

    root = jax.random.PRNGKey(0)
    k_params, k_x, k_y, k_noise = jax.random.split(root, 4)

    params = init_params(k_params, HIDDEN, SHARED)
    X = jax.random.normal(k_x, (BATCH, HIDDEN), jnp.float32)
    Y = jax.random.normal(k_y, (BATCH, HIDDEN), jnp.float32)

    out = cmscm_forward(params, X, Y, k_noise)
    jax.block_until_ready(out)

    assert out['X_hat'].shape == (BATCH, HIDDEN)
    assert out['S'].shape == (BATCH, SHARED)
    assert out['R'].shape == (BATCH, 1)
    assert out['direct_effect'].shape == (HIDDEN,)
    print("KERNEL_OK")
</pallas_src>

<mosaic_0001>
module attributes {stable_mosaic.version = 11 : i64} {
  func.func @_cmscm_kernel(%arg0: i32, %arg1: i32, %arg2: memref<8x32xf32, #tpu.memory_space<vmem>>, %arg3: memref<8x32xf32, #tpu.memory_space<vmem>>, %arg4: memref<8x32xbf16, #tpu.memory_space<vmem>>, %arg5: memref<8x32xbf16, #tpu.memory_space<vmem>>, %arg6: memref<32x32xbf16, #tpu.memory_space<vmem>>, %arg7: memref<3x32xf32, #tpu.memory_space<vmem>>, %arg8: memref<32x32xbf16, #tpu.memory_space<vmem>>, %arg9: memref<1x32xf32, #tpu.memory_space<vmem>>, %arg10: memref<32x32xbf16, #tpu.memory_space<vmem>>, %arg11: memref<3x32xf32, #tpu.memory_space<vmem>>, %arg12: memref<32x32xbf16, #tpu.memory_space<vmem>>, %arg13: memref<1x32xf32, #tpu.memory_space<vmem>>, %arg14: memref<32x16xbf16, #tpu.memory_space<vmem>>, %arg15: memref<32x16xbf16, #tpu.memory_space<vmem>>, %arg16: memref<3x16xf32, #tpu.memory_space<vmem>>, %arg17: memref<32x32xbf16, #tpu.memory_space<vmem>>, %arg18: memref<3x32xf32, #tpu.memory_space<vmem>>, %arg19: memref<32x32xbf16, #tpu.memory_space<vmem>>, %arg20: memref<3x32xf32, #tpu.memory_space<vmem>>, %arg21: memref<16x32xbf16, #tpu.memory_space<vmem>>, %arg22: memref<32x32xbf16, #tpu.memory_space<vmem>>, %arg23: memref<3x32xf32, #tpu.memory_space<vmem>>, %arg24: memref<16x32xbf16, #tpu.memory_space<vmem>>, %arg25: memref<32x32xbf16, #tpu.memory_space<vmem>>, %arg26: memref<3x32xf32, #tpu.memory_space<vmem>>, %arg27: memref<1x16xf32, #tpu.memory_space<vmem>>, %arg28: memref<1x1xf32, #tpu.memory_space<vmem>>, %arg29: memref<8x16xf32, #tpu.memory_space<vmem>>, %arg30: memref<8x32xf32, #tpu.memory_space<vmem>>, %arg31: memref<8x32xf32, #tpu.memory_space<vmem>>, %arg32: memref<8x32xf32, #tpu.memory_space<vmem>>, %arg33: memref<8x32xf32, #tpu.memory_space<vmem>>, %arg34: memref<8x1xf32, #tpu.memory_space<vmem>>, %arg35: memref<1x8x32xf32, #tpu.memory_space<vmem>>) attributes {dimension_semantics = [#tpu.dimension_semantics<parallel>, #tpu.dimension_semantics<arbitrary>], iteration_bounds = array<i64: 1, 1>, scalar_prefetch = 0 : i64, scratch_operands = 0 : i64, tpu.core_type = #tpu.core_type<tc>, window_params = [{transform_indices = @transform_0, window_bounds = array<i64: 8, 32>}, {transform_indices = @transform_1, window_bounds = array<i64: 8, 32>}, {transform_indices = @transform_2, window_bounds = array<i64: 8, 32>}, {transform_indices = @transform_3, window_bounds = array<i64: 8, 32>}, {pipeline_mode = #tpu.pipeline_mode<synchronous>, transform_indices = @transform_4, window_bounds = array<i64: 32, 32>}, {pipeline_mode = #tpu.pipeline_mode<synchronous>, transform_indices = @transform_5, window_bounds = array<i64: 3, 32>}, {pipeline_mode = #tpu.pipeline_mode<synchronous>, transform_indices = @transform_6, window_bounds = array<i64: 32, 32>}, {pipeline_mode = #tpu.pipeline_mode<synchronous>, transform_indices = @transform_7, window_bounds = array<i64: 1, 32>}, {pipeline_mode = #tpu.pipeline_mode<synchronous>, transform_indices = @transform_8, window_bounds = array<i64: 32, 32>}, {pipeline_mode = #tpu.pipeline_mode<synchronous>, transform_indices = @transform_9, window_bounds = array<i64: 3, 32>}, {pipeline_mode = #tpu.pipeline_mode<synchronous>, transform_indices = @transform_10, window_bounds = array<i64: 32, 32>}, {pipeline_mode = #tpu.pipeline_mode<synchronous>, transform_indices = @transform_11, window_bounds = array<i64: 1, 32>}, {pipeline_mode = #tpu.pipeline_mode<synchronous>, transform_indices = @transform_12, window_bounds = array<i64: 32, 16>}, {pipeline_mode = #tpu.pipeline_mode<synchronous>, transform_indices = @transform_13, window_bounds = array<i64: 32, 16>}, {pipeline_mode = #tpu.pipeline_mode<synchronous>, transform_indices = @transform_14, window_bounds = array<i64: 3, 16>}, {pipeline_mode = #tpu.pipeline_mode<synchronous>, transform_indices = @transform_15, window_bounds = array<i64: 32, 32>}, {pipeline_mode = #tpu.pipeline_mode<synchronous>, transform_indices = @transform_16, window_bounds = array<i64: 3, 32>}, {pipeline_mode = #tpu.pipeline_mode<synchronous>, transform_indices = @transform_17, window_bounds = array<i64: 32, 32>}, {pipeline_mode = #tpu.pipeline_mode<synchronous>, transform_indices = @transform_18, window_bounds = array<i64: 3, 32>}, {pipeline_mode = #tpu.pipeline_mode<synchronous>, transform_indices = @transform_19, window_bounds = array<i64: 16, 32>}, {pipeline_mode = #tpu.pipeline_mode<synchronous>, transform_indices = @transform_20, window_bounds = array<i64: 32, 32>}, {pipeline_mode = #tpu.pipeline_mode<synchronous>, transform_indices = @transform_21, window_bounds = array<i64: 3, 32>}, {pipeline_mode = #tpu.pipeline_mode<synchronous>, transform_indices = @transform_22, window_bounds = array<i64: 16, 32>}, {pipeline_mode = #tpu.pipeline_mode<synchronous>, transform_indices = @transform_23, window_bounds = array<i64: 32, 32>}, {pipeline_mode = #tpu.pipeline_mode<synchronous>, transform_indices = @transform_24, window_bounds = array<i64: 3, 32>}, {pipeline_mode = #tpu.pipeline_mode<synchronous>, transform_indices = @transform_25, window_bounds = array<i64: 1, 16>}, {pipeline_mode = #tpu.pipeline_mode<synchronous>, transform_indices = @transform_26, window_bounds = array<i64: 1, 1>}, {transform_indices = @transform_27, window_bounds = array<i64: 8, 16>}, {transform_indices = @transform_28, window_bounds = array<i64: 8, 32>}, {transform_indices = @transform_29, window_bounds = array<i64: 8, 32>}, {transform_indices = @transform_30, window_bounds = array<i64: 8, 32>}, {transform_indices = @transform_31, window_bounds = array<i64: 8, 32>}, {transform_indices = @transform_32, window_bounds = array<i64: 8, 1>}, {transform_indices = @transform_33, window_bounds = array<i64: 1, 8, 32>}]} {
    %c0_i32 = arith.constant 0 : i32
    %0 = arith.cmpi eq, %arg1, %c0_i32 : i32
    %1 = arith.extui %0 : i1 to i32
    %c0_i32_0 = arith.constant 0 : i32
    %2 = arith.cmpi ne, %1, %c0_i32_0 : i32
    scf.if %2 {
      %cst_270 = arith.constant 0.000000e+00 : f32
      %506 = vector.broadcast %cst_270 : f32 to vector<8x32xf32>
      %c0_271 = arith.constant 0 : index
      %c0_272 = arith.constant 0 : index
      %c0_273 = arith.constant 0 : index
      %507 = vector.load %arg35[%c0_271, %c0_272, %c0_273] : memref<1x8x32xf32, #tpu.memory_space<vmem>>, vector<1x8x32xf32>
      %508 = vector.shape_cast %507 : vector<1x8x32xf32> to vector<8x32xf32>
      %509 = vector.shape_cast %506 : vector<8x32xf32> to vector<1x8x32xf32>
      tpu.vector_store %arg35[%c0_271, %c0_272, %c0_273], %509 {strides = array<i32>} : memref<1x8x32xf32, #tpu.memory_space<vmem>>, vector<1x8x32xf32>,
    } else {
    }
    %c0 = arith.constant 0 : index
    %c0_1 = arith.constant 0 : index
    %3 = vector.load %arg2[%c0, %c0_1] : memref<8x32xf32, #tpu.memory_space<vmem>>, vector<8x32xf32>
    %c0_2 = arith.constant 0 : index
    %c0_3 = arith.constant 0 : index
    %4 = vector.load %arg3[%c0_2, %c0_3] : memref<8x32xf32, #tpu.memory_space<vmem>>, vector<8x32xf32>
    %c0_4 = arith.constant 0 : index
    %c0_5 = arith.constant 0 : index
    %5 = vector.load %arg4[%c0_4, %c0_5] : memref<8x32xbf16, #tpu.memory_space<vmem>>, vector<8x32xbf16>
    %c0_6 = arith.constant 0 : index
    %c0_7 = arith.constant 0 : index
    %6 = vector.load %arg6[%c0_6, %c0_7] : memref<32x32xbf16, #tpu.memory_space<vmem>>, vector<32x32xbf16>
    %cst = arith.constant dense<0.000000e+00> : vector<8x32xf32>
    %7 = tpu.matmul %5, %6, %cst {dimension_numbers = #tpu.dot_dimension_numbers<[1], [0], [0], [1], [0, 0, 1, 1], [], []>} : vector<8x32xbf16>, vector<32x32xbf16>, vector<8x32xf32> -> vector<8x32xf32>
    %c0_8 = arith.constant 0 : index
    %c0_9 = arith.constant 0 : index
    %8 = vector.load %arg7[%c0_8, %c0_9] : memref<3x32xf32, #tpu.memory_space<vmem>>, vector<1x32xf32>
    %9 = vector.broadcast %8 : vector<1x32xf32> to vector<8x32xf32>
    %10 = arith.addf %7, %9 : vector<8x32xf32>
    %cst_10 = arith.constant dense<0.000000e+00> : vector<8xf32>
    %11 = vector.multi_reduction <add>, %10, %cst_10 [1] : vector<8x32xf32> to vector<8xf32>
    %12 = vector.shape_cast %11 : vector<8xf32> to vector<8x1xf32>
    %cst_11 = arith.constant 3.200000e+01 : f32
    %13 = vector.broadcast %cst_11 : f32 to vector<8x1xf32>
    %14 = arith.divf %12, %13 : vector<8x1xf32>
    %15 = arith.mulf %10, %10 : vector<8x32xf32>
    %cst_12 = arith.constant dense<0.000000e+00> : vector<8xf32>
    %16 = vector.multi_reduction <add>, %15, %cst_12 [1] : vector<8x32xf32> to vector<8xf32>
    %17 = vector.shape_cast %16 : vector<8xf32> to vector<8x1xf32>
    %cst_13 = arith.constant 3.200000e+01 : f32
    %18 = vector.broadcast %cst_13 : f32 to vector<8x1xf32>
    %19 = arith.divf %17, %18 : vector<8x1xf32>
    %20 = arith.mulf %14, %14 : vector<8x1xf32>
    %21 = arith.subf %19, %20 : vector<8x1xf32>
    %cst_14 = arith.constant 0.000000e+00 : f32
    %22 = vector.broadcast %cst_14 : f32 to vector<8x1xf32>
    %23 = arith.maximumf %21, %22 : vector<8x1xf32>
    %24 = vector.broadcast %14 : vector<8x1xf32> to vector<8x32xf32>
    %25 = arith.subf %10, %24 : vector<8x32xf32>
    %cst_15 = arith.constant 9.99999974E-6 : f32
    %26 = vector.broadcast %cst_15 : f32 to vector<8x1xf32>
    %27 = arith.addf %23, %26 : vector<8x1xf32>
    %28 = math.rsqrt %27 : vector<8x1xf32>
    %29 = vector.broadcast %28 : vector<8x1xf32> to vector<8x32xf32>
    %30 = arith.mulf %25, %29 : vector<8x32xf32>
    %c1 = arith.constant 1 : index
    %c0_16 = arith.constant 0 : index
    %31 = vector.load %arg7[%c1, %c0_16] : memref<3x32xf32, #tpu.memory_space<vmem>>, vector<1x32xf32>
    %32 = vector.broadcast %31 : vector<1x32xf32> to vector<8x32xf32>
    %33 = arith.mulf %30, %32 : vector<8x32xf32>
    %c2 = arith.constant 2 : index
    %c0_17 = arith.constant 0 : index
    %34 = vector.load %arg7[%c2, %c0_17] : memref<3x32xf32, #tpu.memory_space<vmem>>, vector<1x32xf32>
    %35 = vector.broadcast %34 : vector<1x32xf32> to vector<8x32xf32>
    %36 = arith.addf %33, %35 : vector<8x32xf32>
    %cst_18 = arith.constant 0.000000e+00 : f32
    %37 = vector.broadcast %cst_18 : f32 to vector<8x32xf32>
    %38 = arith.maximumf %36, %37 : vector<8x32xf32>
    %39 = arith.truncf %38 : vector<8x32xf32> to vector<8x32xbf16>
    %c0_19 = arith.constant 0 : index
    %c0_20 = arith.constant 0 : index
    %40 = vector.load %arg8[%c0_19, %c0_20] : memref<32x32xbf16, #tpu.memory_space<vmem>>, vector<32x32xbf16>
    %cst_21 = arith.constant dense<0.000000e+00> : vector<8x32xf32>
    %41 = tpu.matmul %39, %40, %cst_21 {dimension_numbers = #tpu.dot_dimension_numbers<[1], [0], [0], [1], [0, 0, 1, 1], [], []>} : vector<8x32xbf16>, vector<32x32xbf16>, vector<8x32xf32> -> vector<8x32xf32>
    %42 = arith.addf %3, %41 : vector<8x32xf32>
    %c0_22 = arith.constant 0 : index
    %c0_23 = arith.constant 0 : index
    %43 = vector.load %arg9[%c0_22, %c0_23] : memref<1x32xf32, #tpu.memory_space<vmem>>, vector<1x32xf32>
    %44 = vector.broadcast %43 : vector<1x32xf32> to vector<8x32xf32>
    %45 = arith.addf %42, %44 : vector<8x32xf32>
    %c0_24 = arith.constant 0 : index
    %c0_25 = arith.constant 0 : index
    %46 = vector.load %arg5[%c0_24, %c0_25] : memref<8x32xbf16, #tpu.memory_space<vmem>>, vector<8x32xbf16>
    %c0_26 = arith.constant 0 : index
    %c0_27 = arith.constant 0 : index
    %47 = vector.load %arg10[%c0_26, %c0_27] : memref<32x32xbf16, #tpu.memory_space<vmem>>, vector<32x32xbf16>
    %cst_28 = arith.constant dense<0.000000e+00> : vector<8x32xf32>
    %48 = tpu.matmul %46, %47, %cst_28 {dimension_numbers = #tpu.dot_dimension_numbers<[1], [0], [0], [1], [0, 0, 1, 1], [], []>} : vector<8x32xbf16>, vector<32x32xbf16>, vector<8x32xf32> -> vector<8x32xf32>
    %c0_29 = arith.constant 0 : index
    %c0_30 = arith.constant 0 : index
    %49 = vector.load %arg11[%c0_29, %c0_30] : memref<3x32xf32, #tpu.memory_space<vmem>>, vector<1x32xf32>
    %50 = vector.broadcast %49 : vector<1x32xf32> to vector<8x32xf32>
    %51 = arith.addf %48, %50 : vector<8x32xf32>
    %cst_31 = arith.constant dense<0.000000e+00> : vector<8xf32>
    %52 = vector.multi_reduction <add>, %51, %cst_31 [1] : vector<8x32xf32> to vector<8xf32>
    %53 = vector.shape_cast %52 : vector<8xf32> to vector<8x1xf32>
    %cst_32 = arith.constant 3.200000e+01 : f32
    %54 = vector.broadcast %cst_32 : f32 to vector<8x1xf32>
    %55 = arith.divf %53, %54 : vector<8x1xf32>
    %56 = arith.mulf %51, %51 : vector<8x32xf32>
    %cst_33 = arith.constant dense<0.000000e+00> : vector<8xf32>
    %57 = vector.multi_reduction <add>, %56, %cst_33 [1] : vector<8x32xf32> to vector<8xf32>
    %58 = vector.shape_cast %57 : vector<8xf32> to vector<8x1xf32>
    %cst_34 = arith.constant 3.200000e+01 : f32
    %59 = vector.broadcast %cst_34 : f32 to vector<8x1xf32>
    %60 = arith.divf %58, %59 : vector<8x1xf32>
    %61 = arith.mulf %55, %55 : vector<8x1xf32>
    %62 = arith.subf %60, %61 : vector<8x1xf32>
    %cst_35 = arith.constant 0.000000e+00 : f32
    %63 = vector.broadcast %cst_35 : f32 to vector<8x1xf32>
    %64 = arith.maximumf %62, %63 : vector<8x1xf32>
    %65 = vector.broadcast %55 : vector<8x1xf32> to vector<8x32xf32>
    %66 = arith.subf %51, %65 : vector<8x32xf32>
    %cst_36 = arith.constant 9.99999974E-6 : f32
    %67 = vector.broadcast %cst_36 : f32 to vector<8x1xf32>
    %68 = arith.addf %64, %67 : vector<8x1xf32>
    %69 = math.rsqrt %68 : vector<8x1xf32>
    %70 = vector.broadcast %69 : vector<8x1xf32> to vector<8x32xf32>
    %71 = arith.mulf %66, %70 : vector<8x32xf32>
    %c1_37 = arith.constant 1 : index
    %c0_38 = arith.constant 0 : index
    %72 = vector.load %arg11[%c1_37, %c0_38] : memref<3x32xf32, #tpu.memory_space<vmem>>, vector<1x32xf32>
    %73 = vector.broadcast %72 : vector<1x32xf32> to vector<8x32xf32>
    %74 = arith.mulf %71, %73 : vector<8x32xf32>
    %c2_39 = arith.constant 2 : index
    %c0_40 = arith.constant 0 : index
    %75 = vector.load %arg11[%c2_39, %c0_40] : memref<3x32xf32, #tpu.memory_space<vmem>>, vector<1x32xf32>
    %76 = vector.broadcast %75 : vector<1x32xf32> to vector<8x32xf32>
    %77 = arith.addf %74, %76 : vector<8x32xf32>
    %cst_41 = arith.constant 0.000000e+00 : f32
    %78 = vector.broadcast %cst_41 : f32 to vector<8x32xf32>
    %79 = arith.maximumf %77, %78 : vector<8x32xf32>
    %80 = arith.truncf %79 : vector<8x32xf32> to vector<8x32xbf16>
    %c0_42 = arith.constant 0 : index
    %c0_43 = arith.constant 0 : index
    %81 = vector.load %arg12[%c0_42, %c0_43] : memref<32x32xbf16, #tpu.memory_space<vmem>>, vector<32x32xbf16>
    %cst_44 = arith.constant dense<0.000000e+00> : vector<8x32xf32>
    %82 = tpu.matmul %80, %81, %cst_44 {dimension_numbers = #tpu.dot_dimension_numbers<[1], [0], [0], [1], [0, 0, 1, 1], [], []>} : vector<8x32xbf16>, vector<32x32xbf16>, vector<8x32xf32> -> vector<8x32xf32>
    %83 = arith.addf %4, %82 : vector<8x32xf32>
    %c0_45 = arith.constant 0 : index
    %c0_46 = arith.constant 0 : index
    %84 = vector.load %arg13[%c0_45, %c0_46] : memref<1x32xf32, #tpu.memory_space<vmem>>, vector<1x32xf32>
    %85 = vector.broadcast %84 : vector<1x32xf32> to vector<8x32xf32>
    %86 = arith.addf %83, %85 : vector<8x32xf32>
    %87 = arith.truncf %45 : vector<8x32xf32> to vector<8x32xbf16>
    %88 = arith.truncf %86 : vector<8x32xf32> to vector<8x32xbf16>
    %c0_47 = arith.constant 0 : index
    %c0_48 = arith.constant 0 : index
    %89 = vector.load %arg14[%c0_47, %c0_48] : memref<32x16xbf16, #tpu.memory_space<vmem>>, vector<32x16xbf16>
    %cst_49 = arith.constant dense<0.000000e+00> : vector<8x16xf32>
    %90 = tpu.matmul %87, %89, %cst_49 {dimension_numbers = #tpu.dot_dimension_numbers<[1], [0], [0], [1], [0, 0, 1, 1], [], []>} : vector<8x32xbf16>, vector<32x16xbf16>, vector<8x16xf32> -> vector<8x16xf32>
    %c0_50 = arith.constant 0 : index
    %c0_51 = arith.constant 0 : index
    %91 = vector.load %arg15[%c0_50, %c0_51] : memref<32x16xbf16, #tpu.memory_space<vmem>>, vector<32x16xbf16>
    %cst_52 = arith.constant dense<0.000000e+00> : vector<8x16xf32>
    %92 = tpu.matmul %88, %91, %cst_52 {dimension_numbers = #tpu.dot_dimension_numbers<[1], [0], [0], [1], [0, 0, 1, 1], [], []>} : vector<8x32xbf16>, vector<32x16xbf16>, vector<8x16xf32> -> vector<8x16xf32>
    %93 = arith.addf %90, %92 : vector<8x16xf32>
    %c0_53 = arith.constant 0 : index
    %c0_54 = arith.constant 0 : index
    %94 = vector.load %arg16[%c0_53, %c0_54] : memref<3x16xf32, #tpu.memory_space<vmem>>, vector<1x16xf32>
    %95 = vector.broadcast %94 : vector<1x16xf32> to vector<8x16xf32>
    %96 = arith.addf %93, %95 : vector<8x16xf32>
    %cst_55 = arith.constant dense<0.000000e+00> : vector<8xf32>
    %97 = vector.multi_reduction <add>, %96, %cst_55 [1] : vector<8x16xf32> to vector<8xf32>
    %98 = vector.shape_cast %97 : vector<8xf32> to vector<8x1xf32>
    %cst_56 = arith.constant 1.600000e+01 : f32
    %99 = vector.broadcast %cst_56 : f32 to vector<8x1xf32>
    %100 = arith.divf %98, %99 : vector<8x1xf32>
    %101 = arith.mulf %96, %96 : vector<8x16xf32>
    %cst_57 = arith.constant dense<0.000000e+00> : vector<8xf32>
    %102 = vector.multi_reduction <add>, %101, %cst_57 [1] : vector<8x16xf32> to vector<8xf32>
    %103 = vector.shape_cast %102 : vector<8xf32> to vector<8x1xf32>
    %cst_58 = arith.constant 1.600000e+01 : f32
    %104 = vector.broadcast %cst_58 : f32 to vector<8x1xf32>
    %105 = arith.divf %103, %104 : vector<8x1xf32>
    %106 = arith.mulf %100, %100 : vector<8x1xf32>
    %107 = arith.subf %105, %106 : vector<8x1xf32>
    %cst_59 = arith.constant 0.000000e+00 : f32
    %108 = vector.broadcast %cst_59 : f32 to vector<8x1xf32>
    %109 = arith.maximumf %107, %108 : vector<8x1xf32>
    %110 = vector.broadcast %100 : vector<8x1xf32> to vector<8x16xf32>
    %111 = arith.subf %96, %110 : vector<8x16xf32>
    %cst_60 = arith.constant 9.99999974E-6 : f32
    %112 = vector.broadcast %cst_60 : f32 to vector<8x1xf32>
    %113 = arith.addf %109, %112 : vector<8x1xf32>
    %114 = math.rsqrt %113 : vector<8x1xf32>
    %115 = vector.broadcast %114 : vector<8x1xf32> to vector<8x16xf32>
    %116 = arith.mulf %111, %115 : vector<8x16xf32>
    %c1_61 = arith.constant 1 : index
    %c0_62 = arith.constant 0 : index
    %117 = vector.load %arg16[%c1_61, %c0_62] : memref<3x16xf32, #tpu.memory_space<vmem>>, vector<1x16xf32>
    %118 = vector.broadcast %117 : vector<1x16xf32> to vector<8x16xf32>
    %119 = arith.mulf %116, %118 : vector<8x16xf32>
    %c2_63 = arith.constant 2 : index
    %c0_64 = arith.constant 0 : index
    %120 = vector.load %arg16[%c2_63, %c0_64] : memref<3x16xf32, #tpu.memory_space<vmem>>, vector<1x16xf32>
    %121 = vector.broadcast %120 : vector<1x16xf32> to vector<8x16xf32>
    %122 = arith.addf %119, %121 : vector<8x16xf32>
    %cst_65 = arith.constant 0.000000e+00 : f32
    %123 = vector.broadcast %cst_65 : f32 to vector<8x16xf32>
    %124 = arith.maximumf %122, %123 : vector<8x16xf32>
    %c0_66 = arith.constant 0 : index
    %c0_67 = arith.constant 0 : index
    %125 = vector.load %arg29[%c0_66, %c0_67] : memref<8x16xf32, #tpu.memory_space<vmem>>, vector<8x16xf32>
    tpu.vector_store %arg29[%c0_66, %c0_67], %124 {strides = array<i32>} : memref<8x16xf32, #tpu.memory_space<vmem>>, vector<8x16xf32>,
    %126 = arith.truncf %124 : vector<8x16xf32> to vector<8x16xbf16>
    %c0_68 = arith.constant 0 : index
    %c0_69 = arith.constant 0 : index
    %127 = vector.load %arg27[%c0_68, %c0_69] : memref<1x16xf32, #tpu.memory_space<vmem>>, vector<1x16xf32>
    %128 = vector.broadcast %127 : vector<1x16xf32> to vector<8x16xf32>
    %129 = arith.mulf %124, %128 : vector<8x16xf32>
    %cst_70 = arith.constant dense<0.000000e+00> : vector<8xf32>
    %130 = vector.multi_reduction <add>, %129, %cst_70 [1] : vector<8x16xf32> to vector<8xf32>
    %131 = vector.shape_cast %130 : vector<8xf32> to vector<8x1xf32>
    %c0_71 = arith.constant 0 : index
    %c0_72 = arith.constant 0 : index
    %132 = vector.load %arg28[%c0_71, %c0_72] : memref<1x1xf32, #tpu.memory_space<vmem>>, vector<1x1xf32>
    %133 = vector.broadcast %132 : vector<1x1xf32> to vector<8x1xf32>
    %134 = arith.addf %131, %133 : vector<8x1xf32>
    %135 = arith.negf %134 : vector<8x1xf32>
    %136 = math.exp %135 : vector<8x1xf32>
    %cst_73 = arith.constant 1.000000e+00 : f32
    %137 = vector.broadcast %cst_73 : f32 to vector<8x1xf32>
    %138 = arith.addf %137, %136 : vector<8x1xf32>
    %139 = arith.divf %137, %138 : vector<8x1xf32>
    %c0_74 = arith.constant 0 : index
    %c0_75 = arith.constant 0 : index
    %140 = vector.load %arg34[%c0_74, %c0_75] : memref<8x1xf32, #tpu.memory_space<vmem>>, vector<8x1xf32>
    tpu.vector_store %arg34[%c0_74, %c0_75], %139 {strides = array<i32>} : memref<8x1xf32, #tpu.memory_space<vmem>>, vector<8x1xf32>,
    %c0_76 = arith.constant 0 : index
    %c0_77 = arith.constant 0 : index
    %141 = vector.load %arg17[%c0_76, %c0_77] : memref<32x32xbf16, #tpu.memory_space<vmem>>, vector<32x32xbf16>
    %cst_78 = arith.constant dense<0.000000e+00> : vector<8x32xf32>
    %142 = tpu.matmul %87, %141, %cst_78 {dimension_numbers = #tpu.dot_dimension_numbers<[1], [0], [0], [1], [0, 0, 1, 1], [], []>} : vector<8x32xbf16>, vector<32x32xbf16>, vector<8x32xf32> -> vector<8x32xf32>
    %c0_79 = arith.constant 0 : index
    %c0_80 = arith.constant 0 : index
    %143 = vector.load %arg18[%c0_79, %c0_80] : memref<3x32xf32, #tpu.memory_space<vmem>>, vector<1x32xf32>
    %144 = vector.broadcast %143 : vector<1x32xf32> to vector<8x32xf32>
    %145 = arith.addf %142, %144 : vector<8x32xf32>
    %cst_81 = arith.constant dense<0.000000e+00> : vector<8xf32>
    %146 = vector.multi_reduction <add>, %145, %cst_81 [1] : vector<8x32xf32> to vector<8xf32>
    %147 = vector.shape_cast %146 : vector<8xf32> to vector<8x1xf32>
    %cst_82 = arith.constant 3.200000e+01 : f32
    %148 = vector.broadcast %cst_82 : f32 to vector<8x1xf32>
    %149 = arith.divf %147, %148 : vector<8x1xf32>
    %150 = arith.mulf %145, %145 : vector<8x32xf32>
    %cst_83 = arith.constant dense<0.000000e+00> : vector<8xf32>
    %151 = vector.multi_reduction <add>, %150, %cst_83 [1] : vector<8x32xf32> to vector<8xf32>
    %152 = vector.shape_cast %151 : vector<8xf32> to vector<8x1xf32>
    %cst_84 = arith.constant 3.200000e+01 : f32
    %153 = vector.broadcast %cst_84 : f32 to vector<8x1xf32>
    %154 = arith.divf %152, %153 : vector<8x1xf32>
    %155 = arith.mulf %149, %149 : vector<8x1xf32>
    %156 = arith.subf %154, %155 : vector<8x1xf32>
    %cst_85 = arith.constant 0.000000e+00 : f32
    %157 = vector.broadcast %cst_85 : f32 to vector<8x1xf32>
    %158 = arith.maximumf %156, %157 : vector<8x1xf32>
    %159 = vector.broadcast %149 : vector<8x1xf32> to vector<8x32xf32>
    %160 = arith.subf %145, %159 : vector<8x32xf32>
    %cst_86 = arith.constant 9.99999974E-6 : f32
    %161 = vector.broadcast %cst_86 : f32 to vector<8x1xf32>
    %162 = arith.addf %158, %161 : vector<8x1xf32>
    %163 = math.rsqrt %162 : vector<8x1xf32>
    %164 = vector.broadcast %163 : vector<8x1xf32> to vector<8x32xf32>
    %165 = arith.mulf %160, %164 : vector<8x32xf32>
    %c1_87 = arith.constant 1 : index
    %c0_88 = arith.constant 0 : index
    %166 = vector.load %arg18[%c1_87, %c0_88] : memref<3x32xf32, #tpu.memory_space<vmem>>, vector<1x32xf32>
    %167 = vector.broadcast %166 : vector<1x32xf32> to vector<8x32xf32>
    %168 = arith.mulf %165, %167 : vector<8x32xf32>
    %c2_89 = arith.constant 2 : index
    %c0_90 = arith.constant 0 : index
    %169 = vector.load %arg18[%c2_89, %c0_90] : memref<3x32xf32, #tpu.memory_space<vmem>>, vector<1x32xf32>
    %170 = vector.broadcast %169 : vector<1x32xf32> to vector<8x32xf32>
    %171 = arith.addf %168, %170 : vector<8x32xf32>
    %cst_91 = arith.constant 0.000000e+00 : f32
    %172 = vector.broadcast %cst_91 : f32 to vector<8x32xf32>
    %173 = arith.maximumf %171, %172 : vector<8x32xf32>
    %c0_92 = arith.constant 0 : index
    %c0_93 = arith.constant 0 : index
    %174 = vector.load %arg30[%c0_92, %c0_93] : memref<8x32xf32, #tpu.memory_space<vmem>>, vector<8x32xf32>
    tpu.vector_store %arg30[%c0_92, %c0_93], %173 {strides = array<i32>} : memref<8x32xf32, #tpu.memory_space<vmem>>, vector<8x32xf32>,
    %c0_94 = arith.constant 0 : index
    %c0_95 = arith.constant 0 : index
    %175 = vector.load %arg19[%c0_94, %c0_95] : memref<32x32xbf16, #tpu.memory_space<vmem>>, vector<32x32xbf16>
    %cst_96 = arith.constant dense<0.000000e+00> : vector<8x32xf32>
    %176 = tpu.matmul %88, %175, %cst_96 {dimension_numbers = #tpu.dot_dimension_numbers<[1], [0], [0], [1], [0, 0, 1, 1], [], []>} : vector<8x32xbf16>, vector<32x32xbf16>, vector<8x32xf32> -> vector<8x32xf32>
    %c0_97 = arith.constant 0 : index
    %c0_98 = arith.constant 0 : index
    %177 = vector.load %arg20[%c0_97, %c0_98] : memref<3x32xf32, #tpu.memory_space<vmem>>, vector<1x32xf32>
    %178 = vector.broadcast %177 : vector<1x32xf32> to vector<8x32xf32>
    %179 = arith.addf %176, %178 : vector<8x32xf32>
    %cst_99 = arith.constant dense<0.000000e+00> : vector<8xf32>
    %180 = vector.multi_reduction <add>, %179, %cst_99 [1] : vector<8x32xf32> to vector<8xf32>
    %181 = vector.shape_cast %180 : vector<8xf32> to vector<8x1xf32>
    %cst_100 = arith.constant 3.200000e+01 : f32
    %182 = vector.broadcast %cst_100 : f32 to vector<8x1xf32>
    %183 = arith.divf %181, %182 : vector<8x1xf32>
    %184 = arith.mulf %179, %179 : vector<8x32xf32>
    %cst_101 = arith.constant dense<0.000000e+00> : vector<8xf32>
    %185 = vector.multi_reduction <add>, %184, %cst_101 [1] : vector<8x32xf32> to vector<8xf32>
    %186 = vector.shape_cast %185 : vector<8xf32> to vector<8x1xf32>
    %cst_102 = arith.constant 3.200000e+01 : f32
    %187 = vector.broadcast %cst_102 : f32 to vector<8x1xf32>
    %188 = arith.divf %186, %187 : vector<8x1xf32>
    %189 = arith.mulf %183, %183 : vector<8x1xf32>
    %190 = arith.subf %188, %189 : vector<8x1xf32>
    %cst_103 = arith.constant 0.000000e+00 : f32
    %191 = vector.broadcast %cst_103 : f32 to vector<8x1xf32>
    %192 = arith.maximumf %190, %191 : vector<8x1xf32>
    %193 = vector.broadcast %183 : vector<8x1xf32> to vector<8x32xf32>
    %194 = arith.subf %179, %193 : vector<8x32xf32>
    %cst_104 = arith.constant 9.99999974E-6 : f32
    %195 = vector.broadcast %cst_104 : f32 to vector<8x1xf32>
    %196 = arith.addf %192, %195 : vector<8x1xf32>
    %197 = math.rsqrt %196 : vector<8x1xf32>
    %198 = vector.broadcast %197 : vector<8x1xf32> to vector<8x32xf32>
    %199 = arith.mulf %194, %198 : vector<8x32xf32>
    %c1_105 = arith.constant 1 : index
    %c0_106 = arith.constant 0 : index
    %200 = vector.load %arg20[%c1_105, %c0_106] : memref<3x32xf32, #tpu.memory_space<vmem>>, vector<1x32xf32>
    %201 = vector.broadcast %200 : vector<1x32xf32> to vector<8x32xf32>
    %202 = arith.mulf %199, %201 : vector<8x32xf32>
    %c2_107 = arith.constant 2 : index
    %c0_108 = arith.constant 0 : index
    %203 = vector.load %arg20[%c2_107, %c0_108] : memref<3x32xf32, #tpu.memory_space<vmem>>, vector<1x32xf32>
    %204 = vector.broadcast %203 : vector<1x32xf32> to vector<8x32xf32>
    %205 = arith.addf %202, %204 : vector<8x32xf32>
    %cst_109 = arith.constant 0.000000e+00 : f32
    %206 = vector.broadcast %cst_109 : f32 to vector<8x32xf32>
    %207 = arith.maximumf %205, %206 : vector<8x32xf32>
    %c0_110 = arith.constant 0 : index
    %c0_111 = arith.constant 0 : index
    %208 = vector.load %arg31[%c0_110, %c0_111] : memref<8x32xf32, #tpu.memory_space<vmem>>, vector<8x32xf32>
    tpu.vector_store %arg31[%c0_110, %c0_111], %207 {strides = array<i32>} : memref<8x32xf32, #tpu.memory_space<vmem>>, vector<8x32xf32>,
    %209 = arith.subf %173, %207 : vector<8x32xf32>
    %c0_112 = arith.constant 0 : index
    %c4 = arith.constant 4 : index
    %c0_113 = arith.constant 0 : index
    %210 = vector.load %arg35[%c0_112, %c4, %c0_113] : memref<1x8x32xf32, #tpu.memory_space<vmem>>, vector<1x1x32xf32>
    %211 = vector.shape_cast %210 : vector<1x1x32xf32> to vector<1x32xf32>
    %212 = arith.mulf %209, %209 : vector<8x32xf32>
    %cst_114 = arith.constant dense<0.000000e+00> : vector<32xf32>
    %213 = vector.multi_reduction <add>, %212, %cst_114 [0] : vector<8x32xf32> to vector<32xf32>
    %214 = vector.shape_cast %213 : vector<32xf32> to vector<1x32xf32>
    %215 = arith.addf %211, %214 : vector<1x32xf32>
    %c0_115 = arith.constant 0 : index
    %c4_116 = arith.constant 4 : index
    %c0_117 = arith.constant 0 : index
    %216 = vector.load %arg35[%c0_115, %c4_116, %c0_117] : memref<1x8x32xf32, #tpu.memory_space<vmem>>, vector<1x1x32xf32>
    %217 = vector.shape_cast %216 : vector<1x1x32xf32> to vector<1x32xf32>
    %218 = vector.shape_cast %215 : vector<1x32xf32> to vector<1x1x32xf32>
    tpu.vector_store %arg35[%c0_115, %c4_116, %c0_117], %218 {strides = array<i32>} : memref<1x8x32xf32, #tpu.memory_space<vmem>>, vector<1x1x32xf32>,
    %c0_118 = arith.constant 0 : index
    %c0_119 = arith.constant 0 : index
    %219 = vector.load %arg21[%c0_118, %c0_119] : memref<16x32xbf16, #tpu.memory_space<vmem>>, vector<16x32xbf16>
    %cst_120 = arith.constant dense<0.000000e+00> : vector<8x32xf32>
    %220 = tpu.matmul %126, %219, %cst_120 {dimension_numbers = #tpu.dot_dimension_numbers<[1], [0], [0], [1], [0, 0, 1, 1], [], []>} : vector<8x16xbf16>, vector<16x32xbf16>, vector<8x32xf32> -> vector<8x32xf32>
    %221 = arith.truncf %173 : vector<8x32xf32> to vector<8x32xbf16>
    %c0_121 = arith.constant 0 : index
    %c0_122 = arith.constant 0 : index
    %222 = vector.load %arg22[%c0_121, %c0_122] : memref<32x32xbf16, #tpu.memory_space<vmem>>, vector<32x32xbf16>
    %cst_123 = arith.constant dense<0.000000e+00> : vector<8x32xf32>
    %223 = tpu.matmul %221, %222, %cst_123 {dimension_numbers = #tpu.dot_dimension_numbers<[1], [0], [0], [1], [0, 0, 1, 1], [], []>} : vector<8x32xbf16>, vector<32x32xbf16>, vector<8x32xf32> -> vector<8x32xf32>
    %224 = arith.addf %220, %223 : vector<8x32xf32>
    %c0_124 = arith.constant 0 : index
    %c0_125 = arith.constant 0 : index
    %225 = vector.load %arg23[%c0_124, %c0_125] : memref<3x32xf32, #tpu.memory_space<vmem>>, vector<1x32xf32>
    %226 = vector.broadcast %225 : vector<1x32xf32> to vector<8x32xf32>
    %227 = arith.addf %224, %226 : vector<8x32xf32>
    %cst_126 = arith.constant dense<0.000000e+00> : vector<8xf32>
    %228 = vector.multi_reduction <add>, %227, %cst_126 [1] : vector<8x32xf32> to vector<8xf32>
    %229 = vector.shape_cast %228 : vector<8xf32> to vector<8x1xf32>
    %cst_127 = arith.constant 3.200000e+01 : f32
    %230 = vector.broadcast %cst_127 : f32 to vector<8x1xf32>
    %231 = arith.divf %229, %230 : vector<8x1xf32>
    %232 = arith.mulf %227, %227 : vector<8x32xf32>
    %cst_128 = arith.constant dense<0.000000e+00> : vector<8xf32>
    %233 = vector.multi_reduction <add>, %232, %cst_128 [1] : vector<8x32xf32> to vector<8xf32>
    %234 = vector.shape_cast %233 : vector<8xf32> to vector<8x1xf32>
    %cst_129 = arith.constant 3.200000e+01 : f32
    %235 = vector.broadcast %cst_129 : f32 to vector<8x1xf32>
    %236 = arith.divf %234, %235 : vector<8x1xf32>
    %237 = arith.mulf %231, %231 : vector<8x1xf32>
    %238 = arith.subf %236, %237 : vector<8x1xf32>
    %cst_130 = arith.constant 0.000000e+00 : f32
    %239 = vector.broadcast %cst_130 : f32 to vector<8x1xf32>
    %240 = arith.maximumf %238, %239 : vector<8x1xf32>
    %241 = vector.broadcast %231 : vector<8x1xf32> to vector<8x32xf32>
    %242 = arith.subf %227, %241 : vector<8x32xf32>
    %cst_131 = arith.constant 9.99999974E-6 : f32
    %243 = vector.broadcast %cst_131 : f32 to vector<8x1xf32>
    %244 = arith.addf %240, %243 : vector<8x1xf32>
    %245 = math.rsqrt %244 : vector<8x1xf32>
    %246 = vector.broadcast %245 : vector<8x1xf32> to vector<8x32xf32>
    %247 = arith.mulf %242, %246 : vector<8x32xf32>
    %c1_132 = arith.constant 1 : index
    %c0_133 = arith.constant 0 : index
    %248 = vector.load %arg23[%c1_132, %c0_133] : memref<3x32xf32, #tpu.memory_space<vmem>>, vector<1x32xf32>
    %249 = vector.broadcast %248 : vector<1x32xf32> to vector<8x32xf32>
    %250 = arith.mulf %247, %249 : vector<8x32xf32>
    %c2_134 = arith.constant 2 : index
    %c0_135 = arith.constant 0 : index
    %251 = vector.load %arg23[%c2_134, %c0_135] : memref<3x32xf32, #tpu.memory_space<vmem>>, vector<1x32xf32>
    %252 = vector.broadcast %251 : vector<1x32xf32> to vector<8x32xf32>
    %253 = arith.addf %250, %252 : vector<8x32xf32>
    %cst_136 = arith.constant 0.000000e+00 : f32
    %254 = vector.broadcast %cst_136 : f32 to vector<8x32xf32>
    %255 = arith.maximumf %253, %254 : vector<8x32xf32>
    %c0_137 = arith.constant 0 : index
    %c0_138 = arith.constant 0 : index
    %256 = vector.load %arg32[%c0_137, %c0_138] : memref<8x32xf32, #tpu.memory_space<vmem>>, vector<8x32xf32>
    tpu.vector_store %arg32[%c0_137, %c0_138], %255 {strides = array<i32>} : memref<8x32xf32, #tpu.memory_space<vmem>>, vector<8x32xf32>,
    %257 = arith.subf %255, %3 : vector<8x32xf32>
    %c0_139 = arith.constant 0 : index
    %c2_140 = arith.constant 2 : index
    %c0_141 = arith.constant 0 : index
    %258 = vector.load %arg35[%c0_139, %c2_140, %c0_141] : memref<1x8x32xf32, #tpu.memory_space<vmem>>, vector<1x1x32xf32>
    %259 = vector.shape_cast %258 : vector<1x1x32xf32> to vector<1x32xf32>
    %260 = arith.mulf %257, %257 : vector<8x32xf32>
    %cst_142 = arith.constant dense<0.000000e+00> : vector<32xf32>
    %261 = vector.multi_reduction <add>, %260, %cst_142 [0] : vector<8x32xf32> to vector<32xf32>
    %262 = vector.shape_cast %261 : vector<32xf32> to vector<1x32xf32>
    %263 = arith.addf %259, %262 : vector<1x32xf32>
    %c0_143 = arith.constant 0 : index
    %c2_144 = arith.constant 2 : index
    %c0_145 = arith.constant 0 : index
    %264 = vector.load %arg35[%c0_143, %c2_144, %c0_145] : memref<1x8x32xf32, #tpu.memory_space<vmem>>, vector<1x1x32xf32>
    %265 = vector.shape_cast %264 : vector<1x1x32xf32> to vector<1x32xf32>
    %266 = vector.shape_cast %263 : vector<1x32xf32> to vector<1x1x32xf32>
    tpu.vector_store %arg35[%c0_143, %c2_144, %c0_145], %266 {strides = array<i32>} : memref<1x8x32xf32, #tpu.memory_space<vmem>>, vector<1x1x32xf32>,
    %c0_146 = arith.constant 0 : index
    %c0_147 = arith.constant 0 : index
    %267 = vector.load %arg24[%c0_146, %c0_147] : memref<16x32xbf16, #tpu.memory_space<vmem>>, vector<16x32xbf16>
    %cst_148 = arith.constant dense<0.000000e+00> : vector<8x32xf32>
    %268 = tpu.matmul %126, %267, %cst_148 {dimension_numbers = #tpu.dot_dimension_numbers<[1], [0], [0], [1], [0, 0, 1, 1], [], []>} : vector<8x16xbf16>, vector<16x32xbf16>, vector<8x32xf32> -> vector<8x32xf32>
    %269 = arith.truncf %207 : vector<8x32xf32> to vector<8x32xbf16>
    %c0_149 = arith.constant 0 : index
    %c0_150 = arith.constant 0 : index
    %270 = vector.load %arg25[%c0_149, %c0_150] : memref<32x32xbf16, #tpu.memory_space<vmem>>, vector<32x32xbf16>
    %cst_151 = arith.constant dense<0.000000e+00> : vector<8x32xf32>
    %271 = tpu.matmul %269, %270, %cst_151 {dimension_numbers = #tpu.dot_dimension_numbers<[1], [0], [0], [1], [0, 0, 1, 1], [], []>} : vector<8x32xbf16>, vector<32x32xbf16>, vector<8x32xf32> -> vector<8x32xf32>
    %272 = arith.addf %268, %271 : vector<8x32xf32>
    %c0_152 = arith.constant 0 : index
    %c0_153 = arith.constant 0 : index
    %273 = vector.load %arg26[%c0_152, %c0_153] : memref<3x32xf32, #tpu.memory_space<vmem>>, vector<1x32xf32>
    %274 = vector.broadcast %273 : vector<1x32xf32> to vector<8x32xf32>
    %275 = arith.addf %272, %274 : vector<8x32xf32>
    %cst_154 = arith.constant dense<0.000000e+00> : vector<8xf32>
    %276 = vector.multi_reduction <add>, %275, %cst_154 [1] : vector<8x32xf32> to vector<8xf32>
    %277 = vector.shape_cast %276 : vector<8xf32> to vector<8x1xf32>
    %cst_155 = arith.constant 3.200000e+01 : f32
    %278 = vector.broadcast %cst_155 : f32 to vector<8x1xf32>
    %279 = arith.divf %277, %278 : vector<8x1xf32>
    %280 = arith.mulf %275, %275 : vector<8x32xf32>
    %cst_156 = arith.constant dense<0.000000e+00> : vector<8xf32>
    %281 = vector.multi_reduction <add>, %280, %cst_156 [1] : vector<8x32xf32> to vector<8xf32>
    %282 = vector.shape_cast %281 : vector<8xf32> to vector<8x1xf32>
    %cst_157 = arith.constant 3.200000e+01 : f32
    %283 = vector.broadcast %cst_157 : f32 to vector<8x1xf32>
    %284 = arith.divf %282, %283 : vector<8x1xf32>
    %285 = arith.mulf %279, %279 : vector<8x1xf32>
    %286 = arith.subf %284, %285 : vector<8x1xf32>
    %cst_158 = arith.constant 0.000000e+00 : f32
    %287 = vector.broadcast %cst_158 : f32 to vector<8x1xf32>
    %288 = arith.maximumf %286, %287 : vector<8x1xf32>
    %289 = vector.broadcast %279 : vector<8x1xf32> to vector<8x32xf32>
    %290 = arith.subf %275, %289 : vector<8x32xf32>
    %cst_159 = arith.constant 9.99999974E-6 : f32
    %291 = vector.broadcast %cst_159 : f32 to vector<8x1xf32>
    %292 = arith.addf %288, %291 : vector<8x1xf32>
    %293 = math.rsqrt %292 : vector<8x1xf32>
    %294 = vector.broadcast %293 : vector<8x1xf32> to vector<8x32xf32>
    %295 = arith.mulf %290, %294 : vector<8x32xf32>
    %c1_160 = arith.constant 1 : index
    %c0_161 = arith.constant 0 : index
    %296 = vector.load %arg26[%c1_160, %c0_161] : memref<3x32xf32, #tpu.memory_space<vmem>>, vector<1x32xf32>
    %297 = vector.broadcast %296 : vector<1x32xf32> to vector<8x32xf32>
    %298 = arith.mulf %295, %297 : vector<8x32xf32>
    %c2_162 = arith.constant 2 : index
    %c0_163 = arith.constant 0 : index
    %299 = vector.load %arg26[%c2_162, %c0_163] : memref<3x32xf32, #tpu.memory_space<vmem>>, vector<1x32xf32>
    %300 = vector.broadcast %299 : vector<1x32xf32> to vector<8x32xf32>
    %301 = arith.addf %298, %300 : vector<8x32xf32>
    %cst_164 = arith.constant 0.000000e+00 : f32
    %302 = vector.broadcast %cst_164 : f32 to vector<8x32xf32>
    %303 = arith.maximumf %301, %302 : vector<8x32xf32>
    %c0_165 = arith.constant 0 : index
    %c0_166 = arith.constant 0 : index
    %304 = vector.load %arg33[%c0_165, %c0_166] : memref<8x32xf32, #tpu.memory_space<vmem>>, vector<8x32xf32>
    tpu.vector_store %arg33[%c0_165, %c0_166], %303 {strides = array<i32>} : memref<8x32xf32, #tpu.memory_space<vmem>>, vector<8x32xf32>,
    %305 = arith.subf %303, %4 : vector<8x32xf32>
    %c0_167 = arith.constant 0 : index
    %c3 = arith.constant 3 : index
    %c0_168 = arith.constant 0 : index
    %306 = vector.load %arg35[%c0_167, %c3, %c0_168] : memref<1x8x32xf32, #tpu.memory_space<vmem>>, vector<1x1x32xf32>
    %307 = vector.shape_cast %306 : vector<1x1x32xf32> to vector<1x32xf32>
    %308 = arith.mulf %305, %305 : vector<8x32xf32>
    %cst_169 = arith.constant dense<0.000000e+00> : vector<32xf32>
    %309 = vector.multi_reduction <add>, %308, %cst_169 [0] : vector<8x32xf32> to vector<32xf32>
    %310 = vector.shape_cast %309 : vector<32xf32> to vector<1x32xf32>
    %311 = arith.addf %307, %310 : vector<1x32xf32>
    %c0_170 = arith.constant 0 : index
    %c3_171 = arith.constant 3 : index
    %c0_172 = arith.constant 0 : index
    %312 = vector.load %arg35[%c0_170, %c3_171, %c0_172] : memref<1x8x32xf32, #tpu.memory_space<vmem>>, vector<1x1x32xf32>
    %313 = vector.shape_cast %312 : vector<1x1x32xf32> to vector<1x32xf32>
    %314 = vector.shape_cast %311 : vector<1x32xf32> to vector<1x1x32xf32>
    tpu.vector_store %arg35[%c0_170, %c3_171, %c0_172], %314 {strides = array<i32>} : memref<1x8x32xf32, #tpu.memory_space<vmem>>, vector<1x1x32xf32>,
    %315 = arith.truncf %3 : vector<8x32xf32> to vector<8x32xbf16>
    %316 = arith.truncf %4 : vector<8x32xf32> to vector<8x32xbf16>
    %c0_173 = arith.constant 0 : index
    %c0_174 = arith.constant 0 : index
    %317 = vector.load %arg19[%c0_173, %c0_174] : memref<32x32xbf16, #tpu.memory_space<vmem>>, vector<32x32xbf16>
    %cst_175 = arith.constant dense<0.000000e+00> : vector<8x32xf32>
    %318 = tpu.matmul %316, %317, %cst_175 {dimension_numbers = #tpu.dot_dimension_numbers<[1], [0], [0], [1], [0, 0, 1, 1], [], []>} : vector<8x32xbf16>, vector<32x32xbf16>, vector<8x32xf32> -> vector<8x32xf32>
    %c0_176 = arith.constant 0 : index
    %c0_177 = arith.constant 0 : index
    %319 = vector.load %arg20[%c0_176, %c0_177] : memref<3x32xf32, #tpu.memory_space<vmem>>, vector<1x32xf32>
    %320 = vector.broadcast %319 : vector<1x32xf32> to vector<8x32xf32>
    %321 = arith.addf %318, %320 : vector<8x32xf32>
    %cst_178 = arith.constant dense<0.000000e+00> : vector<8xf32>
    %322 = vector.multi_reduction <add>, %321, %cst_178 [1] : vector<8x32xf32> to vector<8xf32>
    %323 = vector.shape_cast %322 : vector<8xf32> to vector<8x1xf32>
    %cst_179 = arith.constant 3.200000e+01 : f32
    %324 = vector.broadcast %cst_179 : f32 to vector<8x1xf32>
    %325 = arith.divf %323, %324 : vector<8x1xf32>
    %326 = arith.mulf %321, %321 : vector<8x32xf32>
    %cst_180 = arith.constant dense<0.000000e+00> : vector<8xf32>
    %327 = vector.multi_reduction <add>, %326, %cst_180 [1] : vector<8x32xf32> to vector<8xf32>
    %328 = vector.shape_cast %327 : vector<8xf32> to vector<8x1xf32>
    %cst_181 = arith.constant 3.200000e+01 : f32
    %329 = vector.broadcast %cst_181 : f32 to vector<8x1xf32>
    %330 = arith.divf %328, %329 : vector<8x1xf32>
    %331 = arith.mulf %325, %325 : vector<8x1xf32>
    %332 = arith.subf %330, %331 : vector<8x1xf32>
    %cst_182 = arith.constant 0.000000e+00 : f32
    %333 = vector.broadcast %cst_182 : f32 to vector<8x1xf32>
    %334 = arith.maximumf %332, %333 : vector<8x1xf32>
    %335 = vector.broadcast %325 : vector<8x1xf32> to vector<8x32xf32>
    %336 = arith.subf %321, %335 : vector<8x32xf32>
    %cst_183 = arith.constant 9.99999974E-6 : f32
    %337 = vector.broadcast %cst_183 : f32 to vector<8x1xf32>
    %338 = arith.addf %334, %337 : vector<8x1xf32>
    %339 = math.rsqrt %338 : vector<8x1xf32>
    %340 = vector.broadcast %339 : vector<8x1xf32> to vector<8x32xf32>
    %341 = arith.mulf %336, %340 : vector<8x32xf32>
    %c1_184 = arith.constant 1 : index
    %c0_185 = arith.constant 0 : index
    %342 = vector.load %arg20[%c1_184, %c0_185] : memref<3x32xf32, #tpu.memory_space<vmem>>, vector<1x32xf32>
    %343 = vector.broadcast %342 : vector<1x32xf32> to vector<8x32xf32>
    %344 = arith.mulf %341, %343 : vector<8x32xf32>
    %c2_186 = arith.constant 2 : index
    %c0_187 = arith.constant 0 : index
    %345 = vector.load %arg20[%c2_186, %c0_187] : memref<3x32xf32, #tpu.memory_space<vmem>>, vector<1x32xf32>
    %346 = vector.broadcast %345 : vector<1x32xf32> to vector<8x32xf32>
    %347 = arith.addf %344, %346 : vector<8x32xf32>
    %cst_188 = arith.constant 0.000000e+00 : f32
    %348 = vector.broadcast %cst_188 : f32 to vector<8x32xf32>
    %349 = arith.maximumf %347, %348 : vector<8x32xf32>
    %350 = arith.truncf %349 : vector<8x32xf32> to vector<8x32xbf16>
    %c0_189 = arith.constant 0 : index
    %c0_190 = arith.constant 0 : index
    %351 = vector.load %arg25[%c0_189, %c0_190] : memref<32x32xbf16, #tpu.memory_space<vmem>>, vector<32x32xbf16>
    %cst_191 = arith.constant dense<0.000000e+00> : vector<8x32xf32>
    %352 = tpu.matmul %350, %351, %cst_191 {dimension_numbers = #tpu.dot_dimension_numbers<[1], [0], [0], [1], [0, 0, 1, 1], [], []>} : vector<8x32xbf16>, vector<32x32xbf16>, vector<8x32xf32> -> vector<8x32xf32>
    %c0_192 = arith.constant 0 : index
    %c0_193 = arith.constant 0 : index
    %353 = vector.load %arg14[%c0_192, %c0_193] : memref<32x16xbf16, #tpu.memory_space<vmem>>, vector<32x16xbf16>
    %cst_194 = arith.constant dense<0.000000e+00> : vector<8x16xf32>
    %354 = tpu.matmul %315, %353, %cst_194 {dimension_numbers = #tpu.dot_dimension_numbers<[1], [0], [0], [1], [0, 0, 1, 1], [], []>} : vector<8x32xbf16>, vector<32x16xbf16>, vector<8x16xf32> -> vector<8x16xf32>
    %c0_195 = arith.constant 0 : index
    %c0_196 = arith.constant 0 : index
    %355 = vector.load %arg16[%c0_195, %c0_196] : memref<3x16xf32, #tpu.memory_space<vmem>>, vector<1x16xf32>
    %356 = vector.broadcast %355 : vector<1x16xf32> to vector<8x16xf32>
    %357 = arith.addf %354, %356 : vector<8x16xf32>
    %cst_197 = arith.constant dense<0.000000e+00> : vector<8xf32>
    %358 = vector.multi_reduction <add>, %357, %cst_197 [1] : vector<8x16xf32> to vector<8xf32>
    %359 = vector.shape_cast %358 : vector<8xf32> to vector<8x1xf32>
    %cst_198 = arith.constant 1.600000e+01 : f32
    %360 = vector.broadcast %cst_198 : f32 to vector<8x1xf32>
    %361 = arith.divf %359, %360 : vector<8x1xf32>
    %362 = arith.mulf %357, %357 : vector<8x16xf32>
    %cst_199 = arith.constant dense<0.000000e+00> : vector<8xf32>
    %363 = vector.multi_reduction <add>, %362, %cst_199 [1] : vector<8x16xf32> to vector<8xf32>
    %364 = vector.shape_cast %363 : vector<8xf32> to vector<8x1xf32>
    %cst_200 = arith.constant 1.600000e+01 : f32
    %365 = vector.broadcast %cst_200 : f32 to vector<8x1xf32>
    %366 = arith.divf %364, %365 : vector<8x1xf32>
    %367 = arith.mulf %361, %361 : vector<8x1xf32>
    %368 = arith.subf %366, %367 : vector<8x1xf32>
    %cst_201 = arith.constant 0.000000e+00 : f32
    %369 = vector.broadcast %cst_201 : f32 to vector<8x1xf32>
    %370 = arith.maximumf %368, %369 : vector<8x1xf32>
    %371 = vector.broadcast %361 : vector<8x1xf32> to vector<8x16xf32>
    %372 = arith.subf %357, %371 : vector<8x16xf32>
    %cst_202 = arith.constant 9.99999974E-6 : f32
    %373 = vector.broadcast %cst_202 : f32 to vector<8x1xf32>
    %374 = arith.addf %370, %373 : vector<8x1xf32>
    %375 = math.rsqrt %374 : vector<8x1xf32>
    %376 = vector.broadcast %375 : vector<8x1xf32> to vector<8x16xf32>
    %377 = arith.mulf %372, %376 : vector<8x16xf32>
    %c1_203 = arith.constant 1 : index
    %c0_204 = arith.constant 0 : index
    %378 = vector.load %arg16[%c1_203, %c0_204] : memref<3x16xf32, #tpu.memory_space<vmem>>, vector<1x16xf32>
    %379 = vector.broadcast %378 : vector<1x16xf32> to vector<8x16xf32>
    %380 = arith.mulf %377, %379 : vector<8x16xf32>
    %c2_205 = arith.constant 2 : index
    %c0_206 = arith.constant 0 : index
    %381 = vector.load %arg16[%c2_205, %c0_206] : memref<3x16xf32, #tpu.memory_space<vmem>>, vector<1x16xf32>
    %382 = vector.broadcast %381 : vector<1x16xf32> to vector<8x16xf32>
    %383 = arith.addf %380, %382 : vector<8x16xf32>
    %cst_207 = arith.constant 0.000000e+00 : f32
    %384 = vector.broadcast %cst_207 : f32 to vector<8x16xf32>
    %385 = arith.maximumf %383, %384 : vector<8x16xf32>
    %386 = arith.truncf %385 : vector<8x16xf32> to vector<8x16xbf16>
    %c0_208 = arith.constant 0 : index
    %c0_209 = arith.constant 0 : index
    %387 = vector.load %arg24[%c0_208, %c0_209] : memref<16x32xbf16, #tpu.memory_space<vmem>>, vector<16x32xbf16>
    %cst_210 = arith.constant dense<0.000000e+00> : vector<8x32xf32>
    %388 = tpu.matmul %386, %387, %cst_210 {dimension_numbers = #tpu.dot_dimension_numbers<[1], [0], [0], [1], [0, 0, 1, 1], [], []>} : vector<8x16xbf16>, vector<16x32xbf16>, vector<8x32xf32> -> vector<8x32xf32>
    %389 = arith.addf %388, %352 : vector<8x32xf32>
    %c0_211 = arith.constant 0 : index
    %c0_212 = arith.constant 0 : index
    %390 = vector.load %arg26[%c0_211, %c0_212] : memref<3x32xf32, #tpu.memory_space<vmem>>, vector<1x32xf32>
    %391 = vector.broadcast %390 : vector<1x32xf32> to vector<8x32xf32>
    %392 = arith.addf %389, %391 : vector<8x32xf32>
    %cst_213 = arith.constant dense<0.000000e+00> : vector<8xf32>
    %393 = vector.multi_reduction <add>, %392, %cst_213 [1] : vector<8x32xf32> to vector<8xf32>
    %394 = vector.shape_cast %393 : vector<8xf32> to vector<8x1xf32>
    %cst_214 = arith.constant 3.200000e+01 : f32
    %395 = vector.broadcast %cst_214 : f32 to vector<8x1xf32>
    %396 = arith.divf %394, %395 : vector<8x1xf32>
    %397 = arith.mulf %392, %392 : vector<8x32xf32>
    %cst_215 = arith.constant dense<0.000000e+00> : vector<8xf32>
    %398 = vector.multi_reduction <add>, %397, %cst_215 [1] : vector<8x32xf32> to vector<8xf32>
    %399 = vector.shape_cast %398 : vector<8xf32> to vector<8x1xf32>
    %cst_216 = arith.constant 3.200000e+01 : f32
    %400 = vector.broadcast %cst_216 : f32 to vector<8x1xf32>
    %401 = arith.divf %399, %400 : vector<8x1xf32>
    %402 = arith.mulf %396, %396 : vector<8x1xf32>
    %403 = arith.subf %401, %402 : vector<8x1xf32>
    %cst_217 = arith.constant 0.000000e+00 : f32
    %404 = vector.broadcast %cst_217 : f32 to vector<8x1xf32>
    %405 = arith.maximumf %403, %404 : vector<8x1xf32>
    %406 = vector.broadcast %396 : vector<8x1xf32> to vector<8x32xf32>
    %407 = arith.subf %392, %406 : vector<8x32xf32>
    %cst_218 = arith.constant 9.99999974E-6 : f32
    %408 = vector.broadcast %cst_218 : f32 to vector<8x1xf32>
    %409 = arith.addf %405, %408 : vector<8x1xf32>
    %410 = math.rsqrt %409 : vector<8x1xf32>
    %411 = vector.broadcast %410 : vector<8x1xf32> to vector<8x32xf32>
    %412 = arith.mulf %407, %411 : vector<8x32xf32>
    %c1_219 = arith.constant 1 : index
    %c0_220 = arith.constant 0 : index
    %413 = vector.load %arg26[%c1_219, %c0_220] : memref<3x32xf32, #tpu.memory_space<vmem>>, vector<1x32xf32>
    %414 = vector.broadcast %413 : vector<1x32xf32> to vector<8x32xf32>
    %415 = arith.mulf %412, %414 : vector<8x32xf32>
    %c2_221 = arith.constant 2 : index
    %c0_222 = arith.constant 0 : index
    %416 = vector.load %arg26[%c2_221, %c0_222] : memref<3x32xf32, #tpu.memory_space<vmem>>, vector<1x32xf32>
    %417 = vector.broadcast %416 : vector<1x32xf32> to vector<8x32xf32>
    %418 = arith.addf %415, %417 : vector<8x32xf32>
    %cst_223 = arith.constant 0.000000e+00 : f32
    %419 = vector.broadcast %cst_223 : f32 to vector<8x32xf32>
    %420 = arith.maximumf %418, %419 : vector<8x32xf32>
    %c0_224 = arith.constant 0 : index
    %c0_225 = arith.constant 0 : index
    %c0_226 = arith.constant 0 : index
    %421 = vector.load %arg35[%c0_224, %c0_225, %c0_226] : memref<1x8x32xf32, #tpu.memory_space<vmem>>, vector<1x1x32xf32>
    %422 = vector.shape_cast %421 : vector<1x1x32xf32> to vector<1x32xf32>
    %cst_227 = arith.constant dense<0.000000e+00> : vector<32xf32>
    %423 = vector.multi_reduction <add>, %420, %cst_227 [0] : vector<8x32xf32> to vector<32xf32>
    %424 = vector.shape_cast %423 : vector<32xf32> to vector<1x32xf32>
    %425 = arith.addf %422, %424 : vector<1x32xf32>
    %c0_228 = arith.constant 0 : index
    %c0_229 = arith.constant 0 : index
    %c0_230 = arith.constant 0 : index
    %426 = vector.load %arg35[%c0_228, %c0_229, %c0_230] : memref<1x8x32xf32, #tpu.memory_space<vmem>>, vector<1x1x32xf32>
    %427 = vector.shape_cast %426 : vector<1x1x32xf32> to vector<1x32xf32>
    %428 = vector.shape_cast %425 : vector<1x32xf32> to vector<1x1x32xf32>
    tpu.vector_store %arg35[%c0_228, %c0_229, %c0_230], %428 {strides = array<i32>} : memref<1x8x32xf32, #tpu.memory_space<vmem>>, vector<1x1x32xf32>,
    %c0_231 = arith.constant 0 : index
    %c0_232 = arith.constant 0 : index
    %429 = vector.load %arg15[%c0_231, %c0_232] : memref<32x16xbf16, #tpu.memory_space<vmem>>, vector<32x16xbf16>
    %cst_233 = arith.constant dense<0.000000e+00> : vector<8x16xf32>
    %430 = tpu.matmul %316, %429, %cst_233 {dimension_numbers = #tpu.dot_dimension_numbers<[1], [0], [0], [1], [0, 0, 1, 1], [], []>} : vector<8x32xbf16>, vector<32x16xbf16>, vector<8x16xf32> -> vector<8x16xf32>
    %431 = arith.addf %354, %430 : vector<8x16xf32>
    %c0_234 = arith.constant 0 : index
    %c0_235 = arith.constant 0 : index
    %432 = vector.load %arg16[%c0_234, %c0_235] : memref<3x16xf32, #tpu.memory_space<vmem>>, vector<1x16xf32>
    %433 = vector.broadcast %432 : vector<1x16xf32> to vector<8x16xf32>
    %434 = arith.addf %431, %433 : vector<8x16xf32>
    %cst_236 = arith.constant dense<0.000000e+00> : vector<8xf32>
    %435 = vector.multi_reduction <add>, %434, %cst_236 [1] : vector<8x16xf32> to vector<8xf32>
    %436 = vector.shape_cast %435 : vector<8xf32> to vector<8x1xf32>
    %cst_237 = arith.constant 1.600000e+01 : f32
    %437 = vector.broadcast %cst_237 : f32 to vector<8x1xf32>
    %438 = arith.divf %436, %437 : vector<8x1xf32>
    %439 = arith.mulf %434, %434 : vector<8x16xf32>
    %cst_238 = arith.constant dense<0.000000e+00> : vector<8xf32>
    %440 = vector.multi_reduction <add>, %439, %cst_238 [1] : vector<8x16xf32> to vector<8xf32>
    %441 = vector.shape_cast %440 : vector<8xf32> to vector<8x1xf32>
    %cst_239 = arith.constant 1.600000e+01 : f32
    %442 = vector.broadcast %cst_239 : f32 to vector<8x1xf32>
    %443 = arith.divf %441, %442 : vector<8x1xf32>
    %444 = arith.mulf %438, %438 : vector<8x1xf32>
    %445 = arith.subf %443, %444 : vector<8x1xf32>
    %cst_240 = arith.constant 0.000000e+00 : f32
    %446 = vector.broadcast %cst_240 : f32 to vector<8x1xf32>
    %447 = arith.maximumf %445, %446 : vector<8x1xf32>
    %448 = vector.broadcast %438 : vector<8x1xf32> to vector<8x16xf32>
    %449 = arith.subf %434, %448 : vector<8x16xf32>
    %cst_241 = arith.constant 9.99999974E-6 : f32
    %450 = vector.broadcast %cst_241 : f32 to vector<8x1xf32>
    %451 = arith.addf %447, %450 : vector<8x1xf32>
    %452 = math.rsqrt %451 : vector<8x1xf32>
    %453 = vector.broadcast %452 : vector<8x1xf32> to vector<8x16xf32>
    %454 = arith.mulf %449, %453 : vector<8x16xf32>
    %c1_242 = arith.constant 1 : index
    %c0_243 = arith.constant 0 : index
    %455 = vector.load %arg16[%c1_242, %c0_243] : memref<3x16xf32, #tpu.memory_space<vmem>>, vector<1x16xf32>
    %456 = vector.broadcast %455 : vector<1x16xf32> to vector<8x16xf32>
    %457 = arith.mulf %454, %456 : vector<8x16xf32>
    %c2_244 = arith.constant 2 : index
    %c0_245 = arith.constant 0 : index
    %458 = vector.load %arg16[%c2_244, %c0_245] : memref<3x16xf32, #tpu.memory_space<vmem>>, vector<1x16xf32>
    %459 = vector.broadcast %458 : vector<1x16xf32> to vector<8x16xf32>
    %460 = arith.addf %457, %459 : vector<8x16xf32>
    %cst_246 = arith.constant 0.000000e+00 : f32
    %461 = vector.broadcast %cst_246 : f32 to vector<8x16xf32>
    %462 = arith.maximumf %460, %461 : vector<8x16xf32>
    %463 = arith.truncf %462 : vector<8x16xf32> to vector<8x16xbf16>
    %c0_247 = arith.constant 0 : index
    %c0_248 = arith.constant 0 : index
    %464 = vector.load %arg24[%c0_247, %c0_248] : memref<16x32xbf16, #tpu.memory_space<vmem>>, vector<16x32xbf16>
    %cst_249 = arith.constant dense<0.000000e+00> : vector<8x32xf32>
    %465 = tpu.matmul %463, %464, %cst_249 {dimension_numbers = #tpu.dot_dimension_numbers<[1], [0], [0], [1], [0, 0, 1, 1], [], []>} : vector<8x16xbf16>, vector<16x32xbf16>, vector<8x32xf32> -> vector<8x32xf32>
    %466 = arith.addf %465, %352 : vector<8x32xf32>
    %c0_250 = arith.constant 0 : index
    %c0_251 = arith.constant 0 : index
    %467 = vector.load %arg26[%c0_250, %c0_251] : memref<3x32xf32, #tpu.memory_space<vmem>>, vector<1x32xf32>
    %468 = vector.broadcast %467 : vector<1x32xf32> to vector<8x32xf32>
    %469 = arith.addf %466, %468 : vector<8x32xf32>
    %cst_252 = arith.constant dense<0.000000e+00> : vector<8xf32>
    %470 = vector.multi_reduction <add>, %469, %cst_252 [1] : vector<8x32xf32> to vector<8xf32>
    %471 = vector.shape_cast %470 : vector<8xf32> to vector<8x1xf32>
    %cst_253 = arith.constant 3.200000e+01 : f32
    %472 = vector.broadcast %cst_253 : f32 to vector<8x1xf32>
    %473 = arith.divf %471, %472 : vector<8x1xf32>
    %474 = arith.mulf %469, %469 : vector<8x32xf32>
    %cst_254 = arith.constant dense<0.000000e+00> : vector<8xf32>
    %475 = vector.multi_reduction <add>, %474, %cst_254 [1] : vector<8x32xf32> to vector<8xf32>
    %476 = vector.shape_cast %475 : vector<8xf32> to vector<8x1xf32>
    %cst_255 = arith.constant 3.200000e+01 : f32
    %477 = vector.broadcast %cst_255 : f32 to vector<8x1xf32>
    %478 = arith.divf %476, %477 : vector<8x1xf32>
    %479 = arith.mulf %473, %473 : vector<8x1xf32>
    %480 = arith.subf %478, %479 : vector<8x1xf32>
    %cst_256 = arith.constant 0.000000e+00 : f32
    %481 = vector.broadcast %cst_256 : f32 to vector<8x1xf32>
    %482 = arith.maximumf %480, %481 : vector<8x1xf32>
    %483 = vector.broadcast %473 : vector<8x1xf32> to vector<8x32xf32>
    %484 = arith.subf %469, %483 : vector<8x32xf32>
    %cst_257 = arith.constant 9.99999974E-6 : f32
    %485 = vector.broadcast %cst_257 : f32 to vector<8x1xf32>
    %486 = arith.addf %482, %485 : vector<8x1xf32>
    %487 = math.rsqrt %486 : vector<8x1xf32>
    %488 = vector.broadcast %487 : vector<8x1xf32> to vector<8x32xf32>
    %489 = arith.mulf %484, %488 : vector<8x32xf32>
    %c1_258 = arith.constant 1 : index
    %c0_259 = arith.constant 0 : index
    %490 = vector.load %arg26[%c1_258, %c0_259] : memref<3x32xf32, #tpu.memory_space<vmem>>, vector<1x32xf32>
    %491 = vector.broadcast %490 : vector<1x32xf32> to vector<8x32xf32>
    %492 = arith.mulf %489, %491 : vector<8x32xf32>
    %c2_260 = arith.constant 2 : index
    %c0_261 = arith.constant 0 : index
    %493 = vector.load %arg26[%c2_260, %c0_261] : memref<3x32xf32, #tpu.memory_space<vmem>>, vector<1x32xf32>
    %494 = vector.broadcast %493 : vector<1x32xf32> to vector<8x32xf32>
    %495 = arith.addf %492, %494 : vector<8x32xf32>
    %cst_262 = arith.constant 0.000000e+00 : f32
    %496 = vector.broadcast %cst_262 : f32 to vector<8x32xf32>
    %497 = arith.maximumf %495, %496 : vector<8x32xf32>
    %c0_263 = arith.constant 0 : index
    %c1_264 = arith.constant 1 : index
    %c0_265 = arith.constant 0 : index
    %498 = vector.load %arg35[%c0_263, %c1_264, %c0_265] : memref<1x8x32xf32, #tpu.memory_space<vmem>>, vector<1x1x32xf32>
    %499 = vector.shape_cast %498 : vector<1x1x32xf32> to vector<1x32xf32>
    %cst_266 = arith.constant dense<0.000000e+00> : vector<32xf32>
    %500 = vector.multi_reduction <add>, %497, %cst_266 [0] : vector<8x32xf32> to vector<32xf32>
    %501 = vector.shape_cast %500 : vector<32xf32> to vector<1x32xf32>
    %502 = arith.addf %499, %501 : vector<1x32xf32>
    %c0_267 = arith.constant 0 : index
    %c1_268 = arith.constant 1 : index
    %c0_269 = arith.constant 0 : index
    %503 = vector.load %arg35[%c0_267, %c1_268, %c0_269] : memref<1x8x32xf32, #tpu.memory_space<vmem>>, vector<1x1x32xf32>
    %504 = vector.shape_cast %503 : vector<1x1x32xf32> to vector<1x32xf32>
    %505 = vector.shape_cast %502 : vector<1x32xf32> to vector<1x1x32xf32>
    tpu.vector_store %arg35[%c0_267, %c1_268, %c0_269], %505 {strides = array<i32>} : memref<1x8x32xf32, #tpu.memory_space<vmem>>, vector<1x1x32xf32>,
    return
  }
  func.func @transform_0(%arg0: i32, %arg1: i32) -> (i32, i32) {
    %c1_i32 = arith.constant 1 : i32
    %0 = arith.muli %arg0, %c1_i32 : i32
    %1 = arith.addi %0, %arg1 : i32
    %c0_i32 = arith.constant 0 : i32
    %c0_i32_0 = arith.constant 0 : i32
    return %1, %c0_i32 : i32, i32
  }
  func.func @transform_1(%arg0: i32, %arg1: i32) -> (i32, i32) {
    %c1_i32 = arith.constant 1 : i32
    %0 = arith.muli %arg0, %c1_i32 : i32
    %1 = arith.addi %0, %arg1 : i32
    %c0_i32 = arith.constant 0 : i32
    %c0_i32_0 = arith.constant 0 : i32
    return %1, %c0_i32 : i32, i32
  }
  func.func @transform_2(%arg0: i32, %arg1: i32) -> (i32, i32) {
    %c1_i32 = arith.constant 1 : i32
    %0 = arith.muli %arg0, %c1_i32 : i32
    %1 = arith.addi %0, %arg1 : i32
    %c0_i32 = arith.constant 0 : i32
    %c0_i32_0 = arith.constant 0 : i32
    return %1, %c0_i32 : i32, i32
  }
  func.func @transform_3(%arg0: i32, %arg1: i32) -> (i32, i32) {
    %c1_i32 = arith.constant 1 : i32
    %0 = arith.muli %arg0, %c1_i32 : i32
    %1 = arith.addi %0, %arg1 : i32
    %c0_i32 = arith.constant 0 : i32
    %c0_i32_0 = arith.constant 0 : i32
    return %1, %c0_i32 : i32, i32
  }
  func.func @transform_4(%arg0: i32, %arg1: i32) -> (i32, i32) {
    %c0_i32 = arith.constant 0 : i32
    %c0_i32_0 = arith.constant 0 : i32
    %c0_i32_1 = arith.constant 0 : i32
    return %c0_i32, %c0_i32_0 : i32, i32
  }
  func.func @transform_5(%arg0: i32, %arg1: i32) -> (i32, i32) {
    %c0_i32 = arith.constant 0 : i32
    %c0_i32_0 = arith.constant 0 : i32
    %c0_i32_1 = arith.constant 0 : i32
    return %c0_i32, %c0_i32_0 : i32, i32
  }
  func.func @transform_6(%arg0: i32, %arg1: i32) -> (i32, i32) {
    %c0_i32 = arith.constant 0 : i32
    %c0_i32_0 = arith.constant 0 : i32
    %c0_i32_1 = arith.constant 0 : i32
    return %c0_i32, %c0_i32_0 : i32, i32
  }
  func.func @transform_7(%arg0: i32, %arg1: i32) -> (i32, i32) {
    %c0_i32 = arith.constant 0 : i32
    %c0_i32_0 = arith.constant 0 : i32
    %c0_i32_1 = arith.constant 0 : i32
    return %c0_i32, %c0_i32_0 : i32, i32
  }
  func.func @transform_8(%arg0: i32, %arg1: i32) -> (i32, i32) {
    %c0_i32 = arith.constant 0 : i32
    %c0_i32_0 = arith.constant 0 : i32
    %c0_i32_1 = arith.constant 0 : i32
    return %c0_i32, %c0_i32_0 : i32, i32
  }
  func.func @transform_9(%arg0: i32, %arg1: i32) -> (i32, i32) {
    %c0_i32 = arith.constant 0 : i32
    %c0_i32_0 = arith.constant 0 : i32
    %c0_i32_1 = arith.constant 0 : i32
    return %c0_i32, %c0_i32_0 : i32, i32
  }
  func.func @transform_10(%arg0: i32, %arg1: i32) -> (i32, i32) {
    %c0_i32 = arith.constant 0 : i32
    %c0_i32_0 = arith.constant 0 : i32
    %c0_i32_1 = arith.constant 0 : i32
    return %c0_i32, %c0_i32_0 : i32, i32
  }
  func.func @transform_11(%arg0: i32, %arg1: i32) -> (i32, i32) {
    %c0_i32 = arith.constant 0 : i32
    %c0_i32_0 = arith.constant 0 : i32
    %c0_i32_1 = arith.constant 0 : i32
    return %c0_i32, %c0_i32_0 : i32, i32
  }
  func.func @transform_12(%arg0: i32, %arg1: i32) -> (i32, i32) {
    %c0_i32 = arith.constant 0 : i32
    %c0_i32_0 = arith.constant 0 : i32
    %c0_i32_1 = arith.constant 0 : i32
    return %c0_i32, %c0_i32_0 : i32, i32
  }
  func.func @transform_13(%arg0: i32, %arg1: i32) -> (i32, i32) {
    %c0_i32 = arith.constant 0 : i32
    %c0_i32_0 = arith.constant 0 : i32
    %c0_i32_1 = arith.constant 0 : i32
    return %c0_i32, %c0_i32_0 : i32, i32
  }
  func.func @transform_14(%arg0: i32, %arg1: i32) -> (i32, i32) {
    %c0_i32 = arith.constant 0 : i32
    %c0_i32_0 = arith.constant 0 : i32
    %c0_i32_1 = arith.constant 0 : i32
    return %c0_i32, %c0_i32_0 : i32, i32
  }
  func.func @transform_15(%arg0: i32, %arg1: i32) -> (i32, i32) {
    %c0_i32 = arith.constant 0 : i32
    %c0_i32_0 = arith.constant 0 : i32
    %c0_i32_1 = arith.constant 0 : i32
    return %c0_i32, %c0_i32_0 : i32, i32
  }
  func.func @transform_16(%arg0: i32, %arg1: i32) -> (i32, i32) {
    %c0_i32 = arith.constant 0 : i32
    %c0_i32_0 = arith.constant 0 : i32
    %c0_i32_1 = arith.constant 0 : i32
    return %c0_i32, %c0_i32_0 : i32, i32
  }
  func.func @transform_17(%arg0: i32, %arg1: i32) -> (i32, i32) {
    %c0_i32 = arith.constant 0 : i32
    %c0_i32_0 = arith.constant 0 : i32
    %c0_i32_1 = arith.constant 0 : i32
    return %c0_i32, %c0_i32_0 : i32, i32
  }
  func.func @transform_18(%arg0: i32, %arg1: i32) -> (i32, i32) {
    %c0_i32 = arith.constant 0 : i32
    %c0_i32_0 = arith.constant 0 : i32
    %c0_i32_1 = arith.constant 0 : i32
    return %c0_i32, %c0_i32_0 : i32, i32
  }
  func.func @transform_19(%arg0: i32, %arg1: i32) -> (i32, i32) {
    %c0_i32 = arith.constant 0 : i32
    %c0_i32_0 = arith.constant 0 : i32
    %c0_i32_1 = arith.constant 0 : i32
    return %c0_i32, %c0_i32_0 : i32, i32
  }
  func.func @transform_20(%arg0: i32, %arg1: i32) -> (i32, i32) {
    %c0_i32 = arith.constant 0 : i32
    %c0_i32_0 = arith.constant 0 : i32
    %c0_i32_1 = arith.constant 0 : i32
    return %c0_i32, %c0_i32_0 : i32, i32
  }
  func.func @transform_21(%arg0: i32, %arg1: i32) -> (i32, i32) {
    %c0_i32 = arith.constant 0 : i32
    %c0_i32_0 = arith.constant 0 : i32
    %c0_i32_1 = arith.constant 0 : i32
    return %c0_i32, %c0_i32_0 : i32, i32
  }
  func.func @transform_22(%arg0: i32, %arg1: i32) -> (i32, i32) {
    %c0_i32 = arith.constant 0 : i32
    %c0_i32_0 = arith.constant 0 : i32
    %c0_i32_1 = arith.constant 0 : i32
    return %c0_i32, %c0_i32_0 : i32, i32
  }
  func.func @transform_23(%arg0: i32, %arg1: i32) -> (i32, i32) {
    %c0_i32 = arith.constant 0 : i32
    %c0_i32_0 = arith.constant 0 : i32
    %c0_i32_1 = arith.constant 0 : i32
    return %c0_i32, %c0_i32_0 : i32, i32
  }
  func.func @transform_24(%arg0: i32, %arg1: i32) -> (i32, i32) {
    %c0_i32 = arith.constant 0 : i32
    %c0_i32_0 = arith.constant 0 : i32
    %c0_i32_1 = arith.constant 0 : i32
    return %c0_i32, %c0_i32_0 : i32, i32
  }
  func.func @transform_25(%arg0: i32, %arg1: i32) -> (i32, i32) {
    %c0_i32 = arith.constant 0 : i32
    %c0_i32_0 = arith.constant 0 : i32
    %c0_i32_1 = arith.constant 0 : i32
    return %c0_i32, %c0_i32_0 : i32, i32
  }
  func.func @transform_26(%arg0: i32, %arg1: i32) -> (i32, i32) {
    %c0_i32 = arith.constant 0 : i32
    %c0_i32_0 = arith.constant 0 : i32
    %c0_i32_1 = arith.constant 0 : i32
    return %c0_i32, %c0_i32_0 : i32, i32
  }
  func.func @transform_27(%arg0: i32, %arg1: i32) -> (i32, i32) {
    %c1_i32 = arith.constant 1 : i32
    %0 = arith.muli %arg0, %c1_i32 : i32
    %1 = arith.addi %0, %arg1 : i32
    %c0_i32 = arith.constant 0 : i32
    %c0_i32_0 = arith.constant 0 : i32
    return %1, %c0_i32 : i32, i32
  }
  func.func @transform_28(%arg0: i32, %arg1: i32) -> (i32, i32) {
    %c1_i32 = arith.constant 1 : i32
    %0 = arith.muli %arg0, %c1_i32 : i32
    %1 = arith.addi %0, %arg1 : i32
    %c0_i32 = arith.constant 0 : i32
    %c0_i32_0 = arith.constant 0 : i32
    return %1, %c0_i32 : i32, i32
  }
  func.func @transform_29(%arg0: i32, %arg1: i32) -> (i32, i32) {
    %c1_i32 = arith.constant 1 : i32
    %0 = arith.muli %arg0, %c1_i32 : i32
    %1 = arith.addi %0, %arg1 : i32
    %c0_i32 = arith.constant 0 : i32
    %c0_i32_0 = arith.constant 0 : i32
    return %1, %c0_i32 : i32, i32
  }
  func.func @transform_30(%arg0: i32, %arg1: i32) -> (i32, i32) {
    %c1_i32 = arith.constant 1 : i32
    %0 = arith.muli %arg0, %c1_i32 : i32
    %1 = arith.addi %0, %arg1 : i32
    %c0_i32 = arith.constant 0 : i32
    %c0_i32_0 = arith.constant 0 : i32
    return %1, %c0_i32 : i32, i32
  }
  func.func @transform_31(%arg0: i32, %arg1: i32) -> (i32, i32) {
    %c1_i32 = arith.constant 1 : i32
    %0 = arith.muli %arg0, %c1_i32 : i32
    %1 = arith.addi %0, %arg1 : i32
    %c0_i32 = arith.constant 0 : i32
    %c0_i32_0 = arith.constant 0 : i32
    return %1, %c0_i32 : i32, i32
  }
  func.func @transform_32(%arg0: i32, %arg1: i32) -> (i32, i32) {
    %c1_i32 = arith.constant 1 : i32
    %0 = arith.muli %arg0, %c1_i32 : i32
    %1 = arith.addi %0, %arg1 : i32
    %c0_i32 = arith.constant 0 : i32
    %c0_i32_0 = arith.constant 0 : i32
    return %1, %c0_i32 : i32, i32
  }
  func.func @transform_33(%arg0: i32, %arg1: i32) -> (i32, i32, i32) {
    %c0_i32 = arith.constant 0 : i32
    %c0_i32_0 = arith.constant 0 : i32
    %c0_i32_1 = arith.constant 0 : i32
    return %arg0, %c0_i32, %c0_i32_0 : i32, i32, i32
  }
}

module attributes {stable_mosaic.version = 11 : i64} {
  func.func @_cmscm_kernel(%arg0: i32, %arg1: i32, %arg2: memref<8x32xf32, #tpu.memory_space<vmem>>, %arg3: memref<8x32xf32, #tpu.memory_space<vmem>>, %arg4: memref<8x32xbf16, #tpu.memory_space<vmem>>, %arg5: memref<8x32xbf16, #tpu.memory_space<vmem>>, %arg6: memref<32x32xbf16, #tpu.memory_space<vmem>>, %arg7: memref<3x32xf32, #tpu.memory_space<vmem>>, %arg8: memref<32x32xbf16, #tpu.memory_space<vmem>>, %arg9: memref<1x32xf32, #tpu.memory_space<vmem>>, %arg10: memref<32x32xbf16, #tpu.memory_space<vmem>>, %arg11: memref<3x32xf32, #tpu.memory_space<vmem>>, %arg12: memref<32x32xbf16, #tpu.memory_space<vmem>>, %arg13: memref<1x32xf32, #tpu.memory_space<vmem>>, %arg14: memref<32x16xbf16, #tpu.memory_space<vmem>>, %arg15: memref<32x16xbf16, #tpu.memory_space<vmem>>, %arg16: memref<3x16xf32, #tpu.memory_space<vmem>>, %arg17: memref<32x32xbf16, #tpu.memory_space<vmem>>, %arg18: memref<3x32xf32, #tpu.memory_space<vmem>>, %arg19: memref<32x32xbf16, #tpu.memory_space<vmem>>, %arg20: memref<3x32xf32, #tpu.memory_space<vmem>>, %arg21: memref<16x32xbf16, #tpu.memory_space<vmem>>, %arg22: memref<32x32xbf16, #tpu.memory_space<vmem>>, %arg23: memref<3x32xf32, #tpu.memory_space<vmem>>, %arg24: memref<16x32xbf16, #tpu.memory_space<vmem>>, %arg25: memref<32x32xbf16, #tpu.memory_space<vmem>>, %arg26: memref<3x32xf32, #tpu.memory_space<vmem>>, %arg27: memref<1x16xf32, #tpu.memory_space<vmem>>, %arg28: memref<1x1xf32, #tpu.memory_space<vmem>>, %arg29: memref<8x16xf32, #tpu.memory_space<vmem>>, %arg30: memref<8x32xf32, #tpu.memory_space<vmem>>, %arg31: memref<8x32xf32, #tpu.memory_space<vmem>>, %arg32: memref<8x32xf32, #tpu.memory_space<vmem>>, %arg33: memref<8x32xf32, #tpu.memory_space<vmem>>, %arg34: memref<8x1xf32, #tpu.memory_space<vmem>>, %arg35: memref<1x8x32xf32, #tpu.memory_space<vmem>>) attributes {dimension_semantics = [#tpu.dimension_semantics<parallel>, #tpu.dimension_semantics<arbitrary>], iteration_bounds = array<i64: 1, 1>, scalar_prefetch = 0 : i64, scratch_operands = 0 : i64, tpu.core_type = #tpu.core_type<tc>, window_params = [{transform_indices = @transform_0, window_bounds = array<i64: 8, 32>}, {transform_indices = @transform_1, window_bounds = array<i64: 8, 32>}, {transform_indices = @transform_2, window_bounds = array<i64: 8, 32>}, {transform_indices = @transform_3, window_bounds = array<i64: 8, 32>}, {pipeline_mode = #tpu.pipeline_mode<synchronous>, transform_indices = @transform_4, window_bounds = array<i64: 32, 32>}, {pipeline_mode = #tpu.pipeline_mode<synchronous>, transform_indices = @transform_5, window_bounds = array<i64: 3, 32>}, {pipeline_mode = #tpu.pipeline_mode<synchronous>, transform_indices = @transform_6, window_bounds = array<i64: 32, 32>}, {pipeline_mode = #tpu.pipeline_mode<synchronous>, transform_indices = @transform_7, window_bounds = array<i64: 1, 32>}, {pipeline_mode = #tpu.pipeline_mode<synchronous>, transform_indices = @transform_8, window_bounds = array<i64: 32, 32>}, {pipeline_mode = #tpu.pipeline_mode<synchronous>, transform_indices = @transform_9, window_bounds = array<i64: 3, 32>}, {pipeline_mode = #tpu.pipeline_mode<synchronous>, transform_indices = @transform_10, window_bounds = array<i64: 32, 32>}, {pipeline_mode = #tpu.pipeline_mode<synchronous>, transform_indices = @transform_11, window_bounds = array<i64: 1, 32>}, {pipeline_mode = #tpu.pipeline_mode<synchronous>, transform_indices = @transform_12, window_bounds = array<i64: 32, 16>}, {pipeline_mode = #tpu.pipeline_mode<synchronous>, transform_indices = @transform_13, window_bounds = array<i64: 32, 16>}, {pipeline_mode = #tpu.pipeline_mode<synchronous>, transform_indices = @transform_14, window_bounds = array<i64: 3, 16>}, {pipeline_mode = #tpu.pipeline_mode<synchronous>, transform_indices = @transform_15, window_bounds = array<i64: 32, 32>}, {pipeline_mode = #tpu.pipeline_mode<synchronous>, transform_indices = @transform_16, window_bounds = array<i64: 3, 32>}, {pipeline_mode = #tpu.pipeline_mode<synchronous>, transform_indices = @transform_17, window_bounds = array<i64: 32, 32>}, {pipeline_mode = #tpu.pipeline_mode<synchronous>, transform_indices = @transform_18, window_bounds = array<i64: 3, 32>}, {pipeline_mode = #tpu.pipeline_mode<synchronous>, transform_indices = @transform_19, window_bounds = array<i64: 16, 32>}, {pipeline_mode = #tpu.pipeline_mode<synchronous>, transform_indices = @transform_20, window_bounds = array<i64: 32, 32>}, {pipeline_mode = #tpu.pipeline_mode<synchronous>, transform_indices = @transform_21, window_bounds = array<i64: 3, 32>}, {pipeline_mode = #tpu.pipeline_mode<synchronous>, transform_indices = @transform_22, window_bounds = array<i64: 16, 32>}, {pipeline_mode = #tpu.pipeline_mode<synchronous>, transform_indices = @transform_23, window_bounds = array<i64: 32, 32>}, {pipeline_mode = #tpu.pipeline_mode<synchronous>, transform_indices = @transform_24, window_bounds = array<i64: 3, 32>}, {pipeline_mode = #tpu.pipeline_mode<synchronous>, transform_indices = @transform_25, window_bounds = array<i64: 1, 16>}, {pipeline_mode = #tpu.pipeline_mode<synchronous>, transform_indices = @transform_26, window_bounds = array<i64: 1, 1>}, {transform_indices = @transform_27, window_bounds = array<i64: 8, 16>}, {transform_indices = @transform_28, window_bounds = array<i64: 8, 32>}, {transform_indices = @transform_29, window_bounds = array<i64: 8, 32>}, {transform_indices = @transform_30, window_bounds = array<i64: 8, 32>}, {transform_indices = @transform_31, window_bounds = array<i64: 8, 32>}, {transform_indices = @transform_32, window_bounds = array<i64: 8, 1>}, {transform_indices = @transform_33, window_bounds = array<i64: 1, 8, 32>}]} {
    %c0_i32 = arith.constant 0 : i32
    %0 = arith.cmpi eq, %arg1, %c0_i32 : i32
    %1 = arith.extui %0 : i1 to i32
    %c0_i32_0 = arith.constant 0 : i32
    %2 = arith.cmpi ne, %1, %c0_i32_0 : i32
    scf.if %2 {
      %cst_270 = arith.constant 0.000000e+00 : f32
      %506 = vector.broadcast %cst_270 : f32 to vector<8x32xf32>
      %c0_271 = arith.constant 0 : index
      %c0_272 = arith.constant 0 : index
      %c0_273 = arith.constant 0 : index
      %507 = vector.load %arg35[%c0_271, %c0_272, %c0_273] : memref<1x8x32xf32, #tpu.memory_space<vmem>>, vector<1x8x32xf32>
      %508 = vector.shape_cast %507 : vector<1x8x32xf32> to vector<8x32xf32>
      %509 = vector.shape_cast %506 : vector<8x32xf32> to vector<1x8x32xf32>
      tpu.vector_store %arg35[%c0_271, %c0_272, %c0_273], %509 {strides = array<i32>} : memref<1x8x32xf32, #tpu.memory_space<vmem>>, vector<1x8x32xf32>,
    } else {
    }
    %c0 = arith.constant 0 : index
    %c0_1 = arith.constant 0 : index
    %3 = vector.load %arg2[%c0, %c0_1] : memref<8x32xf32, #tpu.memory_space<vmem>>, vector<8x32xf32>
    %c0_2 = arith.constant 0 : index
    %c0_3 = arith.constant 0 : index
    %4 = vector.load %arg3[%c0_2, %c0_3] : memref<8x32xf32, #tpu.memory_space<vmem>>, vector<8x32xf32>
    %c0_4 = arith.constant 0 : index
    %c0_5 = arith.constant 0 : index
    %5 = vector.load %arg4[%c0_4, %c0_5] : memref<8x32xbf16, #tpu.memory_space<vmem>>, vector<8x32xbf16>
    %c0_6 = arith.constant 0 : index
    %c0_7 = arith.constant 0 : index
    %6 = vector.load %arg6[%c0_6, %c0_7] : memref<32x32xbf16, #tpu.memory_space<vmem>>, vector<32x32xbf16>
    %cst = arith.constant dense<0.000000e+00> : vector<8x32xf32>
    %7 = tpu.matmul %5, %6, %cst {dimension_numbers = #tpu.dot_dimension_numbers<[1], [0], [0], [1], [0, 0, 1, 1], [], []>} : vector<8x32xbf16>, vector<32x32xbf16>, vector<8x32xf32> -> vector<8x32xf32>
    %c0_8 = arith.constant 0 : index
    %c0_9 = arith.constant 0 : index
    %8 = vector.load %arg7[%c0_8, %c0_9] : memref<3x32xf32, #tpu.memory_space<vmem>>, vector<1x32xf32>
    %9 = vector.broadcast %8 : vector<1x32xf32> to vector<8x32xf32>
    %10 = arith.addf %7, %9 : vector<8x32xf32>
    %cst_10 = arith.constant dense<0.000000e+00> : vector<8xf32>
    %11 = vector.multi_reduction <add>, %10, %cst_10 [1] : vector<8x32xf32> to vector<8xf32>
    %12 = vector.shape_cast %11 : vector<8xf32> to vector<8x1xf32>
    %cst_11 = arith.constant 3.200000e+01 : f32
    %13 = vector.broadcast %cst_11 : f32 to vector<8x1xf32>
    %14 = arith.divf %12, %13 : vector<8x1xf32>
    %15 = arith.mulf %10, %10 : vector<8x32xf32>
    %cst_12 = arith.constant dense<0.000000e+00> : vector<8xf32>
    %16 = vector.multi_reduction <add>, %15, %cst_12 [1] : vector<8x32xf32> to vector<8xf32>
    %17 = vector.shape_cast %16 : vector<8xf32> to vector<8x1xf32>
    %cst_13 = arith.constant 3.200000e+01 : f32
    %18 = vector.broadcast %cst_13 : f32 to vector<8x1xf32>
    %19 = arith.divf %17, %18 : vector<8x1xf32>
    %20 = arith.mulf %14, %14 : vector<8x1xf32>
    %21 = arith.subf %19, %20 : vector<8x1xf32>
    %cst_14 = arith.constant 0.000000e+00 : f32
    %22 = vector.broadcast %cst_14 : f32 to vector<8x1xf32>
    %23 = arith.maximumf %21, %22 : vector<8x1xf32>
    %24 = vector.broadcast %14 : vector<8x1xf32> to vector<8x32xf32>
    %25 = arith.subf %10, %24 : vector<8x32xf32>
    %cst_15 = arith.constant 9.99999974E-6 : f32
    %26 = vector.broadcast %cst_15 : f32 to vector<8x1xf32>
    %27 = arith.addf %23, %26 : vector<8x1xf32>
    %28 = math.rsqrt %27 : vector<8x1xf32>
    %29 = vector.broadcast %28 : vector<8x1xf32> to vector<8x32xf32>
    %30 = arith.mulf %25, %29 : vector<8x32xf32>
    %c1 = arith.constant 1 : index
    %c0_16 = arith.constant 0 : index
    %31 = vector.load %arg7[%c1, %c0_16] : memref<3x32xf32, #tpu.memory_space<vmem>>, vector<1x32xf32>
    %32 = vector.broadcast %31 : vector<1x32xf32> to vector<8x32xf32>
    %33 = arith.mulf %30, %32 : vector<8x32xf32>
    %c2 = arith.constant 2 : index
    %c0_17 = arith.constant 0 : index
    %34 = vector.load %arg7[%c2, %c0_17] : memref<3x32xf32, #tpu.memory_space<vmem>>, vector<1x32xf32>
    %35 = vector.broadcast %34 : vector<1x32xf32> to vector<8x32xf32>
    %36 = arith.addf %33, %35 : vector<8x32xf32>
    %cst_18 = arith.constant 0.000000e+00 : f32
    %37 = vector.broadcast %cst_18 : f32 to vector<8x32xf32>
    %38 = arith.maximumf %36, %37 : vector<8x32xf32>
    %39 = arith.truncf %38 : vector<8x32xf32> to vector<8x32xbf16>
    %c0_19 = arith.constant 0 : index
    %c0_20 = arith.constant 0 : index
    %40 = vector.load %arg8[%c0_19, %c0_20] : memref<32x32xbf16, #tpu.memory_space<vmem>>, vector<32x32xbf16>
    %cst_21 = arith.constant dense<0.000000e+00> : vector<8x32xf32>
    %41 = tpu.matmul %39, %40, %cst_21 {dimension_numbers = #tpu.dot_dimension_numbers<[1], [0], [0], [1], [0, 0, 1, 1], [], []>} : vector<8x32xbf16>, vector<32x32xbf16>, vector<8x32xf32> -> vector<8x32xf32>
    %42 = arith.addf %3, %41 : vector<8x32xf32>
    %c0_22 = arith.constant 0 : index
    %c0_23 = arith.constant 0 : index
    %43 = vector.load %arg9[%c0_22, %c0_23] : memref<1x32xf32, #tpu.memory_space<vmem>>, vector<1x32xf32>
    %44 = vector.broadcast %43 : vector<1x32xf32> to vector<8x32xf32>
    %45 = arith.addf %42, %44 : vector<8x32xf32>
    %c0_24 = arith.constant 0 : index
    %c0_25 = arith.constant 0 : index
    %46 = vector.load %arg5[%c0_24, %c0_25] : memref<8x32xbf16, #tpu.memory_space<vmem>>, vector<8x32xbf16>
    %c0_26 = arith.constant 0 : index
    %c0_27 = arith.constant 0 : index
    %47 = vector.load %arg10[%c0_26, %c0_27] : memref<32x32xbf16, #tpu.memory_space<vmem>>, vector<32x32xbf16>
    %cst_28 = arith.constant dense<0.000000e+00> : vector<8x32xf32>
    %48 = tpu.matmul %46, %47, %cst_28 {dimension_numbers = #tpu.dot_dimension_numbers<[1], [0], [0], [1], [0, 0, 1, 1], [], []>} : vector<8x32xbf16>, vector<32x32xbf16>, vector<8x32xf32> -> vector<8x32xf32>
    %c0_29 = arith.constant 0 : index
    %c0_30 = arith.constant 0 : index
    %49 = vector.load %arg11[%c0_29, %c0_30] : memref<3x32xf32, #tpu.memory_space<vmem>>, vector<1x32xf32>
    %50 = vector.broadcast %49 : vector<1x32xf32> to vector<8x32xf32>
    %51 = arith.addf %48, %50 : vector<8x32xf32>
    %cst_31 = arith.constant dense<0.000000e+00> : vector<8xf32>
    %52 = vector.multi_reduction <add>, %51, %cst_31 [1] : vector<8x32xf32> to vector<8xf32>
    %53 = vector.shape_cast %52 : vector<8xf32> to vector<8x1xf32>
    %cst_32 = arith.constant 3.200000e+01 : f32
    %54 = vector.broadcast %cst_32 : f32 to vector<8x1xf32>
    %55 = arith.divf %53, %54 : vector<8x1xf32>
    %56 = arith.mulf %51, %51 : vector<8x32xf32>
    %cst_33 = arith.constant dense<0.000000e+00> : vector<8xf32>
    %57 = vector.multi_reduction <add>, %56, %cst_33 [1] : vector<8x32xf32> to vector<8xf32>
    %58 = vector.shape_cast %57 : vector<8xf32> to vector<8x1xf32>
    %cst_34 = arith.constant 3.200000e+01 : f32
    %59 = vector.broadcast %cst_34 : f32 to vector<8x1xf32>
    %60 = arith.divf %58, %59 : vector<8x1xf32>
    %61 = arith.mulf %55, %55 : vector<8x1xf32>
    %62 = arith.subf %60, %61 : vector<8x1xf32>
    %cst_35 = arith.constant 0.000000e+00 : f32
    %63 = vector.broadcast %cst_35 : f32 to vector<8x1xf32>
    %64 = arith.maximumf %62, %63 : vector<8x1xf32>
    %65 = vector.broadcast %55 : vector<8x1xf32> to vector<8x32xf32>
    %66 = arith.subf %51, %65 : vector<8x32xf32>
    %cst_36 = arith.constant 9.99999974E-6 : f32
    %67 = vector.broadcast %cst_36 : f32 to vector<8x1xf32>
    %68 = arith.addf %64, %67 : vector<8x1xf32>
    %69 = math.rsqrt %68 : vector<8x1xf32>
    %70 = vector.broadcast %69 : vector<8x1xf32> to vector<8x32xf32>
    %71 = arith.mulf %66, %70 : vector<8x32xf32>
    %c1_37 = arith.constant 1 : index
    %c0_38 = arith.constant 0 : index
    %72 = vector.load %arg11[%c1_37, %c0_38] : memref<3x32xf32, #tpu.memory_space<vmem>>, vector<1x32xf32>
    %73 = vector.broadcast %72 : vector<1x32xf32> to vector<8x32xf32>
    %74 = arith.mulf %71, %73 : vector<8x32xf32>
    %c2_39 = arith.constant 2 : index
    %c0_40 = arith.constant 0 : index
    %75 = vector.load %arg11[%c2_39, %c0_40] : memref<3x32xf32, #tpu.memory_space<vmem>>, vector<1x32xf32>
    %76 = vector.broadcast %75 : vector<1x32xf32> to vector<8x32xf32>
    %77 = arith.addf %74, %76 : vector<8x32xf32>
    %cst_41 = arith.constant 0.000000e+00 : f32
    %78 = vector.broadcast %cst_41 : f32 to vector<8x32xf32>
    %79 = arith.maximumf %77, %78 : vector<8x32xf32>
    %80 = arith.truncf %79 : vector<8x32xf32> to vector<8x32xbf16>
    %c0_42 = arith.constant 0 : index
    %c0_43 = arith.constant 0 : index
    %81 = vector.load %arg12[%c0_42, %c0_43] : memref<32x32xbf16, #tpu.memory_space<vmem>>, vector<32x32xbf16>
    %cst_44 = arith.constant dense<0.000000e+00> : vector<8x32xf32>
    %82 = tpu.matmul %80, %81, %cst_44 {dimension_numbers = #tpu.dot_dimension_numbers<[1], [0], [0], [1], [0, 0, 1, 1], [], []>} : vector<8x32xbf16>, vector<32x32xbf16>, vector<8x32xf32> -> vector<8x32xf32>
    %83 = arith.addf %4, %82 : vector<8x32xf32>
    %c0_45 = arith.constant 0 : index
    %c0_46 = arith.constant 0 : index
    %84 = vector.load %arg13[%c0_45, %c0_46] : memref<1x32xf32, #tpu.memory_space<vmem>>, vector<1x32xf32>
    %85 = vector.broadcast %84 : vector<1x32xf32> to vector<8x32xf32>
    %86 = arith.addf %83, %85 : vector<8x32xf32>
    %87 = arith.truncf %45 : vector<8x32xf32> to vector<8x32xbf16>
    %88 = arith.truncf %86 : vector<8x32xf32> to vector<8x32xbf16>
    %c0_47 = arith.constant 0 : index
    %c0_48 = arith.constant 0 : index
    %89 = vector.load %arg14[%c0_47, %c0_48] : memref<32x16xbf16, #tpu.memory_space<vmem>>, vector<32x16xbf16>
    %cst_49 = arith.constant dense<0.000000e+00> : vector<8x16xf32>
    %90 = tpu.matmul %87, %89, %cst_49 {dimension_numbers = #tpu.dot_dimension_numbers<[1], [0], [0], [1], [0, 0, 1, 1], [], []>} : vector<8x32xbf16>, vector<32x16xbf16>, vector<8x16xf32> -> vector<8x16xf32>
    %c0_50 = arith.constant 0 : index
    %c0_51 = arith.constant 0 : index
    %91 = vector.load %arg15[%c0_50, %c0_51] : memref<32x16xbf16, #tpu.memory_space<vmem>>, vector<32x16xbf16>
    %cst_52 = arith.constant dense<0.000000e+00> : vector<8x16xf32>
    %92 = tpu.matmul %88, %91, %cst_52 {dimension_numbers = #tpu.dot_dimension_numbers<[1], [0], [0], [1], [0, 0, 1, 1], [], []>} : vector<8x32xbf16>, vector<32x16xbf16>, vector<8x16xf32> -> vector<8x16xf32>
    %93 = arith.addf %90, %92 : vector<8x16xf32>
    %c0_53 = arith.constant 0 : index
    %c0_54 = arith.constant 0 : index
    %94 = vector.load %arg16[%c0_53, %c0_54] : memref<3x16xf32, #tpu.memory_space<vmem>>, vector<1x16xf32>
    %95 = vector.broadcast %94 : vector<1x16xf32> to vector<8x16xf32>
    %96 = arith.addf %93, %95 : vector<8x16xf32>
    %cst_55 = arith.constant dense<0.000000e+00> : vector<8xf32>
    %97 = vector.multi_reduction <add>, %96, %cst_55 [1] : vector<8x16xf32> to vector<8xf32>
    %98 = vector.shape_cast %97 : vector<8xf32> to vector<8x1xf32>
    %cst_56 = arith.constant 1.600000e+01 : f32
    %99 = vector.broadcast %cst_56 : f32 to vector<8x1xf32>
    %100 = arith.divf %98, %99 : vector<8x1xf32>
    %101 = arith.mulf %96, %96 : vector<8x16xf32>
    %cst_57 = arith.constant dense<0.000000e+00> : vector<8xf32>
    %102 = vector.multi_reduction <add>, %101, %cst_57 [1] : vector<8x16xf32> to vector<8xf32>
    %103 = vector.shape_cast %102 : vector<8xf32> to vector<8x1xf32>
    %cst_58 = arith.constant 1.600000e+01 : f32
    %104 = vector.broadcast %cst_58 : f32 to vector<8x1xf32>
    %105 = arith.divf %103, %104 : vector<8x1xf32>
    %106 = arith.mulf %100, %100 : vector<8x1xf32>
    %107 = arith.subf %105, %106 : vector<8x1xf32>
    %cst_59 = arith.constant 0.000000e+00 : f32
    %108 = vector.broadcast %cst_59 : f32 to vector<8x1xf32>
    %109 = arith.maximumf %107, %108 : vector<8x1xf32>
    %110 = vector.broadcast %100 : vector<8x1xf32> to vector<8x16xf32>
    %111 = arith.subf %96, %110 : vector<8x16xf32>
    %cst_60 = arith.constant 9.99999974E-6 : f32
    %112 = vector.broadcast %cst_60 : f32 to vector<8x1xf32>
    %113 = arith.addf %109, %112 : vector<8x1xf32>
    %114 = math.rsqrt %113 : vector<8x1xf32>
    %115 = vector.broadcast %114 : vector<8x1xf32> to vector<8x16xf32>
    %116 = arith.mulf %111, %115 : vector<8x16xf32>
    %c1_61 = arith.constant 1 : index
    %c0_62 = arith.constant 0 : index
    %117 = vector.load %arg16[%c1_61, %c0_62] : memref<3x16xf32, #tpu.memory_space<vmem>>, vector<1x16xf32>
    %118 = vector.broadcast %117 : vector<1x16xf32> to vector<8x16xf32>
    %119 = arith.mulf %116, %118 : vector<8x16xf32>
    %c2_63 = arith.constant 2 : index
    %c0_64 = arith.constant 0 : index
    %120 = vector.load %arg16[%c2_63, %c0_64] : memref<3x16xf32, #tpu.memory_space<vmem>>, vector<1x16xf32>
    %121 = vector.broadcast %120 : vector<1x16xf32> to vector<8x16xf32>
    %122 = arith.addf %119, %121 : vector<8x16xf32>
    %cst_65 = arith.constant 0.000000e+00 : f32
    %123 = vector.broadcast %cst_65 : f32 to vector<8x16xf32>
    %124 = arith.maximumf %122, %123 : vector<8x16xf32>
    %c0_66 = arith.constant 0 : index
    %c0_67 = arith.constant 0 : index
    %125 = vector.load %arg29[%c0_66, %c0_67] : memref<8x16xf32, #tpu.memory_space<vmem>>, vector<8x16xf32>
    tpu.vector_store %arg29[%c0_66, %c0_67], %124 {strides = array<i32>} : memref<8x16xf32, #tpu.memory_space<vmem>>, vector<8x16xf32>,
    %126 = arith.truncf %124 : vector<8x16xf32> to vector<8x16xbf16>
    %c0_68 = arith.constant 0 : index
    %c0_69 = arith.constant 0 : index
    %127 = vector.load %arg27[%c0_68, %c0_69] : memref<1x16xf32, #tpu.memory_space<vmem>>, vector<1x16xf32>
    %128 = vector.broadcast %127 : vector<1x16xf32> to vector<8x16xf32>
    %129 = arith.mulf %124, %128 : vector<8x16xf32>
    %cst_70 = arith.constant dense<0.000000e+00> : vector<8xf32>
    %130 = vector.multi_reduction <add>, %129, %cst_70 [1] : vector<8x16xf32> to vector<8xf32>
    %131 = vector.shape_cast %130 : vector<8xf32> to vector<8x1xf32>
    %c0_71 = arith.constant 0 : index
    %c0_72 = arith.constant 0 : index
    %132 = vector.load %arg28[%c0_71, %c0_72] : memref<1x1xf32, #tpu.memory_space<vmem>>, vector<1x1xf32>
    %133 = vector.broadcast %132 : vector<1x1xf32> to vector<8x1xf32>
    %134 = arith.addf %131, %133 : vector<8x1xf32>
    %135 = arith.negf %134 : vector<8x1xf32>
    %136 = math.exp %135 : vector<8x1xf32>
    %cst_73 = arith.constant 1.000000e+00 : f32
    %137 = vector.broadcast %cst_73 : f32 to vector<8x1xf32>
    %138 = arith.addf %137, %136 : vector<8x1xf32>
    %139 = arith.divf %137, %138 : vector<8x1xf32>
    %c0_74 = arith.constant 0 : index
    %c0_75 = arith.constant 0 : index
    %140 = vector.load %arg34[%c0_74, %c0_75] : memref<8x1xf32, #tpu.memory_space<vmem>>, vector<8x1xf32>
    tpu.vector_store %arg34[%c0_74, %c0_75], %139 {strides = array<i32>} : memref<8x1xf32, #tpu.memory_space<vmem>>, vector<8x1xf32>,
    %c0_76 = arith.constant 0 : index
    %c0_77 = arith.constant 0 : index
    %141 = vector.load %arg17[%c0_76, %c0_77] : memref<32x32xbf16, #tpu.memory_space<vmem>>, vector<32x32xbf16>
    %cst_78 = arith.constant dense<0.000000e+00> : vector<8x32xf32>
    %142 = tpu.matmul %87, %141, %cst_78 {dimension_numbers = #tpu.dot_dimension_numbers<[1], [0], [0], [1], [0, 0, 1, 1], [], []>} : vector<8x32xbf16>, vector<32x32xbf16>, vector<8x32xf32> -> vector<8x32xf32>
    %c0_79 = arith.constant 0 : index
    %c0_80 = arith.constant 0 : index
    %143 = vector.load %arg18[%c0_79, %c0_80] : memref<3x32xf32, #tpu.memory_space<vmem>>, vector<1x32xf32>
    %144 = vector.broadcast %143 : vector<1x32xf32> to vector<8x32xf32>
    %145 = arith.addf %142, %144 : vector<8x32xf32>
    %cst_81 = arith.constant dense<0.000000e+00> : vector<8xf32>
    %146 = vector.multi_reduction <add>, %145, %cst_81 [1] : vector<8x32xf32> to vector<8xf32>
    %147 = vector.shape_cast %146 : vector<8xf32> to vector<8x1xf32>
    %cst_82 = arith.constant 3.200000e+01 : f32
    %148 = vector.broadcast %cst_82 : f32 to vector<8x1xf32>
    %149 = arith.divf %147, %148 : vector<8x1xf32>
    %150 = arith.mulf %145, %145 : vector<8x32xf32>
    %cst_83 = arith.constant dense<0.000000e+00> : vector<8xf32>
    %151 = vector.multi_reduction <add>, %150, %cst_83 [1] : vector<8x32xf32> to vector<8xf32>
    %152 = vector.shape_cast %151 : vector<8xf32> to vector<8x1xf32>
    %cst_84 = arith.constant 3.200000e+01 : f32
    %153 = vector.broadcast %cst_84 : f32 to vector<8x1xf32>
    %154 = arith.divf %152, %153 : vector<8x1xf32>
    %155 = arith.mulf %149, %149 : vector<8x1xf32>
    %156 = arith.subf %154, %155 : vector<8x1xf32>
    %cst_85 = arith.constant 0.000000e+00 : f32
    %157 = vector.broadcast %cst_85 : f32 to vector<8x1xf32>
    %158 = arith.maximumf %156, %157 : vector<8x1xf32>
    %159 = vector.broadcast %149 : vector<8x1xf32> to vector<8x32xf32>
    %160 = arith.subf %145, %159 : vector<8x32xf32>
    %cst_86 = arith.constant 9.99999974E-6 : f32
    %161 = vector.broadcast %cst_86 : f32 to vector<8x1xf32>
    %162 = arith.addf %158, %161 : vector<8x1xf32>
    %163 = math.rsqrt %162 : vector<8x1xf32>
    %164 = vector.broadcast %163 : vector<8x1xf32> to vector<8x32xf32>
    %165 = arith.mulf %160, %164 : vector<8x32xf32>
    %c1_87 = arith.constant 1 : index
    %c0_88 = arith.constant 0 : index
    %166 = vector.load %arg18[%c1_87, %c0_88] : memref<3x32xf32, #tpu.memory_space<vmem>>, vector<1x32xf32>
    %167 = vector.broadcast %166 : vector<1x32xf32> to vector<8x32xf32>
    %168 = arith.mulf %165, %167 : vector<8x32xf32>
    %c2_89 = arith.constant 2 : index
    %c0_90 = arith.constant 0 : index
    %169 = vector.load %arg18[%c2_89, %c0_90] : memref<3x32xf32, #tpu.memory_space<vmem>>, vector<1x32xf32>
    %170 = vector.broadcast %169 : vector<1x32xf32> to vector<8x32xf32>
    %171 = arith.addf %168, %170 : vector<8x32xf32>
    %cst_91 = arith.constant 0.000000e+00 : f32
    %172 = vector.broadcast %cst_91 : f32 to vector<8x32xf32>
    %173 = arith.maximumf %171, %172 : vector<8x32xf32>
    %c0_92 = arith.constant 0 : index
    %c0_93 = arith.constant 0 : index
    %174 = vector.load %arg30[%c0_92, %c0_93] : memref<8x32xf32, #tpu.memory_space<vmem>>, vector<8x32xf32>
    tpu.vector_store %arg30[%c0_92, %c0_93], %173 {strides = array<i32>} : memref<8x32xf32, #tpu.memory_space<vmem>>, vector<8x32xf32>,
    %c0_94 = arith.constant 0 : index
    %c0_95 = arith.constant 0 : index
    %175 = vector.load %arg19[%c0_94, %c0_95] : memref<32x32xbf16, #tpu.memory_space<vmem>>, vector<32x32xbf16>
    %cst_96 = arith.constant dense<0.000000e+00> : vector<8x32xf32>
    %176 = tpu.matmul %88, %175, %cst_96 {dimension_numbers = #tpu.dot_dimension_numbers<[1], [0], [0], [1], [0, 0, 1, 1], [], []>} : vector<8x32xbf16>, vector<32x32xbf16>, vector<8x32xf32> -> vector<8x32xf32>
    %c0_97 = arith.constant 0 : index
    %c0_98 = arith.constant 0 : index
    %177 = vector.load %arg20[%c0_97, %c0_98] : memref<3x32xf32, #tpu.memory_space<vmem>>, vector<1x32xf32>
    %178 = vector.broadcast %177 : vector<1x32xf32> to vector<8x32xf32>
    %179 = arith.addf %176, %178 : vector<8x32xf32>
    %cst_99 = arith.constant dense<0.000000e+00> : vector<8xf32>
    %180 = vector.multi_reduction <add>, %179, %cst_99 [1] : vector<8x32xf32> to vector<8xf32>
    %181 = vector.shape_cast %180 : vector<8xf32> to vector<8x1xf32>
    %cst_100 = arith.constant 3.200000e+01 : f32
    %182 = vector.broadcast %cst_100 : f32 to vector<8x1xf32>
    %183 = arith.divf %181, %182 : vector<8x1xf32>
    %184 = arith.mulf %179, %179 : vector<8x32xf32>
    %cst_101 = arith.constant dense<0.000000e+00> : vector<8xf32>
    %185 = vector.multi_reduction <add>, %184, %cst_101 [1] : vector<8x32xf32> to vector<8xf32>
    %186 = vector.shape_cast %185 : vector<8xf32> to vector<8x1xf32>
    %cst_102 = arith.constant 3.200000e+01 : f32
    %187 = vector.broadcast %cst_102 : f32 to vector<8x1xf32>
    %188 = arith.divf %186, %187 : vector<8x1xf32>
    %189 = arith.mulf %183, %183 : vector<8x1xf32>
    %190 = arith.subf %188, %189 : vector<8x1xf32>
    %cst_103 = arith.constant 0.000000e+00 : f32
    %191 = vector.broadcast %cst_103 : f32 to vector<8x1xf32>
    %192 = arith.maximumf %190, %191 : vector<8x1xf32>
    %193 = vector.broadcast %183 : vector<8x1xf32> to vector<8x32xf32>
    %194 = arith.subf %179, %193 : vector<8x32xf32>
    %cst_104 = arith.constant 9.99999974E-6 : f32
    %195 = vector.broadcast %cst_104 : f32 to vector<8x1xf32>
    %196 = arith.addf %192, %195 : vector<8x1xf32>
    %197 = math.rsqrt %196 : vector<8x1xf32>
    %198 = vector.broadcast %197 : vector<8x1xf32> to vector<8x32xf32>
    %199 = arith.mulf %194, %198 : vector<8x32xf32>
    %c1_105 = arith.constant 1 : index
    %c0_106 = arith.constant 0 : index
    %200 = vector.load %arg20[%c1_105, %c0_106] : memref<3x32xf32, #tpu.memory_space<vmem>>, vector<1x32xf32>
    %201 = vector.broadcast %200 : vector<1x32xf32> to vector<8x32xf32>
    %202 = arith.mulf %199, %201 : vector<8x32xf32>
    %c2_107 = arith.constant 2 : index
    %c0_108 = arith.constant 0 : index
    %203 = vector.load %arg20[%c2_107, %c0_108] : memref<3x32xf32, #tpu.memory_space<vmem>>, vector<1x32xf32>
    %204 = vector.broadcast %203 : vector<1x32xf32> to vector<8x32xf32>
    %205 = arith.addf %202, %204 : vector<8x32xf32>
    %cst_109 = arith.constant 0.000000e+00 : f32
    %206 = vector.broadcast %cst_109 : f32 to vector<8x32xf32>
    %207 = arith.maximumf %205, %206 : vector<8x32xf32>
    %c0_110 = arith.constant 0 : index
    %c0_111 = arith.constant 0 : index
    %208 = vector.load %arg31[%c0_110, %c0_111] : memref<8x32xf32, #tpu.memory_space<vmem>>, vector<8x32xf32>
    tpu.vector_store %arg31[%c0_110, %c0_111], %207 {strides = array<i32>} : memref<8x32xf32, #tpu.memory_space<vmem>>, vector<8x32xf32>,
    %209 = arith.subf %173, %207 : vector<8x32xf32>
    %c0_112 = arith.constant 0 : index
    %c4 = arith.constant 4 : index
    %c0_113 = arith.constant 0 : index
    %210 = vector.load %arg35[%c0_112, %c4, %c0_113] : memref<1x8x32xf32, #tpu.memory_space<vmem>>, vector<1x1x32xf32>
    %211 = vector.shape_cast %210 : vector<1x1x32xf32> to vector<1x32xf32>
    %212 = arith.mulf %209, %209 : vector<8x32xf32>
    %cst_114 = arith.constant dense<0.000000e+00> : vector<32xf32>
    %213 = vector.multi_reduction <add>, %212, %cst_114 [0] : vector<8x32xf32> to vector<32xf32>
    %214 = vector.shape_cast %213 : vector<32xf32> to vector<1x32xf32>
    %215 = arith.addf %211, %214 : vector<1x32xf32>
    %c0_115 = arith.constant 0 : index
    %c4_116 = arith.constant 4 : index
    %c0_117 = arith.constant 0 : index
    %216 = vector.load %arg35[%c0_115, %c4_116, %c0_117] : memref<1x8x32xf32, #tpu.memory_space<vmem>>, vector<1x1x32xf32>
    %217 = vector.shape_cast %216 : vector<1x1x32xf32> to vector<1x32xf32>
    %218 = vector.shape_cast %215 : vector<1x32xf32> to vector<1x1x32xf32>
    tpu.vector_store %arg35[%c0_115, %c4_116, %c0_117], %218 {strides = array<i32>} : memref<1x8x32xf32, #tpu.memory_space<vmem>>, vector<1x1x32xf32>,
    %c0_118 = arith.constant 0 : index
    %c0_119 = arith.constant 0 : index
    %219 = vector.load %arg21[%c0_118, %c0_119] : memref<16x32xbf16, #tpu.memory_space<vmem>>, vector<16x32xbf16>
    %cst_120 = arith.constant dense<0.000000e+00> : vector<8x32xf32>
    %220 = tpu.matmul %126, %219, %cst_120 {dimension_numbers = #tpu.dot_dimension_numbers<[1], [0], [0], [1], [0, 0, 1, 1], [], []>} : vector<8x16xbf16>, vector<16x32xbf16>, vector<8x32xf32> -> vector<8x32xf32>
    %221 = arith.truncf %173 : vector<8x32xf32> to vector<8x32xbf16>
    %c0_121 = arith.constant 0 : index
    %c0_122 = arith.constant 0 : index
    %222 = vector.load %arg22[%c0_121, %c0_122] : memref<32x32xbf16, #tpu.memory_space<vmem>>, vector<32x32xbf16>
    %cst_123 = arith.constant dense<0.000000e+00> : vector<8x32xf32>
    %223 = tpu.matmul %221, %222, %cst_123 {dimension_numbers = #tpu.dot_dimension_numbers<[1], [0], [0], [1], [0, 0, 1, 1], [], []>} : vector<8x32xbf16>, vector<32x32xbf16>, vector<8x32xf32> -> vector<8x32xf32>
    %224 = arith.addf %220, %223 : vector<8x32xf32>
    %c0_124 = arith.constant 0 : index
    %c0_125 = arith.constant 0 : index
    %225 = vector.load %arg23[%c0_124, %c0_125] : memref<3x32xf32, #tpu.memory_space<vmem>>, vector<1x32xf32>
    %226 = vector.broadcast %225 : vector<1x32xf32> to vector<8x32xf32>
    %227 = arith.addf %224, %226 : vector<8x32xf32>
    %cst_126 = arith.constant dense<0.000000e+00> : vector<8xf32>
    %228 = vector.multi_reduction <add>, %227, %cst_126 [1] : vector<8x32xf32> to vector<8xf32>
    %229 = vector.shape_cast %228 : vector<8xf32> to vector<8x1xf32>
    %cst_127 = arith.constant 3.200000e+01 : f32
    %230 = vector.broadcast %cst_127 : f32 to vector<8x1xf32>
    %231 = arith.divf %229, %230 : vector<8x1xf32>
    %232 = arith.mulf %227, %227 : vector<8x32xf32>
    %cst_128 = arith.constant dense<0.000000e+00> : vector<8xf32>
    %233 = vector.multi_reduction <add>, %232, %cst_128 [1] : vector<8x32xf32> to vector<8xf32>
    %234 = vector.shape_cast %233 : vector<8xf32> to vector<8x1xf32>
    %cst_129 = arith.constant 3.200000e+01 : f32
    %235 = vector.broadcast %cst_129 : f32 to vector<8x1xf32>
    %236 = arith.divf %234, %235 : vector<8x1xf32>
    %237 = arith.mulf %231, %231 : vector<8x1xf32>
    %238 = arith.subf %236, %237 : vector<8x1xf32>
    %cst_130 = arith.constant 0.000000e+00 : f32
    %239 = vector.broadcast %cst_130 : f32 to vector<8x1xf32>
    %240 = arith.maximumf %238, %239 : vector<8x1xf32>
    %241 = vector.broadcast %231 : vector<8x1xf32> to vector<8x32xf32>
    %242 = arith.subf %227, %241 : vector<8x32xf32>
    %cst_131 = arith.constant 9.99999974E-6 : f32
    %243 = vector.broadcast %cst_131 : f32 to vector<8x1xf32>
    %244 = arith.addf %240, %243 : vector<8x1xf32>
    %245 = math.rsqrt %244 : vector<8x1xf32>
    %246 = vector.broadcast %245 : vector<8x1xf32> to vector<8x32xf32>
    %247 = arith.mulf %242, %246 : vector<8x32xf32>
    %c1_132 = arith.constant 1 : index
    %c0_133 = arith.constant 0 : index
    %248 = vector.load %arg23[%c1_132, %c0_133] : memref<3x32xf32, #tpu.memory_space<vmem>>, vector<1x32xf32>
    %249 = vector.broadcast %248 : vector<1x32xf32> to vector<8x32xf32>
    %250 = arith.mulf %247, %249 : vector<8x32xf32>
    %c2_134 = arith.constant 2 : index
    %c0_135 = arith.constant 0 : index
    %251 = vector.load %arg23[%c2_134, %c0_135] : memref<3x32xf32, #tpu.memory_space<vmem>>, vector<1x32xf32>
    %252 = vector.broadcast %251 : vector<1x32xf32> to vector<8x32xf32>
    %253 = arith.addf %250, %252 : vector<8x32xf32>
    %cst_136 = arith.constant 0.000000e+00 : f32
    %254 = vector.broadcast %cst_136 : f32 to vector<8x32xf32>
    %255 = arith.maximumf %253, %254 : vector<8x32xf32>
    %c0_137 = arith.constant 0 : index
    %c0_138 = arith.constant 0 : index
    %256 = vector.load %arg32[%c0_137, %c0_138] : memref<8x32xf32, #tpu.memory_space<vmem>>, vector<8x32xf32>
    tpu.vector_store %arg32[%c0_137, %c0_138], %255 {strides = array<i32>} : memref<8x32xf32, #tpu.memory_space<vmem>>, vector<8x32xf32>,
    %257 = arith.subf %255, %3 : vector<8x32xf32>
    %c0_139 = arith.constant 0 : index
    %c2_140 = arith.constant 2 : index
    %c0_141 = arith.constant 0 : index
    %258 = vector.load %arg35[%c0_139, %c2_140, %c0_141] : memref<1x8x32xf32, #tpu.memory_space<vmem>>, vector<1x1x32xf32>
    %259 = vector.shape_cast %258 : vector<1x1x32xf32> to vector<1x32xf32>
    %260 = arith.mulf %257, %257 : vector<8x32xf32>
    %cst_142 = arith.constant dense<0.000000e+00> : vector<32xf32>
    %261 = vector.multi_reduction <add>, %260, %cst_142 [0] : vector<8x32xf32> to vector<32xf32>
    %262 = vector.shape_cast %261 : vector<32xf32> to vector<1x32xf32>
    %263 = arith.addf %259, %262 : vector<1x32xf32>
    %c0_143 = arith.constant 0 : index
    %c2_144 = arith.constant 2 : index
    %c0_145 = arith.constant 0 : index
    %264 = vector.load %arg35[%c0_143, %c2_144, %c0_145] : memref<1x8x32xf32, #tpu.memory_space<vmem>>, vector<1x1x32xf32>
    %265 = vector.shape_cast %264 : vector<1x1x32xf32> to vector<1x32xf32>
    %266 = vector.shape_cast %263 : vector<1x32xf32> to vector<1x1x32xf32>
    tpu.vector_store %arg35[%c0_143, %c2_144, %c0_145], %266 {strides = array<i32>} : memref<1x8x32xf32, #tpu.memory_space<vmem>>, vector<1x1x32xf32>,
    %c0_146 = arith.constant 0 : index
    %c0_147 = arith.constant 0 : index
    %267 = vector.load %arg24[%c0_146, %c0_147] : memref<16x32xbf16, #tpu.memory_space<vmem>>, vector<16x32xbf16>
    %cst_148 = arith.constant dense<0.000000e+00> : vector<8x32xf32>
    %268 = tpu.matmul %126, %267, %cst_148 {dimension_numbers = #tpu.dot_dimension_numbers<[1], [0], [0], [1], [0, 0, 1, 1], [], []>} : vector<8x16xbf16>, vector<16x32xbf16>, vector<8x32xf32> -> vector<8x32xf32>
    %269 = arith.truncf %207 : vector<8x32xf32> to vector<8x32xbf16>
    %c0_149 = arith.constant 0 : index
    %c0_150 = arith.constant 0 : index
    %270 = vector.load %arg25[%c0_149, %c0_150] : memref<32x32xbf16, #tpu.memory_space<vmem>>, vector<32x32xbf16>
    %cst_151 = arith.constant dense<0.000000e+00> : vector<8x32xf32>
    %271 = tpu.matmul %269, %270, %cst_151 {dimension_numbers = #tpu.dot_dimension_numbers<[1], [0], [0], [1], [0, 0, 1, 1], [], []>} : vector<8x32xbf16>, vector<32x32xbf16>, vector<8x32xf32> -> vector<8x32xf32>
    %272 = arith.addf %268, %271 : vector<8x32xf32>
    %c0_152 = arith.constant 0 : index
    %c0_153 = arith.constant 0 : index
    %273 = vector.load %arg26[%c0_152, %c0_153] : memref<3x32xf32, #tpu.memory_space<vmem>>, vector<1x32xf32>
    %274 = vector.broadcast %273 : vector<1x32xf32> to vector<8x32xf32>
    %275 = arith.addf %272, %274 : vector<8x32xf32>
    %cst_154 = arith.constant dense<0.000000e+00> : vector<8xf32>
    %276 = vector.multi_reduction <add>, %275, %cst_154 [1] : vector<8x32xf32> to vector<8xf32>
    %277 = vector.shape_cast %276 : vector<8xf32> to vector<8x1xf32>
    %cst_155 = arith.constant 3.200000e+01 : f32
    %278 = vector.broadcast %cst_155 : f32 to vector<8x1xf32>
    %279 = arith.divf %277, %278 : vector<8x1xf32>
    %280 = arith.mulf %275, %275 : vector<8x32xf32>
    %cst_156 = arith.constant dense<0.000000e+00> : vector<8xf32>
    %281 = vector.multi_reduction <add>, %280, %cst_156 [1] : vector<8x32xf32> to vector<8xf32>
    %282 = vector.shape_cast %281 : vector<8xf32> to vector<8x1xf32>
    %cst_157 = arith.constant 3.200000e+01 : f32
    %283 = vector.broadcast %cst_157 : f32 to vector<8x1xf32>
    %284 = arith.divf %282, %283 : vector<8x1xf32>
    %285 = arith.mulf %279, %279 : vector<8x1xf32>
    %286 = arith.subf %284, %285 : vector<8x1xf32>
    %cst_158 = arith.constant 0.000000e+00 : f32
    %287 = vector.broadcast %cst_158 : f32 to vector<8x1xf32>
    %288 = arith.maximumf %286, %287 : vector<8x1xf32>
    %289 = vector.broadcast %279 : vector<8x1xf32> to vector<8x32xf32>
    %290 = arith.subf %275, %289 : vector<8x32xf32>
    %cst_159 = arith.constant 9.99999974E-6 : f32
    %291 = vector.broadcast %cst_159 : f32 to vector<8x1xf32>
    %292 = arith.addf %288, %291 : vector<8x1xf32>
    %293 = math.rsqrt %292 : vector<8x1xf32>
    %294 = vector.broadcast %293 : vector<8x1xf32> to vector<8x32xf32>
    %295 = arith.mulf %290, %294 : vector<8x32xf32>
    %c1_160 = arith.constant 1 : index
    %c0_161 = arith.constant 0 : index
    %296 = vector.load %arg26[%c1_160, %c0_161] : memref<3x32xf32, #tpu.memory_space<vmem>>, vector<1x32xf32>
    %297 = vector.broadcast %296 : vector<1x32xf32> to vector<8x32xf32>
    %298 = arith.mulf %295, %297 : vector<8x32xf32>
    %c2_162 = arith.constant 2 : index
    %c0_163 = arith.constant 0 : index
    %299 = vector.load %arg26[%c2_162, %c0_163] : memref<3x32xf32, #tpu.memory_space<vmem>>, vector<1x32xf32>
    %300 = vector.broadcast %299 : vector<1x32xf32> to vector<8x32xf32>
    %301 = arith.addf %298, %300 : vector<8x32xf32>
    %cst_164 = arith.constant 0.000000e+00 : f32
    %302 = vector.broadcast %cst_164 : f32 to vector<8x32xf32>
    %303 = arith.maximumf %301, %302 : vector<8x32xf32>
    %c0_165 = arith.constant 0 : index
    %c0_166 = arith.constant 0 : index
    %304 = vector.load %arg33[%c0_165, %c0_166] : memref<8x32xf32, #tpu.memory_space<vmem>>, vector<8x32xf32>
    tpu.vector_store %arg33[%c0_165, %c0_166], %303 {strides = array<i32>} : memref<8x32xf32, #tpu.memory_space<vmem>>, vector<8x32xf32>,
    %305 = arith.subf %303, %4 : vector<8x32xf32>
    %c0_167 = arith.constant 0 : index
    %c3 = arith.constant 3 : index
    %c0_168 = arith.constant 0 : index
    %306 = vector.load %arg35[%c0_167, %c3, %c0_168] : memref<1x8x32xf32, #tpu.memory_space<vmem>>, vector<1x1x32xf32>
    %307 = vector.shape_cast %306 : vector<1x1x32xf32> to vector<1x32xf32>
    %308 = arith.mulf %305, %305 : vector<8x32xf32>
    %cst_169 = arith.constant dense<0.000000e+00> : vector<32xf32>
    %309 = vector.multi_reduction <add>, %308, %cst_169 [0] : vector<8x32xf32> to vector<32xf32>
    %310 = vector.shape_cast %309 : vector<32xf32> to vector<1x32xf32>
    %311 = arith.addf %307, %310 : vector<1x32xf32>
    %c0_170 = arith.constant 0 : index
    %c3_171 = arith.constant 3 : index
    %c0_172 = arith.constant 0 : index
    %312 = vector.load %arg35[%c0_170, %c3_171, %c0_172] : memref<1x8x32xf32, #tpu.memory_space<vmem>>, vector<1x1x32xf32>
    %313 = vector.shape_cast %312 : vector<1x1x32xf32> to vector<1x32xf32>
    %314 = vector.shape_cast %311 : vector<1x32xf32> to vector<1x1x32xf32>
    tpu.vector_store %arg35[%c0_170, %c3_171, %c0_172], %314 {strides = array<i32>} : memref<1x8x32xf32, #tpu.memory_space<vmem>>, vector<1x1x32xf32>,
    %315 = arith.truncf %3 : vector<8x32xf32> to vector<8x32xbf16>
    %316 = arith.truncf %4 : vector<8x32xf32> to vector<8x32xbf16>
    %c0_173 = arith.constant 0 : index
    %c0_174 = arith.constant 0 : index
    %317 = vector.load %arg19[%c0_173, %c0_174] : memref<32x32xbf16, #tpu.memory_space<vmem>>, vector<32x32xbf16>
    %cst_175 = arith.constant dense<0.000000e+00> : vector<8x32xf32>
    %318 = tpu.matmul %316, %317, %cst_175 {dimension_numbers = #tpu.dot_dimension_numbers<[1], [0], [0], [1], [0, 0, 1, 1], [], []>} : vector<8x32xbf16>, vector<32x32xbf16>, vector<8x32xf32> -> vector<8x32xf32>
    %c0_176 = arith.constant 0 : index
    %c0_177 = arith.constant 0 : index
    %319 = vector.load %arg20[%c0_176, %c0_177] : memref<3x32xf32, #tpu.memory_space<vmem>>, vector<1x32xf32>
    %320 = vector.broadcast %319 : vector<1x32xf32> to vector<8x32xf32>
    %321 = arith.addf %318, %320 : vector<8x32xf32>
    %cst_178 = arith.constant dense<0.000000e+00> : vector<8xf32>
    %322 = vector.multi_reduction <add>, %321, %cst_178 [1] : vector<8x32xf32> to vector<8xf32>
    %323 = vector.shape_cast %322 : vector<8xf32> to vector<8x1xf32>
    %cst_179 = arith.constant 3.200000e+01 : f32
    %324 = vector.broadcast %cst_179 : f32 to vector<8x1xf32>
    %325 = arith.divf %323, %324 : vector<8x1xf32>
    %326 = arith.mulf %321, %321 : vector<8x32xf32>
    %cst_180 = arith.constant dense<0.000000e+00> : vector<8xf32>
    %327 = vector.multi_reduction <add>, %326, %cst_180 [1] : vector<8x32xf32> to vector<8xf32>
    %328 = vector.shape_cast %327 : vector<8xf32> to vector<8x1xf32>
    %cst_181 = arith.constant 3.200000e+01 : f32
    %329 = vector.broadcast %cst_181 : f32 to vector<8x1xf32>
    %330 = arith.divf %328, %329 : vector<8x1xf32>
    %331 = arith.mulf %325, %325 : vector<8x1xf32>
    %332 = arith.subf %330, %331 : vector<8x1xf32>
    %cst_182 = arith.constant 0.000000e+00 : f32
    %333 = vector.broadcast %cst_182 : f32 to vector<8x1xf32>
    %334 = arith.maximumf %332, %333 : vector<8x1xf32>
    %335 = vector.broadcast %325 : vector<8x1xf32> to vector<8x32xf32>
    %336 = arith.subf %321, %335 : vector<8x32xf32>
    %cst_183 = arith.constant 9.99999974E-6 : f32
    %337 = vector.broadcast %cst_183 : f32 to vector<8x1xf32>
    %338 = arith.addf %334, %337 : vector<8x1xf32>
    %339 = math.rsqrt %338 : vector<8x1xf32>
    %340 = vector.broadcast %339 : vector<8x1xf32> to vector<8x32xf32>
    %341 = arith.mulf %336, %340 : vector<8x32xf32>
    %c1_184 = arith.constant 1 : index
    %c0_185 = arith.constant 0 : index
    %342 = vector.load %arg20[%c1_184, %c0_185] : memref<3x32xf32, #tpu.memory_space<vmem>>, vector<1x32xf32>
    %343 = vector.broadcast %342 : vector<1x32xf32> to vector<8x32xf32>
    %344 = arith.mulf %341, %343 : vector<8x32xf32>
    %c2_186 = arith.constant 2 : index
    %c0_187 = arith.constant 0 : index
    %345 = vector.load %arg20[%c2_186, %c0_187] : memref<3x32xf32, #tpu.memory_space<vmem>>, vector<1x32xf32>
    %346 = vector.broadcast %345 : vector<1x32xf32> to vector<8x32xf32>
    %347 = arith.addf %344, %346 : vector<8x32xf32>
    %cst_188 = arith.constant 0.000000e+00 : f32
    %348 = vector.broadcast %cst_188 : f32 to vector<8x32xf32>
    %349 = arith.maximumf %347, %348 : vector<8x32xf32>
    %350 = arith.truncf %349 : vector<8x32xf32> to vector<8x32xbf16>
    %c0_189 = arith.constant 0 : index
    %c0_190 = arith.constant 0 : index
    %351 = vector.load %arg25[%c0_189, %c0_190] : memref<32x32xbf16, #tpu.memory_space<vmem>>, vector<32x32xbf16>
    %cst_191 = arith.constant dense<0.000000e+00> : vector<8x32xf32>
    %352 = tpu.matmul %350, %351, %cst_191 {dimension_numbers = #tpu.dot_dimension_numbers<[1], [0], [0], [1], [0, 0, 1, 1], [], []>} : vector<8x32xbf16>, vector<32x32xbf16>, vector<8x32xf32> -> vector<8x32xf32>
    %c0_192 = arith.constant 0 : index
    %c0_193 = arith.constant 0 : index
    %353 = vector.load %arg14[%c0_192, %c0_193] : memref<32x16xbf16, #tpu.memory_space<vmem>>, vector<32x16xbf16>
    %cst_194 = arith.constant dense<0.000000e+00> : vector<8x16xf32>
    %354 = tpu.matmul %315, %353, %cst_194 {dimension_numbers = #tpu.dot_dimension_numbers<[1], [0], [0], [1], [0, 0, 1, 1], [], []>} : vector<8x32xbf16>, vector<32x16xbf16>, vector<8x16xf32> -> vector<8x16xf32>
    %c0_195 = arith.constant 0 : index
    %c0_196 = arith.constant 0 : index
    %355 = vector.load %arg16[%c0_195, %c0_196] : memref<3x16xf32, #tpu.memory_space<vmem>>, vector<1x16xf32>
    %356 = vector.broadcast %355 : vector<1x16xf32> to vector<8x16xf32>
    %357 = arith.addf %354, %356 : vector<8x16xf32>
    %cst_197 = arith.constant dense<0.000000e+00> : vector<8xf32>
    %358 = vector.multi_reduction <add>, %357, %cst_197 [1] : vector<8x16xf32> to vector<8xf32>
    %359 = vector.shape_cast %358 : vector<8xf32> to vector<8x1xf32>
    %cst_198 = arith.constant 1.600000e+01 : f32
    %360 = vector.broadcast %cst_198 : f32 to vector<8x1xf32>
    %361 = arith.divf %359, %360 : vector<8x1xf32>
    %362 = arith.mulf %357, %357 : vector<8x16xf32>
    %cst_199 = arith.constant dense<0.000000e+00> : vector<8xf32>
    %363 = vector.multi_reduction <add>, %362, %cst_199 [1] : vector<8x16xf32> to vector<8xf32>
    %364 = vector.shape_cast %363 : vector<8xf32> to vector<8x1xf32>
    %cst_200 = arith.constant 1.600000e+01 : f32
    %365 = vector.broadcast %cst_200 : f32 to vector<8x1xf32>
    %366 = arith.divf %364, %365 : vector<8x1xf32>
    %367 = arith.mulf %361, %361 : vector<8x1xf32>
    %368 = arith.subf %366, %367 : vector<8x1xf32>
    %cst_201 = arith.constant 0.000000e+00 : f32
    %369 = vector.broadcast %cst_201 : f32 to vector<8x1xf32>
    %370 = arith.maximumf %368, %369 : vector<8x1xf32>
    %371 = vector.broadcast %361 : vector<8x1xf32> to vector<8x16xf32>
    %372 = arith.subf %357, %371 : vector<8x16xf32>
    %cst_202 = arith.constant 9.99999974E-6 : f32
    %373 = vector.broadcast %cst_202 : f32 to vector<8x1xf32>
    %374 = arith.addf %370, %373 : vector<8x1xf32>
    %375 = math.rsqrt %374 : vector<8x1xf32>
    %376 = vector.broadcast %375 : vector<8x1xf32> to vector<8x16xf32>
    %377 = arith.mulf %372, %376 : vector<8x16xf32>
    %c1_203 = arith.constant 1 : index
    %c0_204 = arith.constant 0 : index
    %378 = vector.load %arg16[%c1_203, %c0_204] : memref<3x16xf32, #tpu.memory_space<vmem>>, vector<1x16xf32>
    %379 = vector.broadcast %378 : vector<1x16xf32> to vector<8x16xf32>
    %380 = arith.mulf %377, %379 : vector<8x16xf32>
    %c2_205 = arith.constant 2 : index
    %c0_206 = arith.constant 0 : index
    %381 = vector.load %arg16[%c2_205, %c0_206] : memref<3x16xf32, #tpu.memory_space<vmem>>, vector<1x16xf32>
    %382 = vector.broadcast %381 : vector<1x16xf32> to vector<8x16xf32>
    %383 = arith.addf %380, %382 : vector<8x16xf32>
    %cst_207 = arith.constant 0.000000e+00 : f32
    %384 = vector.broadcast %cst_207 : f32 to vector<8x16xf32>
    %385 = arith.maximumf %383, %384 : vector<8x16xf32>
    %386 = arith.truncf %385 : vector<8x16xf32> to vector<8x16xbf16>
    %c0_208 = arith.constant 0 : index
    %c0_209 = arith.constant 0 : index
    %387 = vector.load %arg24[%c0_208, %c0_209] : memref<16x32xbf16, #tpu.memory_space<vmem>>, vector<16x32xbf16>
    %cst_210 = arith.constant dense<0.000000e+00> : vector<8x32xf32>
    %388 = tpu.matmul %386, %387, %cst_210 {dimension_numbers = #tpu.dot_dimension_numbers<[1], [0], [0], [1], [0, 0, 1, 1], [], []>} : vector<8x16xbf16>, vector<16x32xbf16>, vector<8x32xf32> -> vector<8x32xf32>
    %389 = arith.addf %388, %352 : vector<8x32xf32>
    %c0_211 = arith.constant 0 : index
    %c0_212 = arith.constant 0 : index
    %390 = vector.load %arg26[%c0_211, %c0_212] : memref<3x32xf32, #tpu.memory_space<vmem>>, vector<1x32xf32>
    %391 = vector.broadcast %390 : vector<1x32xf32> to vector<8x32xf32>
    %392 = arith.addf %389, %391 : vector<8x32xf32>
    %cst_213 = arith.constant dense<0.000000e+00> : vector<8xf32>
    %393 = vector.multi_reduction <add>, %392, %cst_213 [1] : vector<8x32xf32> to vector<8xf32>
    %394 = vector.shape_cast %393 : vector<8xf32> to vector<8x1xf32>
    %cst_214 = arith.constant 3.200000e+01 : f32
    %395 = vector.broadcast %cst_214 : f32 to vector<8x1xf32>
    %396 = arith.divf %394, %395 : vector<8x1xf32>
    %397 = arith.mulf %392, %392 : vector<8x32xf32>
    %cst_215 = arith.constant dense<0.000000e+00> : vector<8xf32>
    %398 = vector.multi_reduction <add>, %397, %cst_215 [1] : vector<8x32xf32> to vector<8xf32>
    %399 = vector.shape_cast %398 : vector<8xf32> to vector<8x1xf32>
    %cst_216 = arith.constant 3.200000e+01 : f32
    %400 = vector.broadcast %cst_216 : f32 to vector<8x1xf32>
    %401 = arith.divf %399, %400 : vector<8x1xf32>
    %402 = arith.mulf %396, %396 : vector<8x1xf32>
    %403 = arith.subf %401, %402 : vector<8x1xf32>
    %cst_217 = arith.constant 0.000000e+00 : f32
    %404 = vector.broadcast %cst_217 : f32 to vector<8x1xf32>
    %405 = arith.maximumf %403, %404 : vector<8x1xf32>
    %406 = vector.broadcast %396 : vector<8x1xf32> to vector<8x32xf32>
    %407 = arith.subf %392, %406 : vector<8x32xf32>
    %cst_218 = arith.constant 9.99999974E-6 : f32
    %408 = vector.broadcast %cst_218 : f32 to vector<8x1xf32>
    %409 = arith.addf %405, %408 : vector<8x1xf32>
    %410 = math.rsqrt %409 : vector<8x1xf32>
    %411 = vector.broadcast %410 : vector<8x1xf32> to vector<8x32xf32>
    %412 = arith.mulf %407, %411 : vector<8x32xf32>
    %c1_219 = arith.constant 1 : index
    %c0_220 = arith.constant 0 : index
    %413 = vector.load %arg26[%c1_219, %c0_220] : memref<3x32xf32, #tpu.memory_space<vmem>>, vector<1x32xf32>
    %414 = vector.broadcast %413 : vector<1x32xf32> to vector<8x32xf32>
    %415 = arith.mulf %412, %414 : vector<8x32xf32>
    %c2_221 = arith.constant 2 : index
    %c0_222 = arith.constant 0 : index
    %416 = vector.load %arg26[%c2_221, %c0_222] : memref<3x32xf32, #tpu.memory_space<vmem>>, vector<1x32xf32>
    %417 = vector.broadcast %416 : vector<1x32xf32> to vector<8x32xf32>
    %418 = arith.addf %415, %417 : vector<8x32xf32>
    %cst_223 = arith.constant 0.000000e+00 : f32
    %419 = vector.broadcast %cst_223 : f32 to vector<8x32xf32>
    %420 = arith.maximumf %418, %419 : vector<8x32xf32>
    %c0_224 = arith.constant 0 : index
    %c0_225 = arith.constant 0 : index
    %c0_226 = arith.constant 0 : index
    %421 = vector.load %arg35[%c0_224, %c0_225, %c0_226] : memref<1x8x32xf32, #tpu.memory_space<vmem>>, vector<1x1x32xf32>
    %422 = vector.shape_cast %421 : vector<1x1x32xf32> to vector<1x32xf32>
    %cst_227 = arith.constant dense<0.000000e+00> : vector<32xf32>
    %423 = vector.multi_reduction <add>, %420, %cst_227 [0] : vector<8x32xf32> to vector<32xf32>
    %424 = vector.shape_cast %423 : vector<32xf32> to vector<1x32xf32>
    %425 = arith.addf %422, %424 : vector<1x32xf32>
    %c0_228 = arith.constant 0 : index
    %c0_229 = arith.constant 0 : index
    %c0_230 = arith.constant 0 : index
    %426 = vector.load %arg35[%c0_228, %c0_229, %c0_230] : memref<1x8x32xf32, #tpu.memory_space<vmem>>, vector<1x1x32xf32>
    %427 = vector.shape_cast %426 : vector<1x1x32xf32> to vector<1x32xf32>
    %428 = vector.shape_cast %425 : vector<1x32xf32> to vector<1x1x32xf32>
    tpu.vector_store %arg35[%c0_228, %c0_229, %c0_230], %428 {strides = array<i32>} : memref<1x8x32xf32, #tpu.memory_space<vmem>>, vector<1x1x32xf32>,
    %c0_231 = arith.constant 0 : index
    %c0_232 = arith.constant 0 : index
    %429 = vector.load %arg15[%c0_231, %c0_232] : memref<32x16xbf16, #tpu.memory_space<vmem>>, vector<32x16xbf16>
    %cst_233 = arith.constant dense<0.000000e+00> : vector<8x16xf32>
    %430 = tpu.matmul %316, %429, %cst_233 {dimension_numbers = #tpu.dot_dimension_numbers<[1], [0], [0], [1], [0, 0, 1, 1], [], []>} : vector<8x32xbf16>, vector<32x16xbf16>, vector<8x16xf32> -> vector<8x16xf32>
    %431 = arith.addf %354, %430 : vector<8x16xf32>
    %c0_234 = arith.constant 0 : index
    %c0_235 = arith.constant 0 : index
    %432 = vector.load %arg16[%c0_234, %c0_235] : memref<3x16xf32, #tpu.memory_space<vmem>>, vector<1x16xf32>
    %433 = vector.broadcast %432 : vector<1x16xf32> to vector<8x16xf32>
    %434 = arith.addf %431, %433 : vector<8x16xf32>
    %cst_236 = arith.constant dense<0.000000e+00> : vector<8xf32>
    %435 = vector.multi_reduction <add>, %434, %cst_236 [1] : vector<8x16xf32> to vector<8xf32>
    %436 = vector.shape_cast %435 : vector<8xf32> to vector<8x1xf32>
    %cst_237 = arith.constant 1.600000e+01 : f32
    %437 = vector.broadcast %cst_237 : f32 to vector<8x1xf32>
    %438 = arith.divf %436, %437 : vector<8x1xf32>
    %439 = arith.mulf %434, %434 : vector<8x16xf32>
    %cst_238 = arith.constant dense<0.000000e+00> : vector<8xf32>
    %440 = vector.multi_reduction <add>, %439, %cst_238 [1] : vector<8x16xf32> to vector<8xf32>
    %441 = vector.shape_cast %440 : vector<8xf32> to vector<8x1xf32>
    %cst_239 = arith.constant 1.600000e+01 : f32
    %442 = vector.broadcast %cst_239 : f32 to vector<8x1xf32>
    %443 = arith.divf %441, %442 : vector<8x1xf32>
    %444 = arith.mulf %438, %438 : vector<8x1xf32>
    %445 = arith.subf %443, %444 : vector<8x1xf32>
    %cst_240 = arith.constant 0.000000e+00 : f32
    %446 = vector.broadcast %cst_240 : f32 to vector<8x1xf32>
    %447 = arith.maximumf %445, %446 : vector<8x1xf32>
    %448 = vector.broadcast %438 : vector<8x1xf32> to vector<8x16xf32>
    %449 = arith.subf %434, %448 : vector<8x16xf32>
    %cst_241 = arith.constant 9.99999974E-6 : f32
    %450 = vector.broadcast %cst_241 : f32 to vector<8x1xf32>
    %451 = arith.addf %447, %450 : vector<8x1xf32>
    %452 = math.rsqrt %451 : vector<8x1xf32>
    %453 = vector.broadcast %452 : vector<8x1xf32> to vector<8x16xf32>
    %454 = arith.mulf %449, %453 : vector<8x16xf32>
    %c1_242 = arith.constant 1 : index
    %c0_243 = arith.constant 0 : index
    %455 = vector.load %arg16[%c1_242, %c0_243] : memref<3x16xf32, #tpu.memory_space<vmem>>, vector<1x16xf32>
    %456 = vector.broadcast %455 : vector<1x16xf32> to vector<8x16xf32>
    %457 = arith.mulf %454, %456 : vector<8x16xf32>
    %c2_244 = arith.constant 2 : index
    %c0_245 = arith.constant 0 : index
    %458 = vector.load %arg16[%c2_244, %c0_245] : memref<3x16xf32, #tpu.memory_space<vmem>>, vector<1x16xf32>
    %459 = vector.broadcast %458 : vector<1x16xf32> to vector<8x16xf32>
    %460 = arith.addf %457, %459 : vector<8x16xf32>
    %cst_246 = arith.constant 0.000000e+00 : f32
    %461 = vector.broadcast %cst_246 : f32 to vector<8x16xf32>
    %462 = arith.maximumf %460, %461 : vector<8x16xf32>
    %463 = arith.truncf %462 : vector<8x16xf32> to vector<8x16xbf16>
    %c0_247 = arith.constant 0 : index
    %c0_248 = arith.constant 0 : index
    %464 = vector.load %arg24[%c0_247, %c0_248] : memref<16x32xbf16, #tpu.memory_space<vmem>>, vector<16x32xbf16>
    %cst_249 = arith.constant dense<0.000000e+00> : vector<8x32xf32>
    %465 = tpu.matmul %463, %464, %cst_249 {dimension_numbers = #tpu.dot_dimension_numbers<[1], [0], [0], [1], [0, 0, 1, 1], [], []>} : vector<8x16xbf16>, vector<16x32xbf16>, vector<8x32xf32> -> vector<8x32xf32>
    %466 = arith.addf %465, %352 : vector<8x32xf32>
    %c0_250 = arith.constant 0 : index
    %c0_251 = arith.constant 0 : index
    %467 = vector.load %arg26[%c0_250, %c0_251] : memref<3x32xf32, #tpu.memory_space<vmem>>, vector<1x32xf32>
    %468 = vector.broadcast %467 : vector<1x32xf32> to vector<8x32xf32>
    %469 = arith.addf %466, %468 : vector<8x32xf32>
    %cst_252 = arith.constant dense<0.000000e+00> : vector<8xf32>
    %470 = vector.multi_reduction <add>, %469, %cst_252 [1] : vector<8x32xf32> to vector<8xf32>
    %471 = vector.shape_cast %470 : vector<8xf32> to vector<8x1xf32>
    %cst_253 = arith.constant 3.200000e+01 : f32
    %472 = vector.broadcast %cst_253 : f32 to vector<8x1xf32>
    %473 = arith.divf %471, %472 : vector<8x1xf32>
    %474 = arith.mulf %469, %469 : vector<8x32xf32>
    %cst_254 = arith.constant dense<0.000000e+00> : vector<8xf32>
    %475 = vector.multi_reduction <add>, %474, %cst_254 [1] : vector<8x32xf32> to vector<8xf32>
    %476 = vector.shape_cast %475 : vector<8xf32> to vector<8x1xf32>
    %cst_255 = arith.constant 3.200000e+01 : f32
    %477 = vector.broadcast %cst_255 : f32 to vector<8x1xf32>
    %478 = arith.divf %476, %477 : vector<8x1xf32>
    %479 = arith.mulf %473, %473 : vector<8x1xf32>
    %480 = arith.subf %478, %479 : vector<8x1xf32>
    %cst_256 = arith.constant 0.000000e+00 : f32
    %481 = vector.broadcast %cst_256 : f32 to vector<8x1xf32>
    %482 = arith.maximumf %480, %481 : vector<8x1xf32>
    %483 = vector.broadcast %473 : vector<8x1xf32> to vector<8x32xf32>
    %484 = arith.subf %469, %483 : vector<8x32xf32>
    %cst_257 = arith.constant 9.99999974E-6 : f32
    %485 = vector.broadcast %cst_257 : f32 to vector<8x1xf32>
    %486 = arith.addf %482, %485 : vector<8x1xf32>
    %487 = math.rsqrt %486 : vector<8x1xf32>
    %488 = vector.broadcast %487 : vector<8x1xf32> to vector<8x32xf32>
    %489 = arith.mulf %484, %488 : vector<8x32xf32>
    %c1_258 = arith.constant 1 : index
    %c0_259 = arith.constant 0 : index
    %490 = vector.load %arg26[%c1_258, %c0_259] : memref<3x32xf32, #tpu.memory_space<vmem>>, vector<1x32xf32>
    %491 = vector.broadcast %490 : vector<1x32xf32> to vector<8x32xf32>
    %492 = arith.mulf %489, %491 : vector<8x32xf32>
    %c2_260 = arith.constant 2 : index
    %c0_261 = arith.constant 0 : index
    %493 = vector.load %arg26[%c2_260, %c0_261] : memref<3x32xf32, #tpu.memory_space<vmem>>, vector<1x32xf32>
    %494 = vector.broadcast %493 : vector<1x32xf32> to vector<8x32xf32>
    %495 = arith.addf %492, %494 : vector<8x32xf32>
    %cst_262 = arith.constant 0.000000e+00 : f32
    %496 = vector.broadcast %cst_262 : f32 to vector<8x32xf32>
    %497 = arith.maximumf %495, %496 : vector<8x32xf32>
    %c0_263 = arith.constant 0 : index
    %c1_264 = arith.constant 1 : index
    %c0_265 = arith.constant 0 : index
    %498 = vector.load %arg35[%c0_263, %c1_264, %c0_265] : memref<1x8x32xf32, #tpu.memory_space<vmem>>, vector<1x1x32xf32>
    %499 = vector.shape_cast %498 : vector<1x1x32xf32> to vector<1x32xf32>
    %cst_266 = arith.constant dense<0.000000e+00> : vector<32xf32>
    %500 = vector.multi_reduction <add>, %497, %cst_266 [0] : vector<8x32xf32> to vector<32xf32>
    %501 = vector.shape_cast %500 : vector<32xf32> to vector<1x32xf32>
    %502 = arith.addf %499, %501 : vector<1x32xf32>
    %c0_267 = arith.constant 0 : index
    %c1_268 = arith.constant 1 : index
    %c0_269 = arith.constant 0 : index
    %503 = vector.load %arg35[%c0_267, %c1_268, %c0_269] : memref<1x8x32xf32, #tpu.memory_space<vmem>>, vector<1x1x32xf32>
    %504 = vector.shape_cast %503 : vector<1x1x32xf32> to vector<1x32xf32>
    %505 = vector.shape_cast %502 : vector<1x32xf32> to vector<1x1x32xf32>
    tpu.vector_store %arg35[%c0_267, %c1_268, %c0_269], %505 {strides = array<i32>} : memref<1x8x32xf32, #tpu.memory_space<vmem>>, vector<1x1x32xf32>,
    return
  }
  func.func @transform_0(%arg0: i32, %arg1: i32) -> (i32, i32) {
    %c1_i32 = arith.constant 1 : i32
    %0 = arith.muli %arg0, %c1_i32 : i32
    %1 = arith.addi %0, %arg1 : i32
    %c0_i32 = arith.constant 0 : i32
    %c0_i32_0 = arith.constant 0 : i32
    return %1, %c0_i32 : i32, i32
  }
  func.func @transform_1(%arg0: i32, %arg1: i32) -> (i32, i32) {
    %c1_i32 = arith.constant 1 : i32
    %0 = arith.muli %arg0, %c1_i32 : i32
    %1 = arith.addi %0, %arg1 : i32
    %c0_i32 = arith.constant 0 : i32
    %c0_i32_0 = arith.constant 0 : i32
    return %1, %c0_i32 : i32, i32
  }
  func.func @transform_2(%arg0: i32, %arg1: i32) -> (i32, i32) {
    %c1_i32 = arith.constant 1 : i32
    %0 = arith.muli %arg0, %c1_i32 : i32
    %1 = arith.addi %0, %arg1 : i32
    %c0_i32 = arith.constant 0 : i32
    %c0_i32_0 = arith.constant 0 : i32
    return %1, %c0_i32 : i32, i32
  }
  func.func @transform_3(%arg0: i32, %arg1: i32) -> (i32, i32) {
    %c1_i32 = arith.constant 1 : i32
    %0 = arith.muli %arg0, %c1_i32 : i32
    %1 = arith.addi %0, %arg1 : i32
    %c0_i32 = arith.constant 0 : i32
    %c0_i32_0 = arith.constant 0 : i32
    return %1, %c0_i32 : i32, i32
  }
  func.func @transform_4(%arg0: i32, %arg1: i32) -> (i32, i32) {
    %c0_i32 = arith.constant 0 : i32
    %c0_i32_0 = arith.constant 0 : i32
    %c0_i32_1 = arith.constant 0 : i32
    return %c0_i32, %c0_i32_0 : i32, i32
  }
  func.func @transform_5(%arg0: i32, %arg1: i32) -> (i32, i32) {
    %c0_i32 = arith.constant 0 : i32
    %c0_i32_0 = arith.constant 0 : i32
    %c0_i32_1 = arith.constant 0 : i32
    return %c0_i32, %c0_i32_0 : i32, i32
  }
  func.func @transform_6(%arg0: i32, %arg1: i32) -> (i32, i32) {
    %c0_i32 = arith.constant 0 : i32
    %c0_i32_0 = arith.constant 0 : i32
    %c0_i32_1 = arith.constant 0 : i32
    return %c0_i32, %c0_i32_0 : i32, i32
  }
  func.func @transform_7(%arg0: i32, %arg1: i32) -> (i32, i32) {
    %c0_i32 = arith.constant 0 : i32
    %c0_i32_0 = arith.constant 0 : i32
    %c0_i32_1 = arith.constant 0 : i32
    return %c0_i32, %c0_i32_0 : i32, i32
  }
  func.func @transform_8(%arg0: i32, %arg1: i32) -> (i32, i32) {
    %c0_i32 = arith.constant 0 : i32
    %c0_i32_0 = arith.constant 0 : i32
    %c0_i32_1 = arith.constant 0 : i32
    return %c0_i32, %c0_i32_0 : i32, i32
  }
  func.func @transform_9(%arg0: i32, %arg1: i32) -> (i32, i32) {
    %c0_i32 = arith.constant 0 : i32
    %c0_i32_0 = arith.constant 0 : i32
    %c0_i32_1 = arith.constant 0 : i32
    return %c0_i32, %c0_i32_0 : i32, i32
  }
  func.func @transform_10(%arg0: i32, %arg1: i32) -> (i32, i32) {
    %c0_i32 = arith.constant 0 : i32
    %c0_i32_0 = arith.constant 0 : i32
    %c0_i32_1 = arith.constant 0 : i32
    return %c0_i32, %c0_i32_0 : i32, i32
  }
  func.func @transform_11(%arg0: i32, %arg1: i32) -> (i32, i32) {
    %c0_i32 = arith.constant 0 : i32
    %c0_i32_0 = arith.constant 0 : i32
    %c0_i32_1 = arith.constant 0 : i32
    return %c0_i32, %c0_i32_0 : i32, i32
  }
  func.func @transform_12(%arg0: i32, %arg1: i32) -> (i32, i32) {
    %c0_i32 = arith.constant 0 : i32
    %c0_i32_0 = arith.constant 0 : i32
    %c0_i32_1 = arith.constant 0 : i32
    return %c0_i32, %c0_i32_0 : i32, i32
  }
  func.func @transform_13(%arg0: i32, %arg1: i32) -> (i32, i32) {
    %c0_i32 = arith.constant 0 : i32
    %c0_i32_0 = arith.constant 0 : i32
    %c0_i32_1 = arith.constant 0 : i32
    return %c0_i32, %c0_i32_0 : i32, i32
  }
  func.func @transform_14(%arg0: i32, %arg1: i32) -> (i32, i32) {
    %c0_i32 = arith.constant 0 : i32
    %c0_i32_0 = arith.constant 0 : i32
    %c0_i32_1 = arith.constant 0 : i32
    return %c0_i32, %c0_i32_0 : i32, i32
  }
  func.func @transform_15(%arg0: i32, %arg1: i32) -> (i32, i32) {
    %c0_i32 = arith.constant 0 : i32
    %c0_i32_0 = arith.constant 0 : i32
    %c0_i32_1 = arith.constant 0 : i32
    return %c0_i32, %c0_i32_0 : i32, i32
  }
  func.func @transform_16(%arg0: i32, %arg1: i32) -> (i32, i32) {
    %c0_i32 = arith.constant 0 : i32
    %c0_i32_0 = arith.constant 0 : i32
    %c0_i32_1 = arith.constant 0 : i32
    return %c0_i32, %c0_i32_0 : i32, i32
  }
  func.func @transform_17(%arg0: i32, %arg1: i32) -> (i32, i32) {
    %c0_i32 = arith.constant 0 : i32
    %c0_i32_0 = arith.constant 0 : i32
    %c0_i32_1 = arith.constant 0 : i32
    return %c0_i32, %c0_i32_0 : i32, i32
  }
  func.func @transform_18(%arg0: i32, %arg1: i32) -> (i32, i32) {
    %c0_i32 = arith.constant 0 : i32
    %c0_i32_0 = arith.constant 0 : i32
    %c0_i32_1 = arith.constant 0 : i32
    return %c0_i32, %c0_i32_0 : i32, i32
  }
  func.func @transform_19(%arg0: i32, %arg1: i32) -> (i32, i32) {
    %c0_i32 = arith.constant 0 : i32
    %c0_i32_0 = arith.constant 0 : i32
    %c0_i32_1 = arith.constant 0 : i32
    return %c0_i32, %c0_i32_0 : i32, i32
  }
  func.func @transform_20(%arg0: i32, %arg1: i32) -> (i32, i32) {
    %c0_i32 = arith.constant 0 : i32
    %c0_i32_0 = arith.constant 0 : i32
    %c0_i32_1 = arith.constant 0 : i32
    return %c0_i32, %c0_i32_0 : i32, i32
  }
  func.func @transform_21(%arg0: i32, %arg1: i32) -> (i32, i32) {
    %c0_i32 = arith.constant 0 : i32
    %c0_i32_0 = arith.constant 0 : i32
    %c0_i32_1 = arith.constant 0 : i32
    return %c0_i32, %c0_i32_0 : i32, i32
  }
  func.func @transform_22(%arg0: i32, %arg1: i32) -> (i32, i32) {
    %c0_i32 = arith.constant 0 : i32
    %c0_i32_0 = arith.constant 0 : i32
    %c0_i32_1 = arith.constant 0 : i32
    return %c0_i32, %c0_i32_0 : i32, i32
  }
  func.func @transform_23(%arg0: i32, %arg1: i32) -> (i32, i32) {
    %c0_i32 = arith.constant 0 : i32
    %c0_i32_0 = arith.constant 0 : i32
    %c0_i32_1 = arith.constant 0 : i32
    return %c0_i32, %c0_i32_0 : i32, i32
  }
  func.func @transform_24(%arg0: i32, %arg1: i32) -> (i32, i32) {
    %c0_i32 = arith.constant 0 : i32
    %c0_i32_0 = arith.constant 0 : i32
    %c0_i32_1 = arith.constant 0 : i32
    return %c0_i32, %c0_i32_0 : i32, i32
  }
  func.func @transform_25(%arg0: i32, %arg1: i32) -> (i32, i32) {
    %c0_i32 = arith.constant 0 : i32
    %c0_i32_0 = arith.constant 0 : i32
    %c0_i32_1 = arith.constant 0 : i32
    return %c0_i32, %c0_i32_0 : i32, i32
  }
  func.func @transform_26(%arg0: i32, %arg1: i32) -> (i32, i32) {
    %c0_i32 = arith.constant 0 : i32
    %c0_i32_0 = arith.constant 0 : i32
    %c0_i32_1 = arith.constant 0 : i32
    return %c0_i32, %c0_i32_0 : i32, i32
  }
  func.func @transform_27(%arg0: i32, %arg1: i32) -> (i32, i32) {
    %c1_i32 = arith.constant 1 : i32
    %0 = arith.muli %arg0, %c1_i32 : i32
    %1 = arith.addi %0, %arg1 : i32
    %c0_i32 = arith.constant 0 : i32
    %c0_i32_0 = arith.constant 0 : i32
    return %1, %c0_i32 : i32, i32
  }
  func.func @transform_28(%arg0: i32, %arg1: i32) -> (i32, i32) {
    %c1_i32 = arith.constant 1 : i32
    %0 = arith.muli %arg0, %c1_i32 : i32
    %1 = arith.addi %0, %arg1 : i32
    %c0_i32 = arith.constant 0 : i32
    %c0_i32_0 = arith.constant 0 : i32
    return %1, %c0_i32 : i32, i32
  }
  func.func @transform_29(%arg0: i32, %arg1: i32) -> (i32, i32) {
    %c1_i32 = arith.constant 1 : i32
    %0 = arith.muli %arg0, %c1_i32 : i32
    %1 = arith.addi %0, %arg1 : i32
    %c0_i32 = arith.constant 0 : i32
    %c0_i32_0 = arith.constant 0 : i32
    return %1, %c0_i32 : i32, i32
  }
  func.func @transform_30(%arg0: i32, %arg1: i32) -> (i32, i32) {
    %c1_i32 = arith.constant 1 : i32
    %0 = arith.muli %arg0, %c1_i32 : i32
    %1 = arith.addi %0, %arg1 : i32
    %c0_i32 = arith.constant 0 : i32
    %c0_i32_0 = arith.constant 0 : i32
    return %1, %c0_i32 : i32, i32
  }
  func.func @transform_31(%arg0: i32, %arg1: i32) -> (i32, i32) {
    %c1_i32 = arith.constant 1 : i32
    %0 = arith.muli %arg0, %c1_i32 : i32
    %1 = arith.addi %0, %arg1 : i32
    %c0_i32 = arith.constant 0 : i32
    %c0_i32_0 = arith.constant 0 : i32
    return %1, %c0_i32 : i32, i32
  }
  func.func @transform_32(%arg0: i32, %arg1: i32) -> (i32, i32) {
    %c1_i32 = arith.constant 1 : i32
    %0 = arith.muli %arg0, %c1_i32 : i32
    %1 = arith.addi %0, %arg1 : i32
    %c0_i32 = arith.constant 0 : i32
    %c0_i32_0 = arith.constant 0 : i32
    return %1, %c0_i32 : i32, i32
  }
  func.func @transform_33(%arg0: i32, %arg1: i32) -> (i32, i32, i32) {
    %c0_i32 = arith.constant 0 : i32
    %c0_i32_0 = arith.constant 0 : i32
    %c0_i32_1 = arith.constant 0 : i32
    return %arg0, %c0_i32, %c0_i32_0 : i32, i32, i32
  }
}

</mosaic_0001>

<bundles_post_ra>
// kernel: tpu_custom_call.1
= control target key start
LH: loop header
LB: loop body
LE: loop exit
PB: predicated region body
PF: predicated region fallthrough
CT: control target
= control target key end

     0   :  { %s2918_s6 = smov 1   ;;  %s2919_s10 = smov 2   ;;  %s3523_s0 = inlined_call_operand.smem [shape: u32[34], index: -1, kind: input, shape index: {}] }
   0x1   :  { %s2983_s5 = sld [smem:[%s3523_s0]]   ;;  %s2920_s14 = smov 3  }
   0x2   :  { %s2988_s9 = sld [smem:[%s3523_s0 + %s2918_s6]]   ;;  %s2921_s18 = smov 4  }
   0x3   :  { %s2993_s13 = sld [smem:[%s3523_s0 + %s2919_s10]]   ;;  %s2922_s22 = smov 5  }
   0x4   :  { %s2998_s17 = sld [smem:[%s3523_s0 + %s2920_s14]]   ;;  %s2923_s26 = smov 6  }
   0x5   :  { %s3003_s21 = sld [smem:[%s3523_s0 + %s2921_s18]]   ;;  %s2924_s30 = smov 7  }
   0x6   :  { %s3008_s25 = sld [smem:[%s3523_s0 + %s2922_s22]]   ;;  %s2925_s4 = smov 8  }
   0x7   :  { %s3013_s29 = sld [smem:[%s3523_s0 + %s2923_s26]]   ;;  %s2926_s10 = smov 9  }
   0x8   :  { %s3018_s3 = sld [smem:[%s3523_s0 + %s2924_s30]]   ;;  %s2927_s15 = smov 10  }
   0x9   :  { %s3023_s8 = sld [smem:[%s3523_s0 + %s2925_s4]]   ;;  %s2928_s20 = smov 11  }
   0xa   :  { %s3028_s14 = sld [smem:[%s3523_s0 + %s2926_s10]]   ;;  %s2929_s26 = smov 12  }
   0xb   :  { %3538 = sst [smem:[#allocation47_spill]] %s3003_s21  ;;  %s2930_s1 = smov 13  }
   0xc   :  { %s3033_s19 = sld [smem:[%s3523_s0 + %s2927_s15]]   ;;  %s2931_s7 = smov 14  }
   0xd   :  { %3539 = sst [smem:[#allocation48_spill]] %s3013_s29  ;;  %s2932_s15 = smov 15  }
   0xe   :  { %s3038_s24 = sld [smem:[%s3523_s0 + %s2928_s20]]   ;;  %s2933_s22 = smov 16  }
   0xf   :  { %3540 = sst [smem:[#allocation49_spill]] %s3023_s8  ;;  %s2934_s28 = smov 17  }
  0x10   :  { %s3043_s30 = sld [smem:[%s3523_s0 + %s2929_s26]]   ;;  %s2944_s16 = smov 27  }
  0x11   :  { %s3048_s6 = sld [smem:[%s3523_s0 + %s2930_s1]]   ;;  %s2945_s23 = smov 28  }
  0x12   :  { %3541 = sst [smem:[#allocation50_spill]] %s3033_s19  ;;  %s2946_s1 = smov 29  }
  0x13   :  { %s3053_s12 = sld [smem:[%s3523_s0 + %s2931_s7]]   ;;  %s2935_s7 = smov 18  }
  0x14   :  { %s3058_s20 = sld [smem:[%s3523_s0 + %s2932_s15]]   ;;  %s2936_s15 = smov 19  }
  0x15   :  { %s3063_s27 = sld [smem:[%s3523_s0 + %s2933_s22]]   ;;  %s2937_s22 = smov 20  }
  0x16   :  { %3542 = sst [smem:[#allocation51_spill]] %s3043_s30  ;;  %s2947_s10 = smov 30  }
  0x17   :  { %3543 = sst [smem:[#allocation52_spill]] %s3048_s6 }
  0x18   :  { %s3068_s4 = sld [smem:[%s3523_s0 + %s2934_s28]]   ;;  %s2938_s28 = smov 21  }
  0x19   :  { %s3073_s6 = sld [smem:[%s3523_s0 + %s2935_s7]]   ;;  %s2939_s7 = smov 22  }
  0x1a   :  { %3544 = sst [smem:[#allocation53_spill]] %s3058_s20 }
  0x1b   :  { %s3078_s20 = sld [smem:[%s3523_s0 + %s2936_s15]]   ;;  %s2940_s15 = smov 23  }
  0x1c   :  { %s3083_s30 = sld [smem:[%s3523_s0 + %s2937_s22]]   ;;  %s2941_s22 = smov 24  }
  0x1d   :  { %s3093_s19 = sld [smem:[%s3523_s0 + %s2939_s7]]   ;;  %s2943_s7 = smov 26  }
  0x1e   :  { %3545 = sst [smem:[#allocation54_spill]] %s3068_s4 }
  0x1f   :  { %s3088_s4 = sld [smem:[%s3523_s0 + %s2938_s28]]   ;;  %s2942_s28 = smov 25  }
  0x20   :  { %s3098_s29 = sld [smem:[%s3523_s0 + %s2940_s15]]  }
  0x21   :  { %s3108_s8 = sld [smem:[%s3523_s0 + %s2942_s28]]  }
  0x22   :  { %3546 = sst [smem:[#allocation55_spill]] %s3083_s30 }
  0x23   :  { %3547 = sst [smem:[#allocation56_spill]] %s3093_s19 }
  0x24   :  { %s3103_s30 = sld [smem:[%s3523_s0 + %s2941_s22]]  }
  0x25   :  { %s2052_s21 = sld [smem:[%s3523_s0 + %s2943_s7]]  }
  0x26   :  { %3548 = sst [smem:[#allocation57_spill]] %s3098_s29 }
  0x27   :  { %3550 = sst [smem:[#allocation59_spill]] %s3108_s8 }
  0x28   :  { %s3116_s29 = sld [smem:[%s3523_s0 + %s2944_s16]]   ;;  %s2948_s16 = smov 31  }
  0x29   :  { %s3126_s8 = sld [smem:[%s3523_s0 + %s2946_s1]]   ;;  %s2950_s1 = smov 33  }
  0x2a   :  { %3549 = sst [smem:[#allocation58_spill]] %s3103_s30 }
  0x2b   :  { %s3121_s30 = sld [smem:[%s3523_s0 + %s2945_s23]]   ;;  %s2949_s23 = smov 32   ;;  %v73_v0 = vstv %s2052_s21 }
  0x2c   :  { %s3131_s19 = sld [smem:[%s3523_s0 + %s2947_s10]]   ;;  %74 = vst [vmem:[#allocation2] sm:$0x1] %v73_v0 }
  0x2d   :  { %s3146_s7 = sld [smem:[%s3523_s0 + %s2950_s1]]  }
  0x2e   :  { %3551 = sst [smem:[#allocation60_spill]] %s3116_s29 }
  0x2f   :  { %s3136_s29 = sld [smem:[%s3523_s0 + %s2948_s16]]  }
  0x31   :  { %3552 = sst [smem:[#allocation61_spill]] %s3121_s30 }
  0x32   :  { %s3141_s30 = sld [smem:[%s3523_s0 + %s2949_s23]]  }
  0x33   :  { %75 = vsyncpa [#allocation4], 0 }
  0x34   :  { %76 = vsyncpa [#allocation7], 0 }
  0x35   :  { %77 = vsyncpa [#allocation10], 0 }
  0x36   :  { %78 = vsyncpa [#allocation13], 0 }
  0x37   :  { %79 = vsyncpa [#allocation16], 0 }
  0x38   :  { %80 = vsyncpa [#allocation19], 0 }
  0x39   :  { %81 = vsyncpa [#allocation22], 0 }
  0x3a   :  { %82 = vsyncpa [#allocation25], 0 }
  0x3b   :  { %83 = vsyncpa [#allocation5], 0 }
  0x3c   :  { %84 = vsyncpa [#allocation28], 0 }
  0x3d   :  { %85 = vsyncpa [#allocation31], 0 }
  0x3e   :  { %86 = vsyncpa [#allocation34], 0  ;;  %s2951_s21 = smov [#allocation6]   ;;  %s2952_s0 = smov [#allocation9]  }
  0x3f   :  { %s109_s10 = sshll.u32 %s2951_s21, 4  ;;  %s135_s11 = sshll.u32 %s2952_s0, 4  ;;  %s110_s10 = int_to_ptr.vmem [resolvable:$true] %s109_s10  ;;  %s136_s11 = int_to_ptr.vmem [resolvable:$true] %s135_s11 }
  0x40   :  { %s2454_s16 = scalar_lea.hbm %s2988_s9, 128 }
  0x41   :  { %p2455_p0 = scmp.ne.s32.totalorder %s2988_s9, %s2454_s16  ;;  %p2458_p1 = scmp.lt.u32.totalorder %s2454_s16, %s2988_s9 }
  0x43   :  { %p2460_p2 = pnand %p2458_p1, %p2455_p0 }
  0x45   :  { %2463 = shalt.err (!%p2460_p2)
}
  0x46   :  { %s2464_s15 = scalar_lea.vmem %s110_s10, 128  ;;  %p2469_p4 = scmp.lt.s32.totalorder %s110_s10, %s110_s10 }
  0x47   :  { %p2465_p3 = scmp.ne.s32.totalorder %s110_s10, %s2464_s15  ;;  %p2470_p5 = scmp.lt.s32.totalorder %s2464_s15, %s2464_s15 }
  0x49   :  { %p2471_p6 = por %p2470_p5, %p2469_p4 }
  0x4b   :  { %p2472_p7 = pnand %p2471_p6, %p2465_p3 }
  0x4d   :  { %2475 = shalt.err (!%p2472_p7)
}
  0x4e   :  { %112 = dma.hbm_to_vmem [thread:$0]  %s2988_s9, 128, %s110_s10, [#allocation7]  }
  0x4f   :  { %s2476_s18 = scalar_lea.hbm %s2998_s17, 64 }
  0x50   :  { %p2477_p8 = scmp.ne.s32.totalorder %s2998_s17, %s2476_s18  ;;  %p2480_p9 = scmp.lt.u32.totalorder %s2476_s18, %s2998_s17 }
  0x52   :  { %p2482_p10 = pnand %p2480_p9, %p2477_p8 }
  0x54   :  { %2485 = shalt.err (!%p2482_p10)
}
  0x55   :  { %s2486_s23 = scalar_lea.vmem %s136_s11, 64  ;;  %p2491_p12 = scmp.lt.s32.totalorder %s136_s11, %s136_s11 }
  0x56   :  { %p2487_p11 = scmp.ne.s32.totalorder %s136_s11, %s2486_s23  ;;  %p2492_p13 = scmp.lt.s32.totalorder %s2486_s23, %s2486_s23 }
  0x58   :  { %p2493_p0 = por %p2492_p13, %p2491_p12 }
  0x5a   :  { %p2494_p1 = pnand %p2493_p0, %p2487_p11 }
  0x5c   :  { %2497 = shalt.err (!%p2494_p1)
}
  0x5d   :  { %138 = dma.hbm_to_vmem [thread:$0]  %s2998_s17, 64, %s136_s11, [#allocation10]  }
  0x5e   :  { %s2953_s22 = smov [#allocation12]   ;;  %s2954_s9 = smov [#allocation15]  }
  0x5f   :  { %s159_s26 = sshll.u32 %s2953_s22, 4  ;;  %s183_s1 = sshll.u32 %s2954_s9, 4  ;;  %s160_s26 = int_to_ptr.vmem [resolvable:$true] %s159_s26  ;;  %s184_s1 = int_to_ptr.vmem [resolvable:$true] %s183_s1 }
  0x60   :  { %s2498_s28 = scalar_lea.hbm %s3018_s3, 16 }
  0x61   :  { %p2499_p2 = scmp.ne.s32.totalorder %s3018_s3, %s2498_s28  ;;  %p2502_p3 = scmp.lt.u32.totalorder %s2498_s28, %s3018_s3 }
  0x63   :  { %p2504_p4 = pnand %p2502_p3, %p2499_p2 }
  0x65   :  { %2507 = shalt.err (!%p2504_p4)
}
  0x66   :  { %s2508_s2 = scalar_lea.vmem %s160_s26, 16  ;;  %s2512_s21 = scalar_lea.vmem %s160_s26, 32 }
  0x67   :  { %p2509_p5 = scmp.ne.s32.totalorder %s160_s26, %s2508_s2  ;;  %p2513_p6 = scmp.lt.s32.totalorder %s160_s26, %s160_s26 }
  0x68   :  { %p2514_p7 = scmp.lt.s32.totalorder %s2512_s21, %s2508_s2 }
  0x6a   :  { %p2515_p8 = por %p2514_p7, %p2513_p6 }
  0x6c   :  { %p2516_p9 = pnand %p2515_p8, %p2509_p5 }
  0x6e   :  { %2519 = shalt.err (!%p2516_p9)
}
  0x6f   :  { %162 = dma.hbm_to_vmem [thread:$0]  %s3018_s3, 16, %s160_s26, [#allocation13]  }
  0x70   :  { %s2520_s17 = scalar_lea.hbm %s3038_s24, 16 }
  0x71   :  { %p2521_p10 = scmp.ne.s32.totalorder %s3038_s24, %s2520_s17  ;;  %p2524_p11 = scmp.lt.u32.totalorder %s2520_s17, %s3038_s24 }
  0x73   :  { %p2526_p12 = pnand %p2524_p11, %p2521_p10 }
  0x75   :  { %2529 = shalt.err (!%p2526_p12)
}
  0x76   :  { %s2530_s10 = scalar_lea.vmem %s184_s1, 16  ;;  %s2534_s0 = scalar_lea.vmem %s184_s1, 32 }
  0x77   :  { %p2531_p13 = scmp.ne.s32.totalorder %s184_s1, %s2530_s10  ;;  %p2535_p0 = scmp.lt.s32.totalorder %s184_s1, %s184_s1 }
  0x78   :  { %p2536_p1 = scmp.lt.s32.totalorder %s2534_s0, %s2530_s10 }
  0x7a   :  { %p2537_p2 = por %p2536_p1, %p2535_p0 }
  0x7c   :  { %p2538_p3 = pnand %p2537_p2, %p2531_p13 }
  0x7e   :  { %2541 = shalt.err (!%p2538_p3)
}
  0x7f   :  { %186 = dma.hbm_to_vmem [thread:$0]  %s3038_s24, 16, %s184_s1, [#allocation16]  }
  0x80   :  { %s2955_s11 = smov [#allocation18]   ;;  %s2956_s16 = smov [#allocation21]  }
  0x81   :  { %s209_s3 = sshll.u32 %s2955_s11, 4  ;;  %s230_s15 = sshll.u32 %s2956_s16, 4  ;;  %s210_s3 = int_to_ptr.vmem [resolvable:$true] %s209_s3  ;;  %s3164_s15 = int_to_ptr.vmem [resolvable:$true] %s230_s15 }
  0x82   :  { %s2542_s18 = scalar_lea.hbm %s3063_s27, 64 }
  0x83   :  { %p2543_p4 = scmp.ne.s32.totalorder %s3063_s27, %s2542_s18  ;;  %p2546_p5 = scmp.lt.u32.totalorder %s2542_s18, %s3063_s27 }
  0x85   :  { %p2548_p6 = pnand %p2546_p5, %p2543_p4 }
  0x87   :  { %2551 = shalt.err (!%p2548_p6)
}
  0x88   :  { %s2552_s23 = scalar_lea.vmem %s210_s3, 64  ;;  %p2557_p8 = scmp.lt.s32.totalorder %s210_s3, %s210_s3 }
  0x89   :  { %p2553_p7 = scmp.ne.s32.totalorder %s210_s3, %s2552_s23  ;;  %p2558_p9 = scmp.lt.s32.totalorder %s2552_s23, %s2552_s23 }
  0x8b   :  { %p2559_p10 = por %p2558_p9, %p2557_p8 }
  0x8d   :  { %p2560_p11 = pnand %p2559_p10, %p2553_p7 }
  0x8f   :  { %2563 = shalt.err (!%p2560_p11)
}
  0x90   :  { %212 = dma.hbm_to_vmem [thread:$0]  %s3063_s27, 64, %s210_s3, [#allocation19]  }
  0x91   :  { %s2564_s24 = scalar_lea.hbm %s3078_s20, 128 }
  0x92   :  { %p2565_p12 = scmp.ne.s32.totalorder %s3078_s20, %s2564_s24  ;;  %p2568_p13 = scmp.lt.u32.totalorder %s2564_s24, %s3078_s20 }
  0x94   :  { %p2570_p0 = pnand %p2568_p13, %p2565_p12 }
  0x96   :  { %2573 = shalt.err (!%p2570_p0)
}
  0x97   :  { %s2574_s22 = scalar_lea.vmem %s3164_s15, 128  ;;  %p2579_p2 = scmp.lt.s32.totalorder %s3164_s15, %s3164_s15 }
  0x98   :  { %p2575_p1 = scmp.ne.s32.totalorder %s3164_s15, %s2574_s22  ;;  %p2580_p3 = scmp.lt.s32.totalorder %s2574_s22, %s2574_s22 }
  0x9a   :  { %p2581_p4 = por %p2580_p3, %p2579_p2 }
  0x9c   :  { %p2582_p5 = pnand %p2581_p4, %p2575_p1 }
  0x9e   :  { %2585 = shalt.err (!%p2582_p5)
}
  0x9f   :  { %s2957_s26 = smov 64   ;;  %s2958_s27 = smov 4  }
  0xa0   :  { %236 = dma.hbm_to_vmem [thread:$0]  %s3078_s20, 128, %s3164_s15, [#allocation22], %s2957_s26, %s2957_s26, %s2958_s27  }
  0xa1   :  { %s2959_s9 = smov [#allocation3]   ;;  %s2960_s28 = smov [#allocation8]  }
  0xa2   :  { %s96_s1 = sshll.u32 %s2959_s9, 4  ;;  %s122_s2 = sshll.u32 %s2960_s28, 4  ;;  %s97_s1 = int_to_ptr.vmem [resolvable:$true] %s96_s1  ;;  %s123_s2 = int_to_ptr.vmem [resolvable:$true] %s122_s2 }
  0xa3   :  { %s2586_s21 = scalar_lea.hbm %s2983_s5, 128 }
  0xa4   :  { %p2587_p6 = scmp.ne.s32.totalorder %s2983_s5, %s2586_s21  ;;  %p2590_p7 = scmp.lt.u32.totalorder %s2586_s21, %s2983_s5 }
  0xa6   :  { %p2592_p8 = pnand %p2590_p7, %p2587_p6 }
  0xa8   :  { %2595 = shalt.err (!%p2592_p8)
}
  0xa9   :  { %s2596_s17 = scalar_lea.vmem %s97_s1, 128  ;;  %p2601_p10 = scmp.lt.s32.totalorder %s97_s1, %s97_s1 }
  0xaa   :  { %p2597_p9 = scmp.ne.s32.totalorder %s97_s1, %s2596_s17  ;;  %p2602_p11 = scmp.lt.s32.totalorder %s2596_s17, %s2596_s17 }
  0xac   :  { %p2603_p12 = por %p2602_p11, %p2601_p10 }
  0xae   :  { %p2604_p13 = pnand %p2603_p12, %p2597_p9 }
  0xb0   :  { %2607 = shalt.err (!%p2604_p13)
}
  0xb1   :  { %99 = dma.hbm_to_vmem [thread:$0]  %s2983_s5, 128, %s97_s1, [#allocation4]  }
  0xb2   :  { %s2608_s20 = scalar_lea.hbm %s2993_s13, 64 }
  0xb3   :  { %p2609_p0 = scmp.ne.s32.totalorder %s2993_s13, %s2608_s20  ;;  %p2612_p1 = scmp.lt.u32.totalorder %s2608_s20, %s2993_s13 }
  0xb5   :  { %p2614_p2 = pnand %p2612_p1, %p2609_p0 }
  0xb7   :  { %2617 = shalt.err (!%p2614_p2)
}
  0xb8   :  { %s2618_s10 = scalar_lea.vmem %s123_s2, 64  ;;  %p2623_p4 = scmp.lt.s32.totalorder %s123_s2, %s123_s2 }
  0xb9   :  { %p2619_p3 = scmp.ne.s32.totalorder %s123_s2, %s2618_s10  ;;  %p2624_p5 = scmp.lt.s32.totalorder %s2618_s10, %s2618_s10 }
  0xbb   :  { %p2625_p6 = por %p2624_p5, %p2623_p4 }
  0xbd   :  { %p2626_p7 = pnand %p2625_p6, %p2619_p3 }
  0xbf   :  { %2629 = shalt.err (!%p2626_p7)
}
  0xc0   :  { %125 = dma.hbm_to_vmem [thread:$0]  %s2993_s13, 64, %s123_s2, [#allocation7]  }
  0xc1   :  { %s2961_s0 = smov [#allocation11]   ;;  %s2962_s5 = smov [#allocation14]  }
  0xc2   :  { %s147_s11 = sshll.u32 %s2961_s0, 4  ;;  %s171_s3 = sshll.u32 %s2962_s5, 4  ;;  %s148_s11 = int_to_ptr.vmem [resolvable:$true] %s147_s11  ;;  %s172_s3 = int_to_ptr.vmem [resolvable:$true] %s171_s3 }
  0xc3   :  { %s2630_s16 = scalar_lea.hbm %s3008_s25, 64 }
  0xc4   :  { %p2631_p8 = scmp.ne.s32.totalorder %s3008_s25, %s2630_s16  ;;  %p2634_p9 = scmp.lt.u32.totalorder %s2630_s16, %s3008_s25 }
  0xc6   :  { %p2636_p10 = pnand %p2634_p9, %p2631_p8 }
  0xc8   :  { %2639 = shalt.err (!%p2636_p10)
}
  0xc9   :  { %s2640_s15 = scalar_lea.vmem %s148_s11, 64  ;;  %p2645_p12 = scmp.lt.s32.totalorder %s148_s11, %s148_s11 }
  0xca   :  { %p2641_p11 = scmp.ne.s32.totalorder %s148_s11, %s2640_s15  ;;  %p2646_p13 = scmp.lt.s32.totalorder %s2640_s15, %s2640_s15 }
  0xcc   :  { %p2647_p0 = por %p2646_p13, %p2645_p12 }
  0xce   :  { %p2648_p1 = pnand %p2647_p0, %p2641_p11 }
  0xd0   :  { %2651 = shalt.err (!%p2648_p1)
}
  0xd1   :  { %150 = dma.hbm_to_vmem [thread:$0]  %s3008_s25, 64, %s148_s11, [#allocation10]  }
  0xd2   :  { %s2652_s13 = scalar_lea.hbm %s3028_s14, 64 }
  0xd3   :  { %p2653_p2 = scmp.ne.s32.totalorder %s3028_s14, %s2652_s13  ;;  %p2656_p3 = scmp.lt.u32.totalorder %s2652_s13, %s3028_s14 }
  0xd5   :  { %p2658_p4 = pnand %p2656_p3, %p2653_p2 }
  0xd7   :  { %2661 = shalt.err (!%p2658_p4)
}
  0xd8   :  { %s2662_s18 = scalar_lea.vmem %s172_s3, 64  ;;  %p2667_p6 = scmp.lt.s32.totalorder %s172_s3, %s172_s3 }
  0xd9   :  { %p2663_p5 = scmp.ne.s32.totalorder %s172_s3, %s2662_s18  ;;  %p2668_p7 = scmp.lt.s32.totalorder %s2662_s18, %s2662_s18 }
  0xdb   :  { %p2669_p8 = por %p2668_p7, %p2667_p6 }
  0xdd   :  { %p2670_p9 = pnand %p2669_p8, %p2663_p5 }
  0xdf   :  { %2673 = shalt.err (!%p2670_p9)
}
  0xe0   :  { %174 = dma.hbm_to_vmem [thread:$0]  %s3028_s14, 64, %s172_s3, [#allocation13]  }
  0xe1   :  { %s2963_s23 = smov [#allocation17]   ;;  %s2964_s25 = smov [#allocation20]  }
  0xe2   :  { %s197_s24 = sshll.u32 %s2963_s23, 4  ;;  %s221_s22 = sshll.u32 %s2964_s25, 4  ;;  %s198_s24 = int_to_ptr.vmem [resolvable:$true] %s197_s24  ;;  %s222_s22 = int_to_ptr.vmem [resolvable:$true] %s221_s22 }
  0xe3   :  { %s2674_s9 = scalar_lea.hbm %s3053_s12, 64 }
  0xe4   :  { %p2675_p10 = scmp.ne.s32.totalorder %s3053_s12, %s2674_s9  ;;  %p2678_p11 = scmp.lt.u32.totalorder %s2674_s9, %s3053_s12 }
  0xe6   :  { %p2680_p12 = pnand %p2678_p11, %p2675_p10 }
  0xe8   :  { %2683 = shalt.err (!%p2680_p12)
}
  0xe9   :  { %s2684_s1 = scalar_lea.vmem %s198_s24, 64  ;;  %p2689_p0 = scmp.lt.s32.totalorder %s198_s24, %s198_s24 }
  0xea   :  { %p2685_p13 = scmp.ne.s32.totalorder %s198_s24, %s2684_s1  ;;  %p2690_p1 = scmp.lt.s32.totalorder %s2684_s1, %s2684_s1 }
  0xec   :  { %p2691_p2 = por %p2690_p1, %p2689_p0 }
  0xee   :  { %p2692_p3 = pnand %p2691_p2, %p2685_p13 }
  0xf0   :  { %2695 = shalt.err (!%p2692_p3)
}
  0xf1   :  { %200 = dma.hbm_to_vmem [thread:$0]  %s3053_s12, 64, %s198_s24, [#allocation16]  }
  0xf2   :  { %s2696_s14 = scalar_lea.hbm %s3073_s6, 64 }
  0xf3   :  { %p2697_p4 = scmp.ne.s32.totalorder %s3073_s6, %s2696_s14  ;;  %p2700_p5 = scmp.lt.u32.totalorder %s2696_s14, %s3073_s6 }
  0xf5   :  { %p2702_p6 = pnand %p2700_p5, %p2697_p4 }
  0xf7   :  { %2705 = shalt.err (!%p2702_p6)
}
  0xf8   :  { %s2706_s28 = scalar_lea.vmem %s222_s22, 64  ;;  %p2711_p8 = scmp.lt.s32.totalorder %s222_s22, %s222_s22 }
  0xf9   :  { %p2707_p7 = scmp.ne.s32.totalorder %s222_s22, %s2706_s28  ;;  %p2712_p9 = scmp.lt.s32.totalorder %s2706_s28, %s2706_s28 }
  0xfb   :  { %p2713_p10 = por %p2712_p9, %p2711_p8 }
  0xfd   :  { %p2714_p11 = pnand %p2713_p10, %p2707_p7 }
  0xff   :  { %2717 = shalt.err (!%p2714_p11)
}
 0x100   :  { %224 = dma.hbm_to_vmem [thread:$0]  %s3073_s6, 64, %s222_s22, [#allocation19]  }
 0x101   :  { %s2965_s2 = smov [#allocation23]   ;;  %s2966_s12 = smov [#allocation24]  }
 0x102   :  { %s245_s21 = sshll.u32 %s2965_s2, 4  ;;  %s254_s17 = sshll.u32 %s2966_s12, 4  ;;  %s246_s21 = int_to_ptr.vmem [resolvable:$true] %s245_s21  ;;  %s3206_s17 = int_to_ptr.vmem [resolvable:$true] %s254_s17 }
 0x103   :  { %s2718_s20 = scalar_lea.hbm %s3088_s4, 64 }
 0x104   :  { %p2719_p12 = scmp.ne.s32.totalorder %s3088_s4, %s2718_s20  ;;  %p2722_p13 = scmp.lt.u32.totalorder %s2718_s20, %s3088_s4 }
 0x106   :  { %p2724_p0 = pnand %p2722_p13, %p2719_p12 }
 0x108   :  { %2727 = shalt.err (!%p2724_p0)
}
 0x109   :  { %s2728_s10 = scalar_lea.vmem %s246_s21, 64  ;;  %p2733_p2 = scmp.lt.s32.totalorder %s246_s21, %s246_s21 }
 0x10a   :  { %p2729_p1 = scmp.ne.s32.totalorder %s246_s21, %s2728_s10  ;;  %p2734_p3 = scmp.lt.s32.totalorder %s2728_s10, %s2728_s10 }
 0x10c   :  { %p2735_p4 = por %p2734_p3, %p2733_p2 }
 0x10e   :  { %p2736_p5 = pnand %p2735_p4, %p2729_p1 }
 0x110   :  { %2739 = shalt.err (!%p2736_p5)
}
 0x111   :  { %s3553_s6 = sld [smem:[#allocation56_spill]] }
 0x112   :  { %248 = dma.hbm_to_vmem [thread:$0]  %s3088_s4, 64, %s246_s21, [#allocation22]  }
 0x117   :  { %s2740_s0 = scalar_lea.hbm %s3553_s6, 128 }
 0x118   :  { %p2741_p6 = scmp.ne.s32.totalorder %s3553_s6, %s2740_s0  ;;  %p2744_p7 = scmp.lt.u32.totalorder %s2740_s0, %s3553_s6 }
 0x11a   :  { %p2746_p8 = pnand %p2744_p7, %p2741_p6 }
 0x11c   :  { %2749 = shalt.err (!%p2746_p8)
}
 0x11d   :  { %s2750_s11 = scalar_lea.vmem %s3206_s17, 128  ;;  %p2755_p10 = scmp.lt.s32.totalorder %s3206_s17, %s3206_s17 }
 0x11e   :  { %p2751_p9 = scmp.ne.s32.totalorder %s3206_s17, %s2750_s11  ;;  %p2756_p11 = scmp.lt.s32.totalorder %s2750_s11, %s2750_s11 }
 0x120   :  { %p2757_p12 = por %p2756_p11, %p2755_p10 }
 0x122   :  { %p2758_p13 = pnand %p2757_p12, %p2751_p9 }
 0x124   :  { %2761 = shalt.err (!%p2758_p13)
}
 0x125   :  { %260 = dma.hbm_to_vmem [thread:$0]  %s3553_s6, 128, %s3206_s17, [#allocation25], %s2957_s26, %s2957_s26, %s2958_s27  }
 0x126   :  { %2894 = dma.done.wait [#allocation4], 128  }
 0x127   :  { %2895 = vsyncadd [#allocation4], 4294967168 }
 0x128   :  { %2896 = dma.done.wait [#allocation7], 192  }
 0x129   :  { %2897 = vsyncadd [#allocation7], 4294967104 }
 0x12a   :  { %2898 = dma.done.wait [#allocation10], 128  }
 0x12b   :  { %2899 = vsyncadd [#allocation10], 4294967168 }
 0x12c   :  { %2900 = dma.done.wait [#allocation13], 80  }
 0x12d   :  { %2901 = vsyncadd [#allocation13], 4294967216 }
 0x12e   :  { %2902 = dma.done.wait [#allocation16], 80  }
 0x12f   :  { %2903 = vsyncadd [#allocation16], 4294967216 }
 0x130   :  { %2904 = dma.done.wait [#allocation19], 128  }
 0x131   :  { %2905 = vsyncadd [#allocation19], 4294967168 }
 0x132   :  { %2906 = dma.done.wait [#allocation22], 192  }
 0x133   :  { %2907 = vsyncadd [#allocation22], 4294967104 }
 0x134   :  { %2908 = dma.done.wait [#allocation25], 128  }
 0x135   :  { %2909 = vsyncadd [#allocation25], 4294967168  ;;  %s3554_s4 = sld [smem:[#allocation47_spill]]  ;;  %s3555_s5 = sld [smem:[#allocation49_spill]]  ;;  %vm336_vm0 = vcmask 261120   ;;  %v2967_v1 = vmov 0.0  }
 0x136   :  { %2201 = vmatprep.subr.bf16.mxu0 %v2967_v1  ;;  %vm2968_vm1 = vmmov 0   ;;  %337 = vst.msk [vmem:[#allocation33] sm:$0xff] %vm336_vm0, %v2967_v1  ;;  %2209 = vmatprep.subr.bf16.mxu1 %v2967_v1  ;;  %v340_v4 = vld [vmem:[#allocation8] sm:$0xf]  ;;  %v505_v7 = vld [vmem:[#allocation9] sm:$0xf] }
 0x137   :  { %2205 = vmatprep.mubr.msk.bf16.mxu0 %vm2968_vm1, %v2967_v1  ;;  %2213 = vmatprep.mubr.msk.bf16.mxu1 %vm2968_vm1, %v2967_v1  ;;  %v2060_v8 = vld [vmem:[#allocation11] ss:$0 sm:$0xff]  ;;  %s3556_s26 = sld [smem:[#allocation48_spill]]  ;;  %v2070_v16 = vld [vmem:[#allocation14] ss:$0 sm:$0xff]  ;;  %s3557_s27 = sld [smem:[#allocation50_spill]] }
 0x138   :  { %v2064_v46 = vld [vmem:[#allocation11 + $0x1] ss:$0 sm:$0xff]  ;;  %v2065_v48 = vld [vmem:[#allocation11 + $0x2] ss:$0 sm:$0xff]  ;;  %v2074_v55 = vld [vmem:[#allocation14 + $0x1] ss:$0 sm:$0xff] }
 0x139   :  { %s3558_s3 = sld [smem:[#allocation51_spill]]  ;;  %v2075_v58 = vld [vmem:[#allocation14 + $0x2] ss:$0 sm:$0xff]  ;;  %s3559_s16 = sld [smem:[#allocation52_spill]]  ;;  %vm794_vm2 = vcmask 130048   ;;  %vm1047_vm3 = vcmask 253952  }
 0x13a   :  { %s3560_s15 = sld [smem:[#allocation54_spill]]  ;;  %s3561_s13 = sld [smem:[#allocation53_spill]] }
 0x13b   :  { %v2394_v2 = vld [vmem:[%s3554_s4] sm:$0xff]   ;;  %v2395_v3 = vld [vmem:[%s3554_s4 + $0x8] sm:$0xff]   ;;  %s3562_s18 = sld [smem:[#allocation55_spill]]  ;;  %s3563_s23 = sld [smem:[#allocation57_spill]] }
 0x13c   :  { %2202 = vmatpush3.bf16.msra.mxu0 %v2394_v2  ;;  %v2396_v5 = vld [vmem:[%s3555_s5] sm:$0xff]   ;;  %v2397_v6 = vld [vmem:[%s3555_s5 + $0x8] sm:$0xff]   ;;  %s3564_s24 = sld [smem:[#allocation58_spill]]  ;;  %s3565_s25 = sld [smem:[#allocation59_spill]] }
 0x13d   :  { %2203 = vmatprep.subr.bf16.mxu0 %v2967_v1  ;;  %v2398_v26 = vld [vmem:[%s3556_s26] sm:$0xff]   ;;  %v2399_v27 = vld [vmem:[%s3556_s26 + $0x8] sm:$0xff]   ;;  %s2969_s22 = smov [#allocation27]   ;;  %s2970_s1 = smov [#allocation30]  }
 0x13e   :  { %2210 = vmatpush3.bf16.msra.mxu1 %v2398_v26  ;;  %v2400_v54 = vld [vmem:[%s3557_s27] sm:$0xff]   ;;  %v2401_v60 = vld [vmem:[%s3557_s27 + $0x8] sm:$0xff]   ;;  %s1926_s9 = sshll.u32 %s2969_s22, 4  ;;  %s1952_s14 = sshll.u32 %s2970_s1, 4  ;;  %s1927_s9 = int_to_ptr.vmem [resolvable:$true] %s1926_s9  ;;  %s1953_s14 = int_to_ptr.vmem [resolvable:$true] %s1952_s14 }
 0x13f   :  { %2211 = vmatprep.subr.bf16.mxu1 %v2967_v1  ;;  %v2402_v0 = vld [vmem:[%s3558_s3] sm:$0xff]   ;;  %v2403_v2 = vld [vmem:[%s3558_s3 + $0x8] sm:$0xff]   ;;  %s2762_s28 = scalar_lea.vmem %s1927_s9, 128  ;;  %p2767_p1 = scmp.lt.s32.totalorder %s1927_s9, %s1927_s9 }
 0x140   :  { %2204 = vmatpush3.bf16.msra.mxu0 %v2395_v3  ;;  %v2404_v3 = vld [vmem:[%s3559_s16] sm:$0xff]   ;;  %v2409_v26 = vld [vmem:[%s3561_s13 + $0x8] sm:$0xff]   ;;  %p2763_p0 = scmp.ne.s32.totalorder %s1927_s9, %s2762_s28  ;;  %p2768_p2 = scmp.lt.s32.totalorder %s2762_s28, %s2762_s28 }
 0x141   :  { %2217 = vmatprep.subr.bf16.mxu0 %v2967_v1 }
 0x142   :  { %2212 = vmatpush3.bf16.msra.mxu1 %v2399_v27  ;;  %p2769_p3 = por %p2768_p2, %p2767_p1 }
 0x143   :  { %2206 = vmatmul.mubr.msk.bf16.vlgmr.msra.gmra.mrb[0].mxu0 %vm336_vm0, %v340_v4  ;;  %2225 = vmatprep.subr.bf16.mxu1 %v2967_v1  ;;  %v2406_v4 = vld [vmem:[%s3559_s16 + $0x8] sm:$0xff]  }
 0x144   :  { %2218 = vmatpush3.bf16.msra.mxu0 %v2396_v5  ;;  %2221 = vmatprep.mubr.msk.bf16.mxu0 %vm2968_vm1, %v2967_v1  ;;  %v3272_v5 = vld [vmem:[#allocation3] sm:$0xff]  ;;  %p2770_p4 = pnand %p2769_p3, %p2763_p0 }
 0x145   :  { %2219 = vmatprep.subr.bf16.mxu0 %v2967_v1 }
 0x148   :  { %2220 = vmatpush3.bf16.msra.mxu0 %v2397_v6 }
 0x149   :  { %2233 = vmatprep.subr.bf16.mxu0 %v2967_v1 }
 0x14b   :  { %2222 = vmatmul.mubr.msk.bf16.vlgmr.msra.gmra.mrb[4].mxu0 %vm336_vm0, %v505_v7  ;;  %v2069_v7 = vld [vmem:[#allocation12] ss:$0 sm:$0xff] }
 0x14c   :  { %2237 = vmatprep.mubr.msk.bf16.mxu0 %vm2968_vm1, %v2967_v1  ;;  %2234 = vmatpush3.bf16.msra.mxu0 %v2404_v3 }
 0x14d   :  { %2235 = vmatprep.subr.bf16.mxu0 %v2967_v1 }
 0x150   :  { %2236 = vmatpush3.bf16.msra.mxu0 %v2406_v4 }
 0x151   :  { %2249 = vmatprep.subr.bf16.mxu0 %v2967_v1 }
 0x216   :  { %v400_v9 = vpop.f32.mrb[0].mxu0 }
 0x217   :  { %v401_v10 = vadd.f32 %v2060_v8, %v400_v9  ;;  %v2207_v11 = vpop.f32.mrb[1].mxu0 }
 0x218   :  { %v403_v12 = vpop.f32.mrb[2].mxu0 }
 0x219   :  { %v2208_v13 = vpop.f32.mrb[3].mxu0  ;;  %v406_v14 = vsel %vm336_vm0, %v401_v10, 0.0  ;;  %v411_v15 = vmul.f32 %v401_v10, %v401_v10 }
 0x21a   :  { %407 = vadd.xlane.f32.xlu0 %v406_v14  ;;  %v2405_v13 = vld [vmem:[%s3560_s15] sm:$0xff]  }
 0x21b   :  { %v412_v17 = vsel %vm336_vm0, %v411_v15, 0.0  ;;  %v3276_v15 = vld [vmem:[#allocation6] sm:$0xff] }
 0x21e   :  { %413 = vadd.xlane.f32.xlu0 %v412_v17  ;;  %v564_v18 = vpop.f32.mrb[4].mxu0  ;;  %v2079_v17 = vld [vmem:[#allocation15] ss:$0 sm:$0xff] }
 0x21f   :  { %v565_v19 = vadd.f32 %v2070_v16, %v564_v18  ;;  %v2223_v20 = vpop.f32.mrb[5].mxu0  ;;  %v2407_v18 = vld [vmem:[%s3560_s15 + $0x8] sm:$0xff]  }
 0x220   :  { %v567_v21 = vpop.f32.mrb[6].mxu0 }
 0x221   :  { %v2224_v22 = vpop.f32.mrb[7].mxu0  ;;  %v570_v23 = vsel %vm336_vm0, %v565_v19, 0.0  ;;  %v574_v24 = vmul.f32 %v565_v19, %v565_v19 }
 0x222   :  { %571 = vadd.xlane.f32.xlu1 %v570_v23 }
 0x223   :  { %v575_v25 = vsel %vm336_vm0, %v574_v24, 0.0  ;;  %v2408_v24 = vld [vmem:[%s3561_s13] sm:$0xff]  }
 0x226   :  { %576 = vadd.xlane.f32.xlu1 %v575_v25 }
 0x2a7   :  { %v408_v28 = vpop.xlane.xlu0 %407 }
 0x2a8   :  { %v410_v29 = vmul.f32 0.03125, %v408_v28 }
 0x2aa   :  { %v416_v31 = vmul.f32 %v410_v29, %v410_v29  ;;  %v419_v44 = vsub.f32 %v401_v10, %v410_v29 }
 0x2ab   :  { %v414_v30 = vpop.xlane.xlu0 %413 }
 0x2ac   :  { %v415_v32 = vmul.f32 0.03125, %v414_v30 }
 0x2ae   :  { %v417_v33 = vsub.f32 %v415_v32, %v416_v31 }
 0x2af   :  { %v572_v34 = vpop.xlane.xlu1 %571 }
 0x2b0   :  { %v418_v35 = vmax.f32 %v417_v33, 0.0  ;;  %v573_v36 = vmul.f32 0.03125, %v572_v34 }
 0x2b2   :  { %v420_v37 = vadd.f32 1e-05, %v418_v35  ;;  %v579_v39 = vmul.f32 %v573_v36, %v573_v36  ;;  %v582_v51 = vsub.f32 %v565_v19, %v573_v36 }
 0x2b3   :  { %v577_v38 = vpop.xlane.xlu1 %576 }
 0x2b4   :  { %2426 = vrsqrt.f32 %v420_v37  ;;  %v578_v40 = vmul.f32 0.03125, %v577_v38 }
 0x2b6   :  { %v580_v41 = vsub.f32 %v578_v40, %v579_v39  ;;  %v3298_v40 = vld [vmem:[#allocation20] ss:$0 sm:$0xff] }
 0x2b8   :  { %v581_v42 = vmax.f32 %v580_v41, 0.0  ;;  %v2092_v41 = vld [vmem:[#allocation18] ss:$0 sm:$0xff] }
 0x2ba   :  { %v583_v43 = vadd.f32 1e-05, %v581_v42 }
 0x2bc   :  { %2428 = vrsqrt.f32 %v583_v43 }
 0x2be   :  { %v2427_v45 = vpop.eup %2426 }
 0x2bf   :  { %v422_v47 = vmul.f32 %v2427_v45, %v419_v44 }
 0x2c1   :  { %v428_v49 = vmul.f32 %v2064_v46, %v422_v47  ;;  %v3303_v46 = vld [vmem:[#allocation17] ss:$0 sm:$0xff] }
 0x2c3   :  { %v434_v50 = vadd.f32 %v2065_v48, %v428_v49 }
 0x2c5   :  { %v435_v52 = vmax.f32 %v434_v50, 0.0 }
 0x2c6   :  { %v2429_v53 = vpop.eup %2428 }
 0x2c7   :  { %v585_v56 = vmul.f32 %v2429_v53, %v582_v51  ;;  %v436_v57 = vpack.c.bf16 %v435_v52, %v435_v52 }
 0x2c9   :  { %2214 = vmatmul.mubr.msk.bf16.vlgmr.msra.gmra.mrb[0].mxu1 %vm336_vm0, %v436_v57  ;;  %v591_v59 = vmul.f32 %v2074_v55, %v585_v56 }
 0x2ca   :  { %2226 = vmatpush3.bf16.msra.mxu1 %v2400_v54  ;;  %2229 = vmatprep.mubr.msk.bf16.mxu1 %vm2968_vm1, %v2967_v1 }
 0x2cb   :  { %2227 = vmatprep.subr.bf16.mxu1 %v2967_v1  ;;  %v597_v61 = vadd.f32 %v2075_v58, %v591_v59  ;;  %v2410_v59 = vld [vmem:[%s3562_s18] sm:$0xff]  }
 0x2cd   :  { %v598_v62 = vmax.f32 %v597_v61, 0.0  ;;  %v2413_v61 = vld [vmem:[#allocation21] sm:$0xff]  }
 0x2ce   :  { %2228 = vmatpush3.bf16.msra.mxu1 %v2401_v60  ;;  %v2411_v60 = vld [vmem:[%s3562_s18 + $0x8] sm:$0xff]  }
 0x2cf   :  { %v599_v63 = vpack.c.bf16 %v598_v62, %v598_v62  ;;  %2241 = vmatprep.subr.bf16.mxu1 %v2967_v1 }
 0x2d1   :  { %2230 = vmatmul.mubr.msk.bf16.vlgmr.msra.gmra.mrb[4].mxu1 %vm336_vm0, %v599_v63 }
 0x2d2   :  { %2245 = vmatprep.mubr.msk.bf16.mxu1 %vm2968_vm1, %v2967_v1  ;;  %2242 = vmatpush3.bf16.msra.mxu1 %v2402_v0 }
 0x2d3   :  { %2243 = vmatprep.subr.bf16.mxu1 %v2967_v1 }
 0x2d6   :  { %2244 = vmatpush3.bf16.msra.mxu1 %v2403_v2 }
 0x2d7   :  { %2257 = vmatprep.subr.bf16.mxu1 %v2967_v1 }
 0x39c   :  { %v490_v6 = vpop.f32.mrb[0].mxu1 }
 0x39d   :  { %v496_v8 = vadd.f32 %v490_v6, %v3272_v5  ;;  %v2215_v9 = vpop.f32.mrb[1].mxu1 }
 0x39e   :  { %v493_v10 = vpop.f32.mrb[2].mxu1 }
 0x39f   :  { %v504_v11 = vadd.f32 %v2069_v7, %v496_v8  ;;  %v2216_v12 = vpop.f32.mrb[3].mxu1 }
 0x3a1   :  { %v668_v14 = vpack.c.bf16 %v504_v11, %v504_v11 }
 0x3a3   :  { %2246 = vmatmul.mubr.msk.bf16.vlgmr.msra.gmra.mrb[8].mxu1 %vm336_vm0, %v668_v14 }
 0x3a4   :  { %v653_v16 = vpop.f32.mrb[4].mxu1  ;;  %2258 = vmatpush3.bf16.msra.mxu1 %v2405_v13  ;;  %2261 = vmatprep.mubr.msk.bf16.mxu1 %vm2968_vm1, %v2967_v1 }
 0x3a5   :  { %v659_v19 = vadd.f32 %v653_v16, %v3276_v15  ;;  %v2231_v20 = vpop.f32.mrb[5].mxu1  ;;  %2259 = vmatprep.subr.bf16.mxu1 %v2967_v1 }
 0x3a6   :  { %v656_v21 = vpop.f32.mrb[6].mxu1 }
 0x3a7   :  { %v667_v22 = vadd.f32 %v2079_v17, %v659_v19  ;;  %v2232_v23 = vpop.f32.mrb[7].mxu1 }
 0x3a8   :  { %2260 = vmatpush3.bf16.msra.mxu1 %v2407_v18 }
 0x3a9   :  { %v669_v25 = vpack.c.bf16 %v667_v22, %v667_v22  ;;  %2273 = vmatprep.subr.bf16.mxu1 %v2967_v1 }
 0x3ab   :  { %2238 = vmatmul.mubr.msk.bf16.vlgmr.msra.gmra.mrb[8].mxu0 %vm336_vm0, %v669_v25  ;;  %2262 = vmatmul.mubr.msk.bf16.vlgmr.msra.gmra.mrb[12].mxu1 %vm336_vm0, %v669_v25 }
 0x3ac   :  { %2250 = vmatpush3.bf16.msra.mxu0 %v2408_v24  ;;  %2253 = vmatprep.mubr.msk.bf16.mxu0 %vm2968_vm1, %v2967_v1 }
 0x3ad   :  { %2251 = vmatprep.subr.bf16.mxu0 %v2967_v1  ;;  %2275 = vmatprep.mubr.msk.bf16.mxu1 %vm2968_vm1, %v2967_v1 }
 0x3ae   :  { %2274 = vmatpush3.bf16.msra.mxu1 %v2413_v61 }
 0x3af   :  { %2287 = vmatprep.subr.bf16.mxu1 %v2967_v1 }
 0x3b0   :  { %2252 = vmatpush3.bf16.msra.mxu0 %v2409_v26 }
 0x3b1   :  { %2265 = vmatprep.subr.bf16.mxu0 %v2967_v1 }
 0x3b3   :  { %2254 = vmatmul.mubr.msk.bf16.vlgmr.msra.gmra.mrb[12].mxu0 %vm336_vm0, %v668_v14 }
 0x3b4   :  { %2269 = vmatprep.mubr.msk.bf16.mxu0 %vm2968_vm1, %v2967_v1  ;;  %2266 = vmatpush3.bf16.msra.mxu0 %v2410_v59  ;;  %v2416_v59 = vld [vmem:[#allocation24] sm:$0xff]  }
 0x3b5   :  { %2267 = vmatprep.subr.bf16.mxu0 %v2967_v1 }
 0x3b8   :  { %2268 = vmatpush3.bf16.msra.mxu0 %v2411_v60 }
 0x3b9   :  { %2279 = vmatprep.subr.bf16.mxu0 %v2967_v1 }
 0x476   :  { %v782_v27 = vpop.f32.mrb[8].mxu1 }
 0x477   :  { %v2247_v28 = vpop.f32.mrb[9].mxu1 }
 0x478   :  { %v785_v29 = vpop.f32.mrb[10].mxu1 }
 0x479   :  { %v2248_v30 = vpop.f32.mrb[11].mxu1  ;;  %v2097_v29 = vld [vmem:[#allocation18 + $0x2] ss:$0 sm:$0xff] }
 0x47e   :  { %v727_v31 = vpop.f32.mrb[8].mxu0  ;;  %v1000_v32 = vpop.f32.mrb[12].mxu1 }
 0x47f   :  { %v783_v33 = vadd.f32 %v782_v27, %v727_v31  ;;  %v2239_v34 = vpop.f32.mrb[9].mxu0  ;;  %v2263_v35 = vpop.f32.mrb[13].mxu1  ;;  %v3301_v43 = vadd.f32 %v3298_v40, %v1000_v32  ;;  %v2096_v27 = vld [vmem:[#allocation18 + $0x1] ss:$0 sm:$0xff] }
 0x480   :  { %v730_v36 = vpop.f32.mrb[10].mxu0  ;;  %v1003_v37 = vpop.f32.mrb[14].mxu1 }
 0x481   :  { %v2240_v38 = vpop.f32.mrb[11].mxu0  ;;  %v2264_v39 = vpop.f32.mrb[15].mxu1  ;;  %v3307_v51 = vadd.f32 %v3303_v46, %v783_v33  ;;  %v1010_v53 = vmul.f32 %v3301_v43, %v3301_v43  ;;  %v1006_v54 = vsel %vm336_vm0, %v3301_v43, 0.0  ;;  %v3326_v33 = vld [vmem:[#allocation20 + $0x1] ss:$0 sm:$0xff] }
 0x482   :  { %v3328_v36 = vld [vmem:[#allocation20 + $0x2] ss:$0 sm:$0xff] }
 0x483   :  { %v1011_v55 = vsel %vm336_vm0, %v1010_v53, 0.0  ;;  %v800_v56 = vmul.f32 %v3307_v51, %v3307_v51  ;;  %v795_v57 = vsel %vm794_vm2, %v3307_v51, 0.0 }
 0x485   :  { %v801_v58 = vsel %vm794_vm2, %v800_v56, 0.0  ;;  %v2415_v56 = vld [vmem:[%s3560_s15] sm:$0xff]  }
 0x486   :  { %v909_v42 = vpop.f32.mrb[12].mxu0 }
 0x487   :  { %v910_v44 = vadd.f32 %v2092_v41, %v909_v42  ;;  %v2255_v45 = vpop.f32.mrb[13].mxu0  ;;  %v2412_v41 = vld [vmem:[%s3563_s23] sm:$0xff]  }
 0x488   :  { %v912_v47 = vpop.f32.mrb[14].mxu0 }
 0x489   :  { %v2256_v48 = vpop.f32.mrb[15].mxu0  ;;  %v915_v49 = vsel %vm336_vm0, %v910_v44, 0.0  ;;  %v919_v50 = vmul.f32 %v910_v44, %v910_v44 }
 0x48a   :  { %916 = vadd.xlane.f32.xlu0 %v915_v49  ;;  %v3338_v48 = vld [vmem:[#allocation17 + $0x2] ss:$0 sm:$0xff] }
 0x48b   :  { %v920_v52 = vsel %vm336_vm0, %v919_v50, 0.0 }
 0x48c   :  { %921 = vadd.xlane.f32.xlu1 %v920_v52 }
 0x48e   :  { %1007 = vadd.xlane.f32.xlu0 %v1006_v54 }
 0x490   :  { %1012 = vadd.xlane.f32.xlu1 %v1011_v55 }
 0x492   :  { %796 = vadd.xlane.f32.xlu0 %v795_v57 }
 0x494   :  { %802 = vadd.xlane.f32.xlu1 %v801_v58 }
 0x517   :  { %v917_v62 = vpop.xlane.xlu0 %916 }
 0x518   :  { %v918_v63 = vmul.f32 0.03125, %v917_v62 }
 0x519   :  { %v922_v0 = vpop.xlane.xlu1 %921 }
 0x51a   :  { %v924_v2 = vmul.f32 %v918_v63, %v918_v63  ;;  %v923_v3 = vmul.f32 0.03125, %v922_v0  ;;  %v927_v25 = vsub.f32 %v910_v44, %v918_v63  ;;  %v3333_v44 = vld [vmem:[#allocation17 + $0x1] ss:$0 sm:$0xff]  ;;  %v2417_v63 = vld [vmem:[%s3560_s15 + $0x8] sm:$0xff]  }
 0x51b   :  { %v1008_v4 = vpop.xlane.xlu0 %1007 }
 0x51c   :  { %v925_v6 = vsub.f32 %v923_v3, %v924_v2  ;;  %v1009_v7 = vmul.f32 0.03125, %v1008_v4  ;;  %v1365_v2 = vpack.c.bf16 %v3276_v15, %v3276_v15  ;;  %v2418_v4 = vld [vmem:[%s3558_s3] sm:$0xff]  }
 0x51d   :  { %v1013_v8 = vpop.xlane.xlu1 %1012 }
 0x51e   :  { %v926_v9 = vmax.f32 %v925_v6, 0.0  ;;  %v1015_v10 = vmul.f32 %v1009_v7, %v1009_v7  ;;  %v1014_v11 = vmul.f32 0.03125, %v1013_v8  ;;  %v1018_v31 = vsub.f32 %v3301_v43, %v1009_v7  ;;  %v1037_v7 = vld [vmem:[#allocation33 + $0x4] sm:$0x1]  ;;  %v2419_v8 = vld [vmem:[%s3558_s3 + $0x8] sm:$0xff]  }
 0x51f   :  { %v797_v12 = vpop.xlane.xlu0 %796 }
 0x520   :  { %v928_v13 = vadd.f32 1e-05, %v926_v9  ;;  %v1016_v14 = vsub.f32 %v1014_v11, %v1015_v10  ;;  %v799_v16 = vmul.f32 0.0625, %v797_v12  ;;  %v1364_v11 = vpack.c.bf16 %v3272_v5, %v3272_v5  ;;  %v2420_v12 = vld [vmem:[%s3559_s16] sm:$0xff]  }
 0x521   :  { %v803_v17 = vpop.xlane.xlu1 %802 }
 0x522   :  { %2430 = vrsqrt.f32 %v928_v13  ;;  %v1017_v18 = vmax.f32 %v1016_v14, 0.0  ;;  %v805_v19 = vmul.f32 %v799_v16, %v799_v16  ;;  %v804_v20 = vmul.f32 0.0625, %v803_v17  ;;  %v2421_v13 = vld [vmem:[%s3559_s16 + $0x8] sm:$0xff]  }
 0x523   :  { %v808_v39 = vsub.f32 %v3307_v51, %v799_v16  ;;  %v2414_v51 = vld [vmem:[%s3563_s23 + $0x8] sm:$0xff]  }
 0x524   :  { %v1019_v21 = vadd.f32 1e-05, %v1017_v18  ;;  %v806_v22 = vsub.f32 %v804_v20, %v805_v19 }
 0x526   :  { %2432 = vrsqrt.f32 %v1019_v21  ;;  %v807_v23 = vmax.f32 %v806_v22, 0.0 }
 0x528   :  { %v809_v24 = vadd.f32 1e-05, %v807_v23 }
 0x52a   :  { %2434 = vrsqrt.f32 %v809_v24 }
 0x52c   :  { %v2431_v26 = vpop.eup %2430 }
 0x52d   :  { %v930_v28 = vmul.f32 %v2431_v26, %v927_v25 }
 0x52f   :  { %v936_v30 = vmul.f32 %v2096_v27, %v930_v28 }
 0x530   :  { %v2433_v32 = vpop.eup %2432 }
 0x531   :  { %v1021_v34 = vmul.f32 %v2433_v32, %v1018_v31  ;;  %v942_v35 = vadd.f32 %v2097_v29, %v936_v30 }
 0x533   :  { %v1027_v37 = vmul.f32 %v3326_v33, %v1021_v34  ;;  %v943_v38 = vmax.f32 %v942_v35, 0.0 }
 0x534   :  { %v2435_v42 = vpop.eup %2434 }
 0x535   :  { %v1051_v45 = vpack.c.bf16 %v943_v38, %v943_v38  ;;  %944 = vst.msk [vmem:[#allocation27] sm:$0xff] %vm336_vm0, %v943_v38  ;;  %v1033_v43 = vadd.f32 %v3328_v36, %v1027_v37  ;;  %v811_v47 = vmul.f32 %v2435_v42, %v808_v39 }
 0x537   :  { %2270 = vmatmul.mubr.msk.bf16.vlgmr.msra.gmra.mrb[16].mxu0 %vm336_vm0, %v1051_v45  ;;  %v1034_v49 = vmax.f32 %v1033_v43, 0.0  ;;  %v817_v50 = vmul.f32 %v3333_v44, %v811_v47 }
 0x538   :  { %2280 = vmatpush3.bf16.msra.mxu0 %v2412_v41  ;;  %2283 = vmatprep.mubr.msk.bf16.mxu0 %vm2968_vm1, %v2967_v1 }
 0x539   :  { %2281 = vmatprep.subr.bf16.mxu0 %v2967_v1  ;;  %v1036_v52 = vsub.f32 %v943_v38, %v1034_v49  ;;  %1035 = vst.msk [vmem:[#allocation29] sm:$0xff] %vm336_vm0, %v1034_v49  ;;  %v823_v53 = vadd.f32 %v3338_v48, %v817_v50  ;;  %v1210_v58 = vpack.c.bf16 %v1034_v49, %v1034_v49 }
 0x53b   :  { %v1038_v54 = vmul.f32 %v1036_v52, %v1036_v52  ;;  %v3347_v55 = vmax.f32 %v823_v53, 0.0 }
 0x53c   :  { %2282 = vmatpush3.bf16.msra.mxu0 %v2414_v51 }
 0x53d   :  { %v1039_v57 = vsel %vm336_vm0, %v1038_v54, 0.0  ;;  %2293 = vmatprep.subr.bf16.mxu0 %v2967_v1  ;;  %v826_v60 = vpack.c.bf16 %v3347_v55, %v3347_v55  ;;  %825 = vst.msk [vmem:[#allocation26] sm:$0xff] %vm794_vm2, %v3347_v55 }
 0x53e   :  { %v1040_v61 = vrot.slane %v1039_v57, 4 }
 0x53f   :  { %2284 = vmatmul.mubr.msk.bf16.vlgmr.msra.gmra.mrb[20].mxu0 %vm336_vm0, %v1210_v58  ;;  %2276 = vmatmul.mubr.msk.bf16.vlgmr.msra.gmra.mrb[16].mxu1 %vm794_vm2, %v826_v60  ;;  %v2109_v58 = vld [vmem:[#allocation23] ss:$0 sm:$0xff] }
 0x540   :  { %v1041_v62 = vadd.f32 %v1040_v61, %v1039_v57  ;;  %2294 = vmatpush3.bf16.msra.mxu0 %v2415_v56  ;;  %2288 = vmatpush3.bf16.msra.mxu1 %v2416_v59 }
 0x541   :  { %2295 = vmatprep.subr.bf16.mxu0 %v2967_v1  ;;  %2289 = vmatprep.mubr.msk.bf16.mxu1 %vm2968_vm1, %v2967_v1 }
 0x542   :  { %v1042_v0 = vrot.slane %v1041_v62, 2  ;;  %2297 = vmatprep.mubr.msk.bf16.mxu0 %vm2968_vm1, %v2967_v1  ;;  %2301 = vmatprep.subr.bf16.mxu1 %v2967_v1 }
 0x544   :  { %v1043_v3 = vadd.f32 %v1042_v0, %v1041_v62  ;;  %2296 = vmatpush3.bf16.msra.mxu0 %v2417_v63  ;;  %v3408_v62 = vld [vmem:[%s3564_s24] ss:$0 sm:$0xff] }
 0x545   :  { %2309 = vmatprep.subr.bf16.mxu0 %v2967_v1 }
 0x546   :  { %v1044_v6 = vrot.slane %v1043_v3, 1 }
 0x547   :  { %2298 = vmatmul.mubr.msk.bf16.vlgmr.msra.gmra.mrb[24].mxu0 %vm336_vm0, %v1365_v2  ;;  %2290 = vmatmul.mubr.msk.bf16.vlgmr.msra.gmra.mrb[20].mxu1 %vm794_vm2, %v826_v60 }
 0x548   :  { %2310 = vmatpush3.bf16.msra.mxu0 %v2418_v4  ;;  %v1045_v9 = vadd.f32 %v1044_v6, %v1043_v3  ;;  %2313 = vmatprep.mubr.msk.bf16.mxu0 %vm2968_vm1, %v2967_v1 }
 0x549   :  { %2311 = vmatprep.subr.bf16.mxu0 %v2967_v1  ;;  %2305 = vmatprep.mubr.msk.bf16.mxu1 %vm2968_vm1, %v2967_v1 }
 0x54a   :  { %v1046_v10 = vadd.f32 %v1045_v9, %v1037_v7 }
 0x54c   :  { %2312 = vmatpush3.bf16.msra.mxu0 %v2419_v8  ;;  %1048 = vst.msk [vmem:[#allocation33 + $0x4] sm:$0x1] %vm1047_vm3, %v1046_v10 }
 0x54d   :  { %2323 = vmatprep.subr.bf16.mxu0 %v2967_v1 }
 0x54f   :  { %2314 = vmatmul.mubr.msk.bf16.vlgmr.msra.gmra.mrb[28].mxu0 %vm336_vm0, %v1364_v11  ;;  %v2422_v11 = vld [vmem:[%s3563_s23] sm:$0xff]  }
 0x550   :  { %2324 = vmatpush3.bf16.msra.mxu0 %v2420_v12  ;;  %2327 = vmatprep.mubr.msk.bf16.mxu0 %vm2968_vm1, %v2967_v1  ;;  %v2423_v12 = vld [vmem:[%s3563_s23 + $0x8] sm:$0xff]  }
 0x551   :  { %2325 = vmatprep.subr.bf16.mxu0 %v2967_v1  ;;  %2302 = vmatpush3.bf16.msra.mxu1 %v2422_v11 }
 0x552   :  { %2303 = vmatprep.subr.bf16.mxu1 %v2967_v1 }
 0x554   :  { %2326 = vmatpush3.bf16.msra.mxu0 %v2421_v13 }
 0x555   :  { %2304 = vmatpush3.bf16.msra.mxu1 %v2423_v12 }
 0x556   :  { %2317 = vmatprep.subr.bf16.mxu1 %v2967_v1 }
 0x557   :  { %2328 = vmatmul.mubr.msk.bf16.vlgmr.msra.gmra.mrb[32].mxu0 %vm336_vm0, %v1365_v2 }
 0x60a   :  { %v1105_v14 = vpop.f32.mrb[16].mxu0 }
 0x60b   :  { %v2271_v16 = vpop.f32.mrb[17].mxu0 }
 0x60c   :  { %v1108_v17 = vpop.f32.mrb[18].mxu0 }
 0x60d   :  { %v2272_v18 = vpop.f32.mrb[19].mxu0 }
 0x612   :  { %v1264_v19 = vpop.f32.mrb[20].mxu0  ;;  %v1154_v20 = vpop.f32.mrb[16].mxu1 }
 0x613   :  { %v2285_v21 = vpop.f32.mrb[21].mxu0  ;;  %v1155_v22 = vadd.f32 %v1154_v20, %v1105_v14  ;;  %v2277_v23 = vpop.f32.mrb[17].mxu1 }
 0x614   :  { %v1267_v24 = vpop.f32.mrb[22].mxu0  ;;  %v1157_v25 = vpop.f32.mrb[18].mxu1 }
 0x615   :  { %v2286_v26 = vpop.f32.mrb[23].mxu0  ;;  %v2278_v27 = vpop.f32.mrb[19].mxu1  ;;  %v3410_v63 = vadd.f32 %v2109_v58, %v1155_v22 }
 0x617   :  { %v1166_v4 = vsel %vm336_vm0, %v3410_v63, 0.0  ;;  %v1170_v6 = vmul.f32 %v3410_v63, %v3410_v63 }
 0x619   :  { %v1171_v9 = vsel %vm336_vm0, %v1170_v6, 0.0 }
 0x61a   :  { %v1424_v28 = vpop.f32.mrb[24].mxu0  ;;  %v1310_v29 = vpop.f32.mrb[20].mxu1 }
 0x61b   :  { %v3389_v30 = vadd.f32 %v3298_v40, %v1424_v28  ;;  %v2299_v31 = vpop.f32.mrb[25].mxu0  ;;  %v1311_v32 = vadd.f32 %v1310_v29, %v1264_v19  ;;  %v2291_v34 = vpop.f32.mrb[21].mxu1 }
 0x61c   :  { %v1427_v35 = vpop.f32.mrb[26].mxu0  ;;  %v1313_v37 = vpop.f32.mrb[22].mxu1 }
 0x61d   :  { %v2300_v38 = vpop.f32.mrb[27].mxu0  ;;  %v1430_v39 = vsel %vm336_vm0, %v3389_v30, 0.0  ;;  %v1434_v41 = vmul.f32 %v3389_v30, %v3389_v30  ;;  %v2292_v42 = vpop.f32.mrb[23].mxu1  ;;  %v3417_v3 = vadd.f32 %v3408_v62, %v1311_v32 }
 0x61e   :  { %1431 = vadd.xlane.f32.xlu0 %v1430_v39 }
 0x61f   :  { %v1435_v45 = vsel %vm336_vm0, %v1434_v41, 0.0  ;;  %v1322_v7 = vsel %vm336_vm0, %v3417_v3, 0.0  ;;  %v1326_v8 = vmul.f32 %v3417_v3, %v3417_v3 }
 0x620   :  { %1436 = vadd.xlane.f32.xlu1 %v1435_v45 }
 0x621   :  { %v1327_v10 = vsel %vm336_vm0, %v1326_v8, 0.0 }
 0x622   :  { %v1572_v43 = vpop.f32.mrb[28].mxu0 }
 0x623   :  { %v3397_v40 = vadd.f32 %v3303_v46, %v1572_v43  ;;  %v2315_v47 = vpop.f32.mrb[29].mxu0 }
 0x624   :  { %v1575_v49 = vpop.f32.mrb[30].mxu0 }
 0x625   :  { %v2316_v50 = vpop.f32.mrb[31].mxu0  ;;  %v1584_v51 = vsel %vm794_vm2, %v3397_v40, 0.0  ;;  %v1588_v52 = vmul.f32 %v3397_v40, %v3397_v40 }
 0x626   :  { %1585 = vadd.xlane.f32.xlu0 %v1584_v51 }
 0x627   :  { %v1589_v53 = vsel %vm794_vm2, %v1588_v52, 0.0 }
 0x628   :  { %1590 = vadd.xlane.f32.xlu1 %v1589_v53 }
 0x62a   :  { %v1760_v54 = vpop.f32.mrb[32].mxu0 }
 0x62b   :  { %v1766_v56 = vadd.f32 %v1760_v54, %v1572_v43  ;;  %v2329_v57 = vpop.f32.mrb[33].mxu0 }
 0x62c   :  { %v1763_v59 = vpop.f32.mrb[34].mxu0 }
 0x62d   :  { %v3405_v60 = vadd.f32 %v3303_v46, %v1766_v56  ;;  %v2330_v61 = vpop.f32.mrb[35].mxu0 }
 0x62f   :  { %v1773_v0 = vsel %vm794_vm2, %v3405_v60, 0.0  ;;  %v1777_v2 = vmul.f32 %v3405_v60, %v3405_v60 }
 0x630   :  { %1774 = vadd.xlane.f32.xlu0 %v1773_v0 }
 0x631   :  { %v1778_v46 = vsel %vm794_vm2, %v1777_v2, 0.0 }
 0x632   :  { %1779 = vadd.xlane.f32.xlu1 %v1778_v46 }
 0x634   :  { %1167 = vadd.xlane.f32.xlu0 %v1166_v4  ;;  %v2424_v4 = vld [vmem:[#allocation24] sm:$0xff]  }
 0x636   :  { %1323 = vadd.xlane.f32.xlu1 %v1322_v7 }
 0x638   :  { %1172 = vadd.xlane.f32.xlu0 %v1171_v9 }
 0x63a   :  { %1328 = vadd.xlane.f32.xlu1 %v1327_v10 }
 0x6ab   :  { %v1432_v13 = vpop.xlane.xlu0 %1431 }
 0x6ac   :  { %v1433_v14 = vmul.f32 0.03125, %v1432_v13  ;;  %v2425_v13 = vld [vmem:[#allocation24] sm:$0xff]  }
 0x6ad   :  { %v1437_v16 = vpop.xlane.xlu1 %1436 }
 0x6ae   :  { %v1439_v17 = vmul.f32 %v1433_v14, %v1433_v14  ;;  %v1438_v18 = vmul.f32 0.03125, %v1437_v16  ;;  %v1442_v34 = vsub.f32 %v3389_v30, %v1433_v14 }
 0x6b0   :  { %v1440_v19 = vsub.f32 %v1438_v18, %v1439_v17 }
 0x6b2   :  { %v1441_v20 = vmax.f32 %v1440_v19, 0.0 }
 0x6b3   :  { %v1586_v21 = vpop.xlane.xlu0 %1585 }
 0x6b4   :  { %v1443_v22 = vadd.f32 1e-05, %v1441_v20  ;;  %v1587_v23 = vmul.f32 0.0625, %v1586_v21 }
 0x6b5   :  { %v1591_v24 = vpop.xlane.xlu1 %1590 }
 0x6b6   :  { %2436 = vrsqrt.f32 %v1443_v22  ;;  %v1593_v25 = vmul.f32 %v1587_v23, %v1587_v23  ;;  %v1592_v26 = vmul.f32 0.0625, %v1591_v24  ;;  %v1596_v30 = vsub.f32 %v3397_v40, %v1587_v23  ;;  %v2110_v23 = vld [vmem:[#allocation23 + $0x1] ss:$0 sm:$0xff] }
 0x6b8   :  { %v1594_v27 = vsub.f32 %v1592_v26, %v1593_v25 }
 0x6ba   :  { %v1595_v28 = vmax.f32 %v1594_v27, 0.0  ;;  %v3453_v27 = vld [vmem:[%s3564_s24 + $0x1] ss:$0 sm:$0xff] }
 0x6bc   :  { %v1597_v29 = vadd.f32 1e-05, %v1595_v28  ;;  %v2111_v28 = vld [vmem:[#allocation23 + $0x2] ss:$0 sm:$0xff] }
 0x6bd   :  { %v1775_v31 = vpop.xlane.xlu0 %1774 }
 0x6be   :  { %2438 = vrsqrt.f32 %v1597_v29  ;;  %v1776_v32 = vmul.f32 0.0625, %v1775_v31 }
 0x6bf   :  { %v1780_v35 = vpop.xlane.xlu1 %1779 }
 0x6c0   :  { %v2437_v37 = vpop.eup %2436  ;;  %v1782_v38 = vmul.f32 %v1776_v32, %v1776_v32  ;;  %v1781_v39 = vmul.f32 0.0625, %v1780_v35  ;;  %v1785_v14 = vsub.f32 %v3405_v60, %v1776_v32 }
 0x6c1   :  { %v1445_v41 = vmul.f32 %v2437_v37, %v1442_v34  ;;  %v1168_v42 = vpop.xlane.xlu0 %1167 }
 0x6c2   :  { %v1783_v45 = vsub.f32 %v1781_v39, %v1782_v38  ;;  %v1169_v43 = vmul.f32 0.03125, %v1168_v42 }
 0x6c3   :  { %v1324_v47 = vpop.xlane.xlu1 %1323  ;;  %v1451_v49 = vmul.f32 %v3326_v33, %v1445_v41 }
 0x6c4   :  { %v1784_v50 = vmax.f32 %v1783_v45, 0.0  ;;  %v1325_v51 = vmul.f32 0.03125, %v1324_v47  ;;  %v1175_v56 = vmul.f32 %v1169_v43, %v1169_v43  ;;  %v1178_v20 = vsub.f32 %v3410_v63, %v1169_v43 }
 0x6c5   :  { %v1173_v52 = vpop.xlane.xlu0 %1172  ;;  %v1457_v53 = vadd.f32 %v3328_v36, %v1451_v49 }
 0x6c6   :  { %v1786_v54 = vadd.f32 1e-05, %v1784_v50  ;;  %v1174_v57 = vmul.f32 0.03125, %v1173_v52  ;;  %v1331_v0 = vmul.f32 %v1325_v51, %v1325_v51  ;;  %v1334_v60 = vsub.f32 %v3417_v3, %v1325_v51 }
 0x6c7   :  { %v1329_v58 = vpop.xlane.xlu1 %1328  ;;  %v1458_v59 = vmax.f32 %v1457_v53, 0.0 }
 0x6c8   :  { %v2439_v61 = vpop.eup %2438  ;;  %2440 = vrsqrt.f32 %v1786_v54  ;;  %v1176_v2 = vsub.f32 %v1174_v57, %v1175_v56  ;;  %v1330_v46 = vmul.f32 0.03125, %v1329_v58  ;;  %v1197_v54 = vld [vmem:[#allocation33 + $0x2] sm:$0x1] }
 0x6c9   :  { %v1599_v6 = vmul.f32 %v2439_v61, %v1596_v30  ;;  %v1459_v33 = vpack.c.bf16 %v1458_v59, %v1458_v59  ;;  %v1353_v30 = vld [vmem:[#allocation33 + $0x3] sm:$0x1] }
 0x6ca   :  { %v1177_v7 = vmax.f32 %v1176_v2, 0.0  ;;  %v1332_v8 = vsub.f32 %v1330_v46, %v1331_v0 }
 0x6cb   :  { %2306 = vmatmul.mubr.msk.bf16.vlgmr.msra.gmra.mrb[24].mxu1 %vm336_vm0, %v1459_v33  ;;  %v1605_v36 = vmul.f32 %v3333_v44, %v1599_v6 }
 0x6cc   :  { %v1179_v9 = vadd.f32 1e-05, %v1177_v7  ;;  %v1333_v10 = vmax.f32 %v1332_v8, 0.0  ;;  %2318 = vmatpush3.bf16.msra.mxu1 %v2424_v4  ;;  %2319 = vmatprep.mubr.msk.bf16.mxu1 %vm2968_vm1, %v2967_v1 }
 0x6cd   :  { %v1611_v40 = vadd.f32 %v3338_v48, %v1605_v36  ;;  %2331 = vmatprep.subr.bf16.mxu1 %v2967_v1 }
 0x6ce   :  { %2442 = vrsqrt.f32 %v1179_v9  ;;  %v1335_v11 = vadd.f32 1e-05, %v1333_v10 }
 0x6cf   :  { %v1612_v12 = vmax.f32 %v1611_v40, 0.0  ;;  %v2089_v40 = vld [vmem:[%s3565_s25] ss:$0 sm:$0xff] }
 0x6d0   :  { %2444 = vrsqrt.f32 %v1335_v11 }
 0x6d1   :  { %v1613_v16 = vpack.c.bf16 %v1612_v12, %v1612_v12  ;;  %v834_v12 = vmul.f32 %v2089_v40, %v3347_v55 }
 0x6d2   :  { %v2441_v17 = vpop.eup %2440 }
 0x6d3   :  { %v1788_v18 = vmul.f32 %v2441_v17, %v1785_v14  ;;  %2320 = vmatmul.mubr.msk.bf16.vlgmr.msra.gmra.mrb[28].mxu1 %vm794_vm2, %v1613_v16 }
 0x6d4   :  { %2332 = vmatpush3.bf16.msra.mxu1 %v2425_v13  ;;  %2333 = vmatprep.mubr.msk.bf16.mxu1 %vm2968_vm1, %v2967_v1  ;;  %v3456_v1 = vld [vmem:[%s3564_s24 + $0x2] ss:$0 sm:$0xff] }
 0x6d5   :  { %v1794_v19 = vmul.f32 %v3333_v44, %v1788_v18 }
 0x6d7   :  { %v1800_v21 = vadd.f32 %v3338_v48, %v1794_v19 }
 0x6d8   :  { %v2443_v22 = vpop.eup %2442 }
 0x6d9   :  { %v1801_v24 = vmax.f32 %v1800_v21, 0.0  ;;  %v1181_v25 = vmul.f32 %v2443_v22, %v1178_v20  ;;  %v835_v20 = vsel %vm794_vm2, %v834_v12, 0.0 }
 0x6da   :  { %v2445_v26 = vpop.eup %2444 }
 0x6db   :  { %v1802_v29 = vpack.c.bf16 %v1801_v24, %v1801_v24  ;;  %v1187_v31 = vmul.f32 %v2110_v23, %v1181_v25  ;;  %v1337_v32 = vmul.f32 %v2445_v26, %v1334_v60 }
 0x6dd   :  { %2334 = vmatmul.mubr.msk.bf16.vlgmr.msra.gmra.mrb[32].mxu1 %vm794_vm2, %v1802_v29  ;;  %v1193_v44 = vadd.f32 %v2111_v28, %v1187_v31  ;;  %v1343_v48 = vmul.f32 %v3453_v27, %v1337_v32 }
 0x6df   :  { %v1194_v63 = vmax.f32 %v1193_v44, 0.0  ;;  %v1349_v34 = vadd.f32 %v3456_v1, %v1343_v48 }
 0x6e1   :  { %1195 = vst.msk [vmem:[#allocation30] sm:$0xff] %vm336_vm0, %v1194_v63  ;;  %v1196_v3 = vsub.f32 %v1194_v63, %v3272_v5  ;;  %v1350_v35 = vmax.f32 %v1349_v34, 0.0 }
 0x6e3   :  { %v1198_v37 = vmul.f32 %v1196_v3, %v1196_v3  ;;  %1351 = vst.msk [vmem:[#allocation32] sm:$0xff] %vm336_vm0, %v1350_v35  ;;  %v1352_v38 = vsub.f32 %v1350_v35, %v3276_v15 }
 0x6e5   :  { %v1199_v39 = vsel %vm336_vm0, %v1198_v37, 0.0  ;;  %v1354_v41 = vmul.f32 %v1352_v38, %v1352_v38 }
 0x6e6   :  { %v1200_v42 = vrot.slane %v1199_v39, 4 }
 0x6e7   :  { %v1355_v45 = vsel %vm336_vm0, %v1354_v41, 0.0 }
 0x6e8   :  { %v1201_v43 = vadd.f32 %v1200_v42, %v1199_v39  ;;  %v1356_v47 = vrot.slane %v1355_v45, 4 }
 0x6ea   :  { %v1202_v49 = vrot.slane %v1201_v43, 2  ;;  %v1357_v50 = vadd.f32 %v1356_v47, %v1355_v45 }
 0x6ec   :  { %v1203_v51 = vadd.f32 %v1202_v49, %v1201_v43  ;;  %v1358_v52 = vrot.slane %v1357_v50, 2 }
 0x6ee   :  { %v1204_v53 = vrot.slane %v1203_v51, 1  ;;  %v1359_v5 = vadd.f32 %v1358_v52, %v1357_v50 }
 0x6f0   :  { %v1205_v56 = vadd.f32 %v1204_v53, %v1203_v51  ;;  %v1360_v57 = vrot.slane %v1359_v5, 1 }
 0x6f2   :  { %v1206_v58 = vadd.f32 %v1205_v56, %v1197_v54  ;;  %v1361_v15 = vadd.f32 %v1360_v57, %v1359_v5 }
 0x6f4   :  { %v1362_v59 = vadd.f32 %v1361_v15, %v1353_v30  ;;  %1207 = vst.msk [vmem:[#allocation33 + $0x2] sm:$0x1] %vm1047_vm3, %v1206_v58 }
 0x6f6   :  { %1363 = vst.msk [vmem:[#allocation33 + $0x3] sm:$0x1] %vm1047_vm3, %v1362_v59 }
 0x79e   :  { %v1513_v61 = vpop.f32.mrb[24].mxu1 }
 0x79f   :  { %v2307_v0 = vpop.f32.mrb[25].mxu1 }
 0x7a0   :  { %v1516_v2 = vpop.f32.mrb[26].mxu1 }
 0x7a1   :  { %v2308_v46 = vpop.f32.mrb[27].mxu1 }
 0x7a6   :  { %v1659_v4 = vpop.f32.mrb[28].mxu1 }
 0x7a7   :  { %v1660_v6 = vadd.f32 %v1659_v4, %v1513_v61  ;;  %v2321_v33 = vpop.f32.mrb[29].mxu1 }
 0x7a8   :  { %v1662_v7 = vpop.f32.mrb[30].mxu1 }
 0x7a9   :  { %v3470_v8 = vadd.f32 %v3408_v62, %v1660_v6  ;;  %v2322_v36 = vpop.f32.mrb[31].mxu1 }
 0x7ab   :  { %v1671_v9 = vsel %vm336_vm0, %v3470_v8, 0.0  ;;  %v1675_v10 = vmul.f32 %v3470_v8, %v3470_v8 }
 0x7ac   :  { %1672 = vadd.xlane.f32.xlu0 %v1671_v9 }
 0x7ad   :  { %v1676_v11 = vsel %vm336_vm0, %v1675_v10, 0.0 }
 0x7b0   :  { %1677 = vadd.xlane.f32.xlu0 %v1676_v11  ;;  %v1848_v13 = vpop.f32.mrb[32].mxu1 }
 0x7b1   :  { %v1849_v14 = vadd.f32 %v1848_v13, %v1513_v61  ;;  %v2335_v16 = vpop.f32.mrb[33].mxu1 }
 0x7b2   :  { %v1851_v17 = vpop.f32.mrb[34].mxu1 }
 0x7b3   :  { %v3480_v18 = vadd.f32 %v3408_v62, %v1849_v14  ;;  %v2336_v19 = vpop.f32.mrb[35].mxu1 }
 0x7b4   :  { %836 = vadd.xlane.f32.xlu0 %v835_v20 }
 0x7b5   :  { %v1860_v21 = vsel %vm336_vm0, %v3480_v18, 0.0  ;;  %v1864_v22 = vmul.f32 %v3480_v18, %v3480_v18 }
 0x7b6   :  { %1861 = vadd.xlane.f32.xlu1 %v1860_v21 }
 0x7b7   :  { %v1865_v55 = vsel %vm336_vm0, %v1864_v22, 0.0 }
 0x7ba   :  { %1866 = vadd.xlane.f32.xlu1 %v1865_v55 }
 0x7bb   :  { %2773 = shalt.err (!%p2770_p4)
}
 0x7bc   :  { %s3566_s2 = sld [smem:[#allocation61_spill]] }
 0x7c2   :  { %s2774_s21 = scalar_lea.hbm %s3566_s2, 128 }
 0x7c3   :  { %p2775_p5 = scmp.ne.s32.totalorder %s3566_s2, %s2774_s21  ;;  %p2778_p6 = scmp.lt.u32.totalorder %s2774_s21, %s3566_s2 }
 0x7c5   :  { %p2780_p7 = pnand %p2778_p6, %p2775_p5 }
 0x7c7   :  { %2783 = shalt.err (!%p2780_p7)
}
 0x7c8   :  { %1929 = dma.vmem_to_hbm [thread:$0]  %s1927_s9, 128, %s3566_s2, [#allocation28]  }
 0x7c9   :  { %s2784_s12 = scalar_lea.vmem %s1953_s14, 128  ;;  %p2789_p9 = scmp.lt.s32.totalorder %s1953_s14, %s1953_s14 }
 0x7ca   :  { %p2785_p8 = scmp.ne.s32.totalorder %s1953_s14, %s2784_s12  ;;  %p2790_p10 = scmp.lt.s32.totalorder %s2784_s12, %s2784_s12 }
 0x7cc   :  { %p2791_p11 = por %p2790_p10, %p2789_p9 }
 0x7ce   :  { %p2792_p12 = pnand %p2791_p11, %p2785_p8 }
 0x7d0   :  { %2795 = shalt.err (!%p2792_p12)
}
 0x7d1   :  { %s2796_s17 = scalar_lea.hbm %s3131_s19, 128 }
 0x7d2   :  { %p2797_p13 = scmp.ne.s32.totalorder %s3131_s19, %s2796_s17  ;;  %p2800_p0 = scmp.lt.u32.totalorder %s2796_s17, %s3131_s19 }
 0x7d4   :  { %p2802_p1 = pnand %p2800_p0, %p2797_p13 }
 0x7d6   :  { %2805 = shalt.err (!%p2802_p1)
}
 0x7d7   :  { %1955 = dma.vmem_to_hbm [thread:$0]  %s1953_s14, 128, %s3131_s19, [#allocation31]  }
 0x7d8   :  { %s2971_s20 = smov [#allocation26]   ;;  %s2972_s6 = smov [#allocation29]  }
 0x7d9   :  { %s1913_s10 = sshll.u32 %s2971_s20, 4  ;;  %s1939_s0 = sshll.u32 %s2972_s6, 4  ;;  %s1914_s10 = int_to_ptr.vmem [resolvable:$true] %s1913_s10  ;;  %s1940_s0 = int_to_ptr.vmem [resolvable:$true] %s1939_s0 }
 0x7da   :  { %s2806_s11 = scalar_lea.vmem %s1914_s10, 128  ;;  %p2811_p3 = scmp.lt.s32.totalorder %s1914_s10, %s1914_s10 }
 0x7db   :  { %p2807_p2 = scmp.ne.s32.totalorder %s1914_s10, %s2806_s11  ;;  %p2812_p4 = scmp.lt.s32.totalorder %s2806_s11, %s2806_s11 }
 0x7dd   :  { %p2813_p5 = por %p2812_p4, %p2811_p3 }
 0x7df   :  { %p2814_p6 = pnand %p2813_p5, %p2807_p2 }
 0x7e1   :  { %2817 = shalt.err (!%p2814_p6)
}
 0x7e2   :  { %s3567_s4 = sld [smem:[#allocation60_spill]] }
 0x7e8   :  { %s2818_s5 = scalar_lea.hbm %s3567_s4, 128 }
 0x7e9   :  { %p2819_p7 = scmp.ne.s32.totalorder %s3567_s4, %s2818_s5  ;;  %p2822_p8 = scmp.lt.u32.totalorder %s2818_s5, %s3567_s4 }
 0x7eb   :  { %p2824_p9 = pnand %p2822_p8, %p2819_p7 }
 0x7ed   :  { %2827 = shalt.err (!%p2824_p9)
}
 0x7ee   :  { %1916 = dma.vmem_to_hbm [thread:$0]  %s1914_s10, 128, %s3567_s4, [#allocation5]  }
 0x7ef   :  { %s2828_s19 = scalar_lea.vmem %s1940_s0, 128  ;;  %p2833_p11 = scmp.lt.s32.totalorder %s1940_s0, %s1940_s0 }
 0x7f0   :  { %p2829_p10 = scmp.ne.s32.totalorder %s1940_s0, %s2828_s19  ;;  %p2834_p12 = scmp.lt.s32.totalorder %s2828_s19, %s2828_s19 }
 0x7f2   :  { %p2835_p13 = por %p2834_p12, %p2833_p11 }
 0x7f4   :  { %p2836_p0 = pnand %p2835_p13, %p2829_p10 }
 0x7f6   :  { %2839 = shalt.err (!%p2836_p0)
}
 0x7f7   :  { %s2840_s26 = scalar_lea.hbm %s3126_s8, 128 }
 0x7f8   :  { %p2841_p1 = scmp.ne.s32.totalorder %s3126_s8, %s2840_s26  ;;  %p2844_p2 = scmp.lt.u32.totalorder %s2840_s26, %s3126_s8 }
 0x7fa   :  { %p2846_p3 = pnand %p2844_p2, %p2841_p1 }
 0x7fc   :  { %2849 = shalt.err (!%p2846_p3)
}
 0x7fd   :  { %1942 = dma.vmem_to_hbm [thread:$0]  %s1940_s0, 128, %s3126_s8, [#allocation28]  }
 0x7fe   :  { %s2973_s27 = smov [#allocation32]  }
 0x7ff   :  { %s1965_s3 = sshll.u32 %s2973_s27, 4  ;;  %s1966_s3 = int_to_ptr.vmem [resolvable:$true] %s1965_s3 }
 0x800   :  { %s2850_s16 = scalar_lea.vmem %s1966_s3, 128  ;;  %p2855_p5 = scmp.lt.s32.totalorder %s1966_s3, %s1966_s3 }
 0x801   :  { %p2851_p4 = scmp.ne.s32.totalorder %s1966_s3, %s2850_s16  ;;  %p2856_p6 = scmp.lt.s32.totalorder %s2850_s16, %s2850_s16 }
 0x803   :  { %p2857_p7 = por %p2856_p6, %p2855_p5 }
 0x805   :  { %p2858_p8 = pnand %p2857_p7, %p2851_p4 }
 0x807   :  { %2861 = shalt.err (!%p2858_p8)
}
 0x808   :  { %s2862_s15 = scalar_lea.hbm %s3136_s29, 128 }
 0x809   :  { %p2863_p9 = scmp.ne.s32.totalorder %s3136_s29, %s2862_s15  ;;  %p2866_p10 = scmp.lt.u32.totalorder %s2862_s15, %s3136_s29 }
 0x80b   :  { %p2868_p11 = pnand %p2866_p10, %p2863_p9 }
 0x80d   :  { %2871 = shalt.err (!%p2868_p11)
}
 0x80e   :  { %1968 = dma.vmem_to_hbm [thread:$0]  %s1966_s3, 128, %s3136_s29, [#allocation31]   ;;  %v2090_v26 = vld [vmem:[#allocation2] ss:$0 sm:$0xff]  ;;  %vm852_vm4 = vcmask 7168  }
 0x80f   :  { %v1700_v6 = vld [vmem:[#allocation33] sm:$0x1]  ;;  %v1889_v40 = vld [vmem:[#allocation33 + $0x1] sm:$0x1]  ;;  %s2974_s29 = smov [#allocation33]  }
 0x810   :  { %s1978_s8 = sshll.u32 %s2974_s29, 4  ;;  %s1979_s8 = int_to_ptr.vmem [resolvable:$true] %s1978_s8 }
 0x811   :  { %p2877_p13 = scmp.lt.s32.totalorder %s1979_s8, %s1979_s8 }
 0x839   :  { %v1673_v62 = vpop.xlane.xlu0 %1672 }
 0x83a   :  { %v1674_v23 = vmul.f32 0.03125, %v1673_v62 }
 0x83c   :  { %v1680_v24 = vmul.f32 %v1674_v23, %v1674_v23  ;;  %v1683_v42 = vsub.f32 %v3470_v8, %v1674_v23 }
 0x83d   :  { %v1678_v60 = vpop.xlane.xlu0 %1677 }
 0x83e   :  { %v1679_v25 = vmul.f32 0.03125, %v1678_v60 }
 0x840   :  { %v1681_v28 = vsub.f32 %v1679_v25, %v1680_v24 }
 0x841   :  { %v837_v29 = vpop.xlane.xlu0 %836 }
 0x842   :  { %v1682_v31 = vmax.f32 %v1681_v28, 0.0  ;;  %v845_v32 = vadd.f32 %v2090_v26, %v837_v29 }
 0x843   :  { %v1862_v44 = vpop.xlane.xlu1 %1861 }
 0x844   :  { %v1684_v48 = vadd.f32 1e-05, %v1682_v31  ;;  %v2091_v63 = vmul.f32 -1.442695, %v845_v32  ;;  %v1863_v34 = vmul.f32 0.03125, %v1862_v44 }
 0x846   :  { %2446 = vrsqrt.f32 %v1684_v48  ;;  %v1869_v35 = vmul.f32 %v1863_v34, %v1863_v34  ;;  %v1872_v5 = vsub.f32 %v3480_v18, %v1863_v34 }
 0x847   :  { %2448 = vpow2.f32 %v2091_v63  ;;  %v1867_v3 = vpop.xlane.xlu1 %1866 }
 0x848   :  { %v1868_v37 = vmul.f32 0.03125, %v1867_v3 }
 0x84a   :  { %v1870_v38 = vsub.f32 %v1868_v37, %v1869_v35 }
 0x84c   :  { %v1871_v39 = vmax.f32 %v1870_v38, 0.0 }
 0x84e   :  { %v1873_v41 = vadd.f32 1e-05, %v1871_v39 }
 0x850   :  { %v2447_v45 = vpop.eup %2446  ;;  %2450 = vrsqrt.f32 %v1873_v41 }
 0x851   :  { %v2449_v43 = vpop.eup %2448  ;;  %v1686_v47 = vmul.f32 %v2447_v45, %v1683_v42 }
 0x852   :  { %v849_v49 = vadd.f32 1.0, %v2449_v43 }
 0x853   :  { %v1692_v50 = vmul.f32 %v3453_v27, %v1686_v47 }
 0x854   :  { %2452 = vrcp.f32 %v849_v49 }
 0x855   :  { %v1698_v51 = vadd.f32 %v3456_v1, %v1692_v50 }
 0x857   :  { %v1699_v52 = vmax.f32 %v1698_v51, 0.0 }
 0x859   :  { %v1701_v53 = vsel %vm336_vm0, %v1699_v52, 0.0 }
 0x85a   :  { %v2451_v54 = vpop.eup %2450  ;;  %v1702_v56 = vrot.slane %v1701_v53, 4 }
 0x85b   :  { %v1875_v57 = vmul.f32 %v2451_v54, %v1872_v5 }
 0x85c   :  { %v1703_v30 = vadd.f32 %v1702_v56, %v1701_v53 }
 0x85d   :  { %v1881_v58 = vmul.f32 %v3453_v27, %v1875_v57 }
 0x85e   :  { %v2453_v15 = vpop.eup %2452  ;;  %v1704_v59 = vrot.slane %v1703_v30, 2 }
 0x85f   :  { %853 = vst.msk [vmem:[%s3141_s30] sm:$0xff] %vm852_vm4, %v2453_v15  ;;  %v1887_v61 = vadd.f32 %v3456_v1, %v1881_v58  ;;  %s2872_s30 = scalar_lea.vmem %s1979_s8, 128 }
 0x860   :  { %v1705_v0 = vadd.f32 %v1704_v59, %v1703_v30  ;;  %p2873_p12 = scmp.ne.s32.totalorder %s1979_s8, %s2872_s30  ;;  %p2878_p0 = scmp.lt.s32.totalorder %s2872_s30, %s2872_s30 }
 0x861   :  { %v1888_v2 = vmax.f32 %v1887_v61, 0.0 }
 0x862   :  { %v1706_v46 = vrot.slane %v1705_v0, 1  ;;  %p2879_p1 = por %p2878_p0, %p2877_p13 }
 0x863   :  { %v1890_v4 = vsel %vm336_vm0, %v1888_v2, 0.0 }
 0x864   :  { %v1891_v33 = vrot.slane %v1890_v4, 4  ;;  %v1707_v7 = vadd.f32 %v1706_v46, %v1705_v0  ;;  %p2880_p2 = pnand %p2879_p1, %p2873_p12 }
 0x866   :  { %v1892_v8 = vadd.f32 %v1891_v33, %v1890_v4  ;;  %v1708_v36 = vadd.f32 %v1707_v7, %v1700_v6 }
 0x868   :  { %v1893_v9 = vrot.slane %v1892_v8, 2  ;;  %1709 = vst.msk [vmem:[#allocation33] sm:$0x1] %vm1047_vm3, %v1708_v36 }
 0x86a   :  { %v1894_v10 = vadd.f32 %v1893_v9, %v1892_v8 }
 0x86c   :  { %v1895_v27 = vrot.slane %v1894_v10, 1 }
 0x86e   :  { %v1896_v11 = vadd.f32 %v1895_v27, %v1894_v10 }
 0x870   :  { %v1897_v1 = vadd.f32 %v1896_v11, %v1889_v40 }
 0x872   :  { %1898 = vst.msk [vmem:[#allocation33 + $0x1] sm:$0x1] %vm1047_vm3, %v1897_v1 }
 0x873   :  { %2883 = shalt.err (!%p2880_p2)
}
 0x874   :  { %s2884_s13 = scalar_lea.hbm %s3146_s7, 128 }
 0x875   :  { %p2885_p3 = scmp.ne.s32.totalorder %s3146_s7, %s2884_s13  ;;  %p2888_p4 = scmp.lt.u32.totalorder %s2884_s13, %s3146_s7 }
 0x877   :  { %p2890_p5 = pnand %p2888_p4, %p2885_p3 }
 0x879   :  { %2893 = shalt.err (!%p2890_p5)
}
 0x87a   :  { %1981 = dma.vmem_to_hbm [thread:$0]  %s1979_s8, 128, %s3146_s7, [#allocation34]  }
 0x87b   :  { %2910 = dma.done.wait [#allocation5], 128  }
 0x87c   :  { %2911 = vsyncadd [#allocation5], 4294967168 }
 0x87d   :  { %2912 = dma.done.wait [#allocation28], 256  }
 0x87e   :  { %2913 = vsyncadd [#allocation28], 4294967040 }
 0x87f   :  { %2914 = dma.done.wait [#allocation31], 256  }
 0x880   :  { %2915 = vsyncadd [#allocation31], 4294967040 }
 0x881   :  { %2916 = dma.done.wait [#allocation34], 128  }
 0x882   :  { %2917 = vsyncadd [#allocation34], 4294967168 }
 0x883   :  { %2007 = vsyncpa [#allocation4], 1 }
 0x884   :  { %2008 = vsyncpa [#allocation7], 1 }
 0x885   :  { %2009 = vsyncpa [#allocation10], 1 }
 0x886   :  { %2010 = vsyncpa [#allocation13], 1 }
 0x887   :  { %2011 = vsyncpa [#allocation16], 1 }
 0x888   :  { %2012 = vsyncpa [#allocation19], 1 }
 0x889   :  { %2013 = vsyncpa [#allocation22], 1 }
 0x88a   :  { %2014 = vsyncpa [#allocation25], 1 }
 0x88b   :  { %2015 = vsyncpa [#allocation5], 1 }
 0x88c   :  { %2016 = vsyncpa [#allocation28], 1 }
 0x88d   :  { %2017 = vsyncpa [#allocation31], 1 }
 0x88e   :  { %2018 = vsyncpa [#allocation34], 1 }

// kernel: tpu_custom_call.1
= control target key start
LH: loop header
LB: loop body
LE: loop exit
PB: predicated region body
PF: predicated region fallthrough
CT: control target
= control target key end

     0   :  { %s2918_s6 = smov 1   ;;  %s2919_s10 = smov 2   ;;  %s3523_s0 = inlined_call_operand.smem [shape: u32[34], index: -1, kind: input, shape index: {}] }
   0x1   :  { %s2983_s5 = sld [smem:[%s3523_s0]]   ;;  %s2920_s14 = smov 3  }
   0x2   :  { %s2988_s9 = sld [smem:[%s3523_s0 + %s2918_s6]]   ;;  %s2921_s18 = smov 4  }
   0x3   :  { %s2993_s13 = sld [smem:[%s3523_s0 + %s2919_s10]]   ;;  %s2922_s22 = smov 5  }
   0x4   :  { %s2998_s17 = sld [smem:[%s3523_s0 + %s2920_s14]]   ;;  %s2923_s26 = smov 6  }
   0x5   :  { %s3003_s21 = sld [smem:[%s3523_s0 + %s2921_s18]]   ;;  %s2924_s30 = smov 7  }
   0x6   :  { %s3008_s25 = sld [smem:[%s3523_s0 + %s2922_s22]]   ;;  %s2925_s4 = smov 8  }
   0x7   :  { %s3013_s29 = sld [smem:[%s3523_s0 + %s2923_s26]]   ;;  %s2926_s10 = smov 9  }
   0x8   :  { %s3018_s3 = sld [smem:[%s3523_s0 + %s2924_s30]]   ;;  %s2927_s15 = smov 10  }
   0x9   :  { %s3023_s8 = sld [smem:[%s3523_s0 + %s2925_s4]]   ;;  %s2928_s20 = smov 11  }
   0xa   :  { %s3028_s14 = sld [smem:[%s3523_s0 + %s2926_s10]]   ;;  %s2929_s26 = smov 12  }
   0xb   :  { %3538 = sst [smem:[#allocation47_spill]] %s3003_s21  ;;  %s2930_s1 = smov 13  }
   0xc   :  { %s3033_s19 = sld [smem:[%s3523_s0 + %s2927_s15]]   ;;  %s2931_s7 = smov 14  }
   0xd   :  { %3539 = sst [smem:[#allocation48_spill]] %s3013_s29  ;;  %s2932_s15 = smov 15  }
   0xe   :  { %s3038_s24 = sld [smem:[%s3523_s0 + %s2928_s20]]   ;;  %s2933_s22 = smov 16  }
   0xf   :  { %3540 = sst [smem:[#allocation49_spill]] %s3023_s8  ;;  %s2934_s28 = smov 17  }
  0x10   :  { %s3043_s30 = sld [smem:[%s3523_s0 + %s2929_s26]]   ;;  %s2944_s16 = smov 27  }
  0x11   :  { %s3048_s6 = sld [smem:[%s3523_s0 + %s2930_s1]]   ;;  %s2945_s23 = smov 28  }
  0x12   :  { %3541 = sst [smem:[#allocation50_spill]] %s3033_s19  ;;  %s2946_s1 = smov 29  }
  0x13   :  { %s3053_s12 = sld [smem:[%s3523_s0 + %s2931_s7]]   ;;  %s2935_s7 = smov 18  }
  0x14   :  { %s3058_s20 = sld [smem:[%s3523_s0 + %s2932_s15]]   ;;  %s2936_s15 = smov 19  }
  0x15   :  { %s3063_s27 = sld [smem:[%s3523_s0 + %s2933_s22]]   ;;  %s2937_s22 = smov 20  }
  0x16   :  { %3542 = sst [smem:[#allocation51_spill]] %s3043_s30  ;;  %s2947_s10 = smov 30  }
  0x17   :  { %3543 = sst [smem:[#allocation52_spill]] %s3048_s6 }
  0x18   :  { %s3068_s4 = sld [smem:[%s3523_s0 + %s2934_s28]]   ;;  %s2938_s28 = smov 21  }
  0x19   :  { %s3073_s6 = sld [smem:[%s3523_s0 + %s2935_s7]]   ;;  %s2939_s7 = smov 22  }
  0x1a   :  { %3544 = sst [smem:[#allocation53_spill]] %s3058_s20 }
  0x1b   :  { %s3078_s20 = sld [smem:[%s3523_s0 + %s2936_s15]]   ;;  %s2940_s15 = smov 23  }
  0x1c   :  { %s3083_s30 = sld [smem:[%s3523_s0 + %s2937_s22]]   ;;  %s2941_s22 = smov 24  }
  0x1d   :  { %s3093_s19 = sld [smem:[%s3523_s0 + %s2939_s7]]   ;;  %s2943_s7 = smov 26  }
  0x1e   :  { %3545 = sst [smem:[#allocation54_spill]] %s3068_s4 }
  0x1f   :  { %s3088_s4 = sld [smem:[%s3523_s0 + %s2938_s28]]   ;;  %s2942_s28 = smov 25  }
  0x20   :  { %s3098_s29 = sld [smem:[%s3523_s0 + %s2940_s15]]  }
  0x21   :  { %s3108_s8 = sld [smem:[%s3523_s0 + %s2942_s28]]  }
  0x22   :  { %3546 = sst [smem:[#allocation55_spill]] %s3083_s30 }
  0x23   :  { %3547 = sst [smem:[#allocation56_spill]] %s3093_s19 }
  0x24   :  { %s3103_s30 = sld [smem:[%s3523_s0 + %s2941_s22]]  }
  0x25   :  { %s2052_s21 = sld [smem:[%s3523_s0 + %s2943_s7]]  }
  0x26   :  { %3548 = sst [smem:[#allocation57_spill]] %s3098_s29 }
  0x27   :  { %3550 = sst [smem:[#allocation59_spill]] %s3108_s8 }
  0x28   :  { %s3116_s29 = sld [smem:[%s3523_s0 + %s2944_s16]]   ;;  %s2948_s16 = smov 31  }
  0x29   :  { %s3126_s8 = sld [smem:[%s3523_s0 + %s2946_s1]]   ;;  %s2950_s1 = smov 33  }
  0x2a   :  { %3549 = sst [smem:[#allocation58_spill]] %s3103_s30 }
  0x2b   :  { %s3121_s30 = sld [smem:[%s3523_s0 + %s2945_s23]]   ;;  %s2949_s23 = smov 32   ;;  %v73_v0 = vstv %s2052_s21 }
  0x2c   :  { %s3131_s19 = sld [smem:[%s3523_s0 + %s2947_s10]]   ;;  %74 = vst [vmem:[#allocation2] sm:$0x1] %v73_v0 }
  0x2d   :  { %s3146_s7 = sld [smem:[%s3523_s0 + %s2950_s1]]  }
  0x2e   :  { %3551 = sst [smem:[#allocation60_spill]] %s3116_s29 }
  0x2f   :  { %s3136_s29 = sld [smem:[%s3523_s0 + %s2948_s16]]  }
  0x31   :  { %3552 = sst [smem:[#allocation61_spill]] %s3121_s30 }
  0x32   :  { %s3141_s30 = sld [smem:[%s3523_s0 + %s2949_s23]]  }
  0x33   :  { %75 = vsyncpa [#allocation4], 0 }
  0x34   :  { %76 = vsyncpa [#allocation7], 0 }
  0x35   :  { %77 = vsyncpa [#allocation10], 0 }
  0x36   :  { %78 = vsyncpa [#allocation13], 0 }
  0x37   :  { %79 = vsyncpa [#allocation16], 0 }
  0x38   :  { %80 = vsyncpa [#allocation19], 0 }
  0x39   :  { %81 = vsyncpa [#allocation22], 0 }
  0x3a   :  { %82 = vsyncpa [#allocation25], 0 }
  0x3b   :  { %83 = vsyncpa [#allocation5], 0 }
  0x3c   :  { %84 = vsyncpa [#allocation28], 0 }
  0x3d   :  { %85 = vsyncpa [#allocation31], 0 }
  0x3e   :  { %86 = vsyncpa [#allocation34], 0  ;;  %s2951_s21 = smov [#allocation6]   ;;  %s2952_s0 = smov [#allocation9]  }
  0x3f   :  { %s109_s10 = sshll.u32 %s2951_s21, 4  ;;  %s135_s11 = sshll.u32 %s2952_s0, 4  ;;  %s110_s10 = int_to_ptr.vmem [resolvable:$true] %s109_s10  ;;  %s136_s11 = int_to_ptr.vmem [resolvable:$true] %s135_s11 }
  0x40   :  { %s2454_s16 = scalar_lea.hbm %s2988_s9, 128 }
  0x41   :  { %p2455_p0 = scmp.ne.s32.totalorder %s2988_s9, %s2454_s16  ;;  %p2458_p1 = scmp.lt.u32.totalorder %s2454_s16, %s2988_s9 }
  0x43   :  { %p2460_p2 = pnand %p2458_p1, %p2455_p0 }
  0x45   :  { %2463 = shalt.err (!%p2460_p2)
}
  0x46   :  { %s2464_s15 = scalar_lea.vmem %s110_s10, 128  ;;  %p2469_p4 = scmp.lt.s32.totalorder %s110_s10, %s110_s10 }
  0x47   :  { %p2465_p3 = scmp.ne.s32.totalorder %s110_s10, %s2464_s15  ;;  %p2470_p5 = scmp.lt.s32.totalorder %s2464_s15, %s2464_s15 }
  0x49   :  { %p2471_p6 = por %p2470_p5, %p2469_p4 }
  0x4b   :  { %p2472_p7 = pnand %p2471_p6, %p2465_p3 }
  0x4d   :  { %2475 = shalt.err (!%p2472_p7)
}
  0x4e   :  { %112 = dma.hbm_to_vmem [thread:$0]  %s2988_s9, 128, %s110_s10, [#allocation7]  }
  0x4f   :  { %s2476_s18 = scalar_lea.hbm %s2998_s17, 64 }
  0x50   :  { %p2477_p8 = scmp.ne.s32.totalorder %s2998_s17, %s2476_s18  ;;  %p2480_p9 = scmp.lt.u32.totalorder %s2476_s18, %s2998_s17 }
  0x52   :  { %p2482_p10 = pnand %p2480_p9, %p2477_p8 }
  0x54   :  { %2485 = shalt.err (!%p2482_p10)
}
  0x55   :  { %s2486_s23 = scalar_lea.vmem %s136_s11, 64  ;;  %p2491_p12 = scmp.lt.s32.totalorder %s136_s11, %s136_s11 }
  0x56   :  { %p2487_p11 = scmp.ne.s32.totalorder %s136_s11, %s2486_s23  ;;  %p2492_p13 = scmp.lt.s32.totalorder %s2486_s23, %s2486_s23 }
  0x58   :  { %p2493_p0 = por %p2492_p13, %p2491_p12 }
  0x5a   :  { %p2494_p1 = pnand %p2493_p0, %p2487_p11 }
  0x5c   :  { %2497 = shalt.err (!%p2494_p1)
}
  0x5d   :  { %138 = dma.hbm_to_vmem [thread:$0]  %s2998_s17, 64, %s136_s11, [#allocation10]  }
  0x5e   :  { %s2953_s22 = smov [#allocation12]   ;;  %s2954_s9 = smov [#allocation15]  }
  0x5f   :  { %s159_s26 = sshll.u32 %s2953_s22, 4  ;;  %s183_s1 = sshll.u32 %s2954_s9, 4  ;;  %s160_s26 = int_to_ptr.vmem [resolvable:$true] %s159_s26  ;;  %s184_s1 = int_to_ptr.vmem [resolvable:$true] %s183_s1 }
  0x60   :  { %s2498_s28 = scalar_lea.hbm %s3018_s3, 16 }
  0x61   :  { %p2499_p2 = scmp.ne.s32.totalorder %s3018_s3, %s2498_s28  ;;  %p2502_p3 = scmp.lt.u32.totalorder %s2498_s28, %s3018_s3 }
  0x63   :  { %p2504_p4 = pnand %p2502_p3, %p2499_p2 }
  0x65   :  { %2507 = shalt.err (!%p2504_p4)
}
  0x66   :  { %s2508_s2 = scalar_lea.vmem %s160_s26, 16  ;;  %s2512_s21 = scalar_lea.vmem %s160_s26, 32 }
  0x67   :  { %p2509_p5 = scmp.ne.s32.totalorder %s160_s26, %s2508_s2  ;;  %p2513_p6 = scmp.lt.s32.totalorder %s160_s26, %s160_s26 }
  0x68   :  { %p2514_p7 = scmp.lt.s32.totalorder %s2512_s21, %s2508_s2 }
  0x6a   :  { %p2515_p8 = por %p2514_p7, %p2513_p6 }
  0x6c   :  { %p2516_p9 = pnand %p2515_p8, %p2509_p5 }
  0x6e   :  { %2519 = shalt.err (!%p2516_p9)
}
  0x6f   :  { %162 = dma.hbm_to_vmem [thread:$0]  %s3018_s3, 16, %s160_s26, [#allocation13]  }
  0x70   :  { %s2520_s17 = scalar_lea.hbm %s3038_s24, 16 }
  0x71   :  { %p2521_p10 = scmp.ne.s32.totalorder %s3038_s24, %s2520_s17  ;;  %p2524_p11 = scmp.lt.u32.totalorder %s2520_s17, %s3038_s24 }
  0x73   :  { %p2526_p12 = pnand %p2524_p11, %p2521_p10 }
  0x75   :  { %2529 = shalt.err (!%p2526_p12)
}
  0x76   :  { %s2530_s10 = scalar_lea.vmem %s184_s1, 16  ;;  %s2534_s0 = scalar_lea.vmem %s184_s1, 32 }
  0x77   :  { %p2531_p13 = scmp.ne.s32.totalorder %s184_s1, %s2530_s10  ;;  %p2535_p0 = scmp.lt.s32.totalorder %s184_s1, %s184_s1 }
  0x78   :  { %p2536_p1 = scmp.lt.s32.totalorder %s2534_s0, %s2530_s10 }
  0x7a   :  { %p2537_p2 = por %p2536_p1, %p2535_p0 }
  0x7c   :  { %p2538_p3 = pnand %p2537_p2, %p2531_p13 }
  0x7e   :  { %2541 = shalt.err (!%p2538_p3)
}
  0x7f   :  { %186 = dma.hbm_to_vmem [thread:$0]  %s3038_s24, 16, %s184_s1, [#allocation16]  }
  0x80   :  { %s2955_s11 = smov [#allocation18]   ;;  %s2956_s16 = smov [#allocation21]  }
  0x81   :  { %s209_s3 = sshll.u32 %s2955_s11, 4  ;;  %s230_s15 = sshll.u32 %s2956_s16, 4  ;;  %s210_s3 = int_to_ptr.vmem [resolvable:$true] %s209_s3  ;;  %s3164_s15 = int_to_ptr.vmem [resolvable:$true] %s230_s15 }
  0x82   :  { %s2542_s18 = scalar_lea.hbm %s3063_s27, 64 }
  0x83   :  { %p2543_p4 = scmp.ne.s32.totalorder %s3063_s27, %s2542_s18  ;;  %p2546_p5 = scmp.lt.u32.totalorder %s2542_s18, %s3063_s27 }
  0x85   :  { %p2548_p6 = pnand %p2546_p5, %p2543_p4 }
  0x87   :  { %2551 = shalt.err (!%p2548_p6)
}
  0x88   :  { %s2552_s23 = scalar_lea.vmem %s210_s3, 64  ;;  %p2557_p8 = scmp.lt.s32.totalorder %s210_s3, %s210_s3 }
  0x89   :  { %p2553_p7 = scmp.ne.s32.totalorder %s210_s3, %s2552_s23  ;;  %p2558_p9 = scmp.lt.s32.totalorder %s2552_s23, %s2552_s23 }
  0x8b   :  { %p2559_p10 = por %p2558_p9, %p2557_p8 }
  0x8d   :  { %p2560_p11 = pnand %p2559_p10, %p2553_p7 }
  0x8f   :  { %2563 = shalt.err (!%p2560_p11)
}
  0x90   :  { %212 = dma.hbm_to_vmem [thread:$0]  %s3063_s27, 64, %s210_s3, [#allocation19]  }
  0x91   :  { %s2564_s24 = scalar_lea.hbm %s3078_s20, 128 }
  0x92   :  { %p2565_p12 = scmp.ne.s32.totalorder %s3078_s20, %s2564_s24  ;;  %p2568_p13 = scmp.lt.u32.totalorder %s2564_s24, %s3078_s20 }
  0x94   :  { %p2570_p0 = pnand %p2568_p13, %p2565_p12 }
  0x96   :  { %2573 = shalt.err (!%p2570_p0)
}
  0x97   :  { %s2574_s22 = scalar_lea.vmem %s3164_s15, 128  ;;  %p2579_p2 = scmp.lt.s32.totalorder %s3164_s15, %s3164_s15 }
  0x98   :  { %p2575_p1 = scmp.ne.s32.totalorder %s3164_s15, %s2574_s22  ;;  %p2580_p3 = scmp.lt.s32.totalorder %s2574_s22, %s2574_s22 }
  0x9a   :  { %p2581_p4 = por %p2580_p3, %p2579_p2 }
  0x9c   :  { %p2582_p5 = pnand %p2581_p4, %p2575_p1 }
  0x9e   :  { %2585 = shalt.err (!%p2582_p5)
}
  0x9f   :  { %s2957_s26 = smov 64   ;;  %s2958_s27 = smov 4  }
  0xa0   :  { %236 = dma.hbm_to_vmem [thread:$0]  %s3078_s20, 128, %s3164_s15, [#allocation22], %s2957_s26, %s2957_s26, %s2958_s27  }
  0xa1   :  { %s2959_s9 = smov [#allocation3]   ;;  %s2960_s28 = smov [#allocation8]  }
  0xa2   :  { %s96_s1 = sshll.u32 %s2959_s9, 4  ;;  %s122_s2 = sshll.u32 %s2960_s28, 4  ;;  %s97_s1 = int_to_ptr.vmem [resolvable:$true] %s96_s1  ;;  %s123_s2 = int_to_ptr.vmem [resolvable:$true] %s122_s2 }
  0xa3   :  { %s2586_s21 = scalar_lea.hbm %s2983_s5, 128 }
  0xa4   :  { %p2587_p6 = scmp.ne.s32.totalorder %s2983_s5, %s2586_s21  ;;  %p2590_p7 = scmp.lt.u32.totalorder %s2586_s21, %s2983_s5 }
  0xa6   :  { %p2592_p8 = pnand %p2590_p7, %p2587_p6 }
  0xa8   :  { %2595 = shalt.err (!%p2592_p8)
}
  0xa9   :  { %s2596_s17 = scalar_lea.vmem %s97_s1, 128  ;;  %p2601_p10 = scmp.lt.s32.totalorder %s97_s1, %s97_s1 }
  0xaa   :  { %p2597_p9 = scmp.ne.s32.totalorder %s97_s1, %s2596_s17  ;;  %p2602_p11 = scmp.lt.s32.totalorder %s2596_s17, %s2596_s17 }
  0xac   :  { %p2603_p12 = por %p2602_p11, %p2601_p10 }
  0xae   :  { %p2604_p13 = pnand %p2603_p12, %p2597_p9 }
  0xb0   :  { %2607 = shalt.err (!%p2604_p13)
}
  0xb1   :  { %99 = dma.hbm_to_vmem [thread:$0]  %s2983_s5, 128, %s97_s1, [#allocation4]  }
  0xb2   :  { %s2608_s20 = scalar_lea.hbm %s2993_s13, 64 }
  0xb3   :  { %p2609_p0 = scmp.ne.s32.totalorder %s2993_s13, %s2608_s20  ;;  %p2612_p1 = scmp.lt.u32.totalorder %s2608_s20, %s2993_s13 }
  0xb5   :  { %p2614_p2 = pnand %p2612_p1, %p2609_p0 }
  0xb7   :  { %2617 = shalt.err (!%p2614_p2)
}
  0xb8   :  { %s2618_s10 = scalar_lea.vmem %s123_s2, 64  ;;  %p2623_p4 = scmp.lt.s32.totalorder %s123_s2, %s123_s2 }
  0xb9   :  { %p2619_p3 = scmp.ne.s32.totalorder %s123_s2, %s2618_s10  ;;  %p2624_p5 = scmp.lt.s32.totalorder %s2618_s10, %s2618_s10 }
  0xbb   :  { %p2625_p6 = por %p2624_p5, %p2623_p4 }
  0xbd   :  { %p2626_p7 = pnand %p2625_p6, %p2619_p3 }
  0xbf   :  { %2629 = shalt.err (!%p2626_p7)
}
  0xc0   :  { %125 = dma.hbm_to_vmem [thread:$0]  %s2993_s13, 64, %s123_s2, [#allocation7]  }
  0xc1   :  { %s2961_s0 = smov [#allocation11]   ;;  %s2962_s5 = smov [#allocation14]  }
  0xc2   :  { %s147_s11 = sshll.u32 %s2961_s0, 4  ;;  %s171_s3 = sshll.u32 %s2962_s5, 4  ;;  %s148_s11 = int_to_ptr.vmem [resolvable:$true] %s147_s11  ;;  %s172_s3 = int_to_ptr.vmem [resolvable:$true] %s171_s3 }
  0xc3   :  { %s2630_s16 = scalar_lea.hbm %s3008_s25, 64 }
  0xc4   :  { %p2631_p8 = scmp.ne.s32.totalorder %s3008_s25, %s2630_s16  ;;  %p2634_p9 = scmp.lt.u32.totalorder %s2630_s16, %s3008_s25 }
  0xc6   :  { %p2636_p10 = pnand %p2634_p9, %p2631_p8 }
  0xc8   :  { %2639 = shalt.err (!%p2636_p10)
}
  0xc9   :  { %s2640_s15 = scalar_lea.vmem %s148_s11, 64  ;;  %p2645_p12 = scmp.lt.s32.totalorder %s148_s11, %s148_s11 }
  0xca   :  { %p2641_p11 = scmp.ne.s32.totalorder %s148_s11, %s2640_s15  ;;  %p2646_p13 = scmp.lt.s32.totalorder %s2640_s15, %s2640_s15 }
  0xcc   :  { %p2647_p0 = por %p2646_p13, %p2645_p12 }
  0xce   :  { %p2648_p1 = pnand %p2647_p0, %p2641_p11 }
  0xd0   :  { %2651 = shalt.err (!%p2648_p1)
}
  0xd1   :  { %150 = dma.hbm_to_vmem [thread:$0]  %s3008_s25, 64, %s148_s11, [#allocation10]  }
  0xd2   :  { %s2652_s13 = scalar_lea.hbm %s3028_s14, 64 }
  0xd3   :  { %p2653_p2 = scmp.ne.s32.totalorder %s3028_s14, %s2652_s13  ;;  %p2656_p3 = scmp.lt.u32.totalorder %s2652_s13, %s3028_s14 }
  0xd5   :  { %p2658_p4 = pnand %p2656_p3, %p2653_p2 }
  0xd7   :  { %2661 = shalt.err (!%p2658_p4)
}
  0xd8   :  { %s2662_s18 = scalar_lea.vmem %s172_s3, 64  ;;  %p2667_p6 = scmp.lt.s32.totalorder %s172_s3, %s172_s3 }
  0xd9   :  { %p2663_p5 = scmp.ne.s32.totalorder %s172_s3, %s2662_s18  ;;  %p2668_p7 = scmp.lt.s32.totalorder %s2662_s18, %s2662_s18 }
  0xdb   :  { %p2669_p8 = por %p2668_p7, %p2667_p6 }
  0xdd   :  { %p2670_p9 = pnand %p2669_p8, %p2663_p5 }
  0xdf   :  { %2673 = shalt.err (!%p2670_p9)
}
  0xe0   :  { %174 = dma.hbm_to_vmem [thread:$0]  %s3028_s14, 64, %s172_s3, [#allocation13]  }
  0xe1   :  { %s2963_s23 = smov [#allocation17]   ;;  %s2964_s25 = smov [#allocation20]  }
  0xe2   :  { %s197_s24 = sshll.u32 %s2963_s23, 4  ;;  %s221_s22 = sshll.u32 %s2964_s25, 4  ;;  %s198_s24 = int_to_ptr.vmem [resolvable:$true] %s197_s24  ;;  %s222_s22 = int_to_ptr.vmem [resolvable:$true] %s221_s22 }
  0xe3   :  { %s2674_s9 = scalar_lea.hbm %s3053_s12, 64 }
  0xe4   :  { %p2675_p10 = scmp.ne.s32.totalorder %s3053_s12, %s2674_s9  ;;  %p2678_p11 = scmp.lt.u32.totalorder %s2674_s9, %s3053_s12 }
  0xe6   :  { %p2680_p12 = pnand %p2678_p11, %p2675_p10 }
  0xe8   :  { %2683 = shalt.err (!%p2680_p12)
}
  0xe9   :  { %s2684_s1 = scalar_lea.vmem %s198_s24, 64  ;;  %p2689_p0 = scmp.lt.s32.totalorder %s198_s24, %s198_s24 }
  0xea   :  { %p2685_p13 = scmp.ne.s32.totalorder %s198_s24, %s2684_s1  ;;  %p2690_p1 = scmp.lt.s32.totalorder %s2684_s1, %s2684_s1 }
  0xec   :  { %p2691_p2 = por %p2690_p1, %p2689_p0 }
  0xee   :  { %p2692_p3 = pnand %p2691_p2, %p2685_p13 }
  0xf0   :  { %2695 = shalt.err (!%p2692_p3)
}
  0xf1   :  { %200 = dma.hbm_to_vmem [thread:$0]  %s3053_s12, 64, %s198_s24, [#allocation16]  }
  0xf2   :  { %s2696_s14 = scalar_lea.hbm %s3073_s6, 64 }
  0xf3   :  { %p2697_p4 = scmp.ne.s32.totalorder %s3073_s6, %s2696_s14  ;;  %p2700_p5 = scmp.lt.u32.totalorder %s2696_s14, %s3073_s6 }
  0xf5   :  { %p2702_p6 = pnand %p2700_p5, %p2697_p4 }
  0xf7   :  { %2705 = shalt.err (!%p2702_p6)
}
  0xf8   :  { %s2706_s28 = scalar_lea.vmem %s222_s22, 64  ;;  %p2711_p8 = scmp.lt.s32.totalorder %s222_s22, %s222_s22 }
  0xf9   :  { %p2707_p7 = scmp.ne.s32.totalorder %s222_s22, %s2706_s28  ;;  %p2712_p9 = scmp.lt.s32.totalorder %s2706_s28, %s2706_s28 }
  0xfb   :  { %p2713_p10 = por %p2712_p9, %p2711_p8 }
  0xfd   :  { %p2714_p11 = pnand %p2713_p10, %p2707_p7 }
  0xff   :  { %2717 = shalt.err (!%p2714_p11)
}
 0x100   :  { %224 = dma.hbm_to_vmem [thread:$0]  %s3073_s6, 64, %s222_s22, [#allocation19]  }
 0x101   :  { %s2965_s2 = smov [#allocation23]   ;;  %s2966_s12 = smov [#allocation24]  }
 0x102   :  { %s245_s21 = sshll.u32 %s2965_s2, 4  ;;  %s254_s17 = sshll.u32 %s2966_s12, 4  ;;  %s246_s21 = int_to_ptr.vmem [resolvable:$true] %s245_s21  ;;  %s3206_s17 = int_to_ptr.vmem [resolvable:$true] %s254_s17 }
 0x103   :  { %s2718_s20 = scalar_lea.hbm %s3088_s4, 64 }
 0x104   :  { %p2719_p12 = scmp.ne.s32.totalorder %s3088_s4, %s2718_s20  ;;  %p2722_p13 = scmp.lt.u32.totalorder %s2718_s20, %s3088_s4 }
 0x106   :  { %p2724_p0 = pnand %p2722_p13, %p2719_p12 }
 0x108   :  { %2727 = shalt.err (!%p2724_p0)
}
 0x109   :  { %s2728_s10 = scalar_lea.vmem %s246_s21, 64  ;;  %p2733_p2 = scmp.lt.s32.totalorder %s246_s21, %s246_s21 }
 0x10a   :  { %p2729_p1 = scmp.ne.s32.totalorder %s246_s21, %s2728_s10  ;;  %p2734_p3 = scmp.lt.s32.totalorder %s2728_s10, %s2728_s10 }
 0x10c   :  { %p2735_p4 = por %p2734_p3, %p2733_p2 }
 0x10e   :  { %p2736_p5 = pnand %p2735_p4, %p2729_p1 }
 0x110   :  { %2739 = shalt.err (!%p2736_p5)
}
 0x111   :  { %s3553_s6 = sld [smem:[#allocation56_spill]] }
 0x112   :  { %248 = dma.hbm_to_vmem [thread:$0]  %s3088_s4, 64, %s246_s21, [#allocation22]  }
 0x117   :  { %s2740_s0 = scalar_lea.hbm %s3553_s6, 128 }
 0x118   :  { %p2741_p6 = scmp.ne.s32.totalorder %s3553_s6, %s2740_s0  ;;  %p2744_p7 = scmp.lt.u32.totalorder %s2740_s0, %s3553_s6 }
 0x11a   :  { %p2746_p8 = pnand %p2744_p7, %p2741_p6 }
 0x11c   :  { %2749 = shalt.err (!%p2746_p8)
}
 0x11d   :  { %s2750_s11 = scalar_lea.vmem %s3206_s17, 128  ;;  %p2755_p10 = scmp.lt.s32.totalorder %s3206_s17, %s3206_s17 }
 0x11e   :  { %p2751_p9 = scmp.ne.s32.totalorder %s3206_s17, %s2750_s11  ;;  %p2756_p11 = scmp.lt.s32.totalorder %s2750_s11, %s2750_s11 }
 0x120   :  { %p2757_p12 = por %p2756_p11, %p2755_p10 }
 0x122   :  { %p2758_p13 = pnand %p2757_p12, %p2751_p9 }
 0x124   :  { %2761 = shalt.err (!%p2758_p13)
}
 0x125   :  { %260 = dma.hbm_to_vmem [thread:$0]  %s3553_s6, 128, %s3206_s17, [#allocation25], %s2957_s26, %s2957_s26, %s2958_s27  }
 0x126   :  { %2894 = dma.done.wait [#allocation4], 128  }
 0x127   :  { %2895 = vsyncadd [#allocation4], 4294967168 }
 0x128   :  { %2896 = dma.done.wait [#allocation7], 192  }
 0x129   :  { %2897 = vsyncadd [#allocation7], 4294967104 }
 0x12a   :  { %2898 = dma.done.wait [#allocation10], 128  }
 0x12b   :  { %2899 = vsyncadd [#allocation10], 4294967168 }
 0x12c   :  { %2900 = dma.done.wait [#allocation13], 80  }
 0x12d   :  { %2901 = vsyncadd [#allocation13], 4294967216 }
 0x12e   :  { %2902 = dma.done.wait [#allocation16], 80  }
 0x12f   :  { %2903 = vsyncadd [#allocation16], 4294967216 }
 0x130   :  { %2904 = dma.done.wait [#allocation19], 128  }
 0x131   :  { %2905 = vsyncadd [#allocation19], 4294967168 }
 0x132   :  { %2906 = dma.done.wait [#allocation22], 192  }
 0x133   :  { %2907 = vsyncadd [#allocation22], 4294967104 }
 0x134   :  { %2908 = dma.done.wait [#allocation25], 128  }
 0x135   :  { %2909 = vsyncadd [#allocation25], 4294967168  ;;  %s3554_s4 = sld [smem:[#allocation47_spill]]  ;;  %s3555_s5 = sld [smem:[#allocation49_spill]]  ;;  %vm336_vm0 = vcmask 261120   ;;  %v2967_v1 = vmov 0.0  }
 0x136   :  { %2201 = vmatprep.subr.bf16.mxu0 %v2967_v1  ;;  %vm2968_vm1 = vmmov 0   ;;  %337 = vst.msk [vmem:[#allocation33] sm:$0xff] %vm336_vm0, %v2967_v1  ;;  %2209 = vmatprep.subr.bf16.mxu1 %v2967_v1  ;;  %v340_v4 = vld [vmem:[#allocation8] sm:$0xf]  ;;  %v505_v7 = vld [vmem:[#allocation9] sm:$0xf] }
 0x137   :  { %2205 = vmatprep.mubr.msk.bf16.mxu0 %vm2968_vm1, %v2967_v1  ;;  %2213 = vmatprep.mubr.msk.bf16.mxu1 %vm2968_vm1, %v2967_v1  ;;  %v2060_v8 = vld [vmem:[#allocation11] ss:$0 sm:$0xff]  ;;  %s3556_s26 = sld [smem:[#allocation48_spill]]  ;;  %v2070_v16 = vld [vmem:[#allocation14] ss:$0 sm:$0xff]  ;;  %s3557_s27 = sld [smem:[#allocation50_spill]] }
 0x138   :  { %v2064_v46 = vld [vmem:[#allocation11 + $0x1] ss:$0 sm:$0xff]  ;;  %v2065_v48 = vld [vmem:[#allocation11 + $0x2] ss:$0 sm:$0xff]  ;;  %v2074_v55 = vld [vmem:[#allocation14 + $0x1] ss:$0 sm:$0xff] }
 0x139   :  { %s3558_s3 = sld [smem:[#allocation51_spill]]  ;;  %v2075_v58 = vld [vmem:[#allocation14 + $0x2] ss:$0 sm:$0xff]  ;;  %s3559_s16 = sld [smem:[#allocation52_spill]]  ;;  %vm794_vm2 = vcmask 130048   ;;  %vm1047_vm3 = vcmask 253952  }
 0x13a   :  { %s3560_s15 = sld [smem:[#allocation54_spill]]  ;;  %s3561_s13 = sld [smem:[#allocation53_spill]] }
 0x13b   :  { %v2394_v2 = vld [vmem:[%s3554_s4] sm:$0xff]   ;;  %v2395_v3 = vld [vmem:[%s3554_s4 + $0x8] sm:$0xff]   ;;  %s3562_s18 = sld [smem:[#allocation55_spill]]  ;;  %s3563_s23 = sld [smem:[#allocation57_spill]] }
 0x13c   :  { %2202 = vmatpush3.bf16.msra.mxu0 %v2394_v2  ;;  %v2396_v5 = vld [vmem:[%s3555_s5] sm:$0xff]   ;;  %v2397_v6 = vld [vmem:[%s3555_s5 + $0x8] sm:$0xff]   ;;  %s3564_s24 = sld [smem:[#allocation58_spill]]  ;;  %s3565_s25 = sld [smem:[#allocation59_spill]] }
 0x13d   :  { %2203 = vmatprep.subr.bf16.mxu0 %v2967_v1  ;;  %v2398_v26 = vld [vmem:[%s3556_s26] sm:$0xff]   ;;  %v2399_v27 = vld [vmem:[%s3556_s26 + $0x8] sm:$0xff]   ;;  %s2969_s22 = smov [#allocation27]   ;;  %s2970_s1 = smov [#allocation30]  }
 0x13e   :  { %2210 = vmatpush3.bf16.msra.mxu1 %v2398_v26  ;;  %v2400_v54 = vld [vmem:[%s3557_s27] sm:$0xff]   ;;  %v2401_v60 = vld [vmem:[%s3557_s27 + $0x8] sm:$0xff]   ;;  %s1926_s9 = sshll.u32 %s2969_s22, 4  ;;  %s1952_s14 = sshll.u32 %s2970_s1, 4  ;;  %s1927_s9 = int_to_ptr.vmem [resolvable:$true] %s1926_s9  ;;  %s1953_s14 = int_to_ptr.vmem [resolvable:$true] %s1952_s14 }
 0x13f   :  { %2211 = vmatprep.subr.bf16.mxu1 %v2967_v1  ;;  %v2402_v0 = vld [vmem:[%s3558_s3] sm:$0xff]   ;;  %v2403_v2 = vld [vmem:[%s3558_s3 + $0x8] sm:$0xff]   ;;  %s2762_s28 = scalar_lea.vmem %s1927_s9, 128  ;;  %p2767_p1 = scmp.lt.s32.totalorder %s1927_s9, %s1927_s9 }
 0x140   :  { %2204 = vmatpush3.bf16.msra.mxu0 %v2395_v3  ;;  %v2404_v3 = vld [vmem:[%s3559_s16] sm:$0xff]   ;;  %v2409_v26 = vld [vmem:[%s3561_s13 + $0x8] sm:$0xff]   ;;  %p2763_p0 = scmp.ne.s32.totalorder %s1927_s9, %s2762_s28  ;;  %p2768_p2 = scmp.lt.s32.totalorder %s2762_s28, %s2762_s28 }
 0x141   :  { %2217 = vmatprep.subr.bf16.mxu0 %v2967_v1 }
 0x142   :  { %2212 = vmatpush3.bf16.msra.mxu1 %v2399_v27  ;;  %p2769_p3 = por %p2768_p2, %p2767_p1 }
 0x143   :  { %2206 = vmatmul.mubr.msk.bf16.vlgmr.msra.gmra.mrb[0].mxu0 %vm336_vm0, %v340_v4  ;;  %2225 = vmatprep.subr.bf16.mxu1 %v2967_v1  ;;  %v2406_v4 = vld [vmem:[%s3559_s16 + $0x8] sm:$0xff]  }
 0x144   :  { %2218 = vmatpush3.bf16.msra.mxu0 %v2396_v5  ;;  %2221 = vmatprep.mubr.msk.bf16.mxu0 %vm2968_vm1, %v2967_v1  ;;  %v3272_v5 = vld [vmem:[#allocation3] sm:$0xff]  ;;  %p2770_p4 = pnand %p2769_p3, %p2763_p0 }
 0x145   :  { %2219 = vmatprep.subr.bf16.mxu0 %v2967_v1 }
 0x148   :  { %2220 = vmatpush3.bf16.msra.mxu0 %v2397_v6 }
 0x149   :  { %2233 = vmatprep.subr.bf16.mxu0 %v2967_v1 }
 0x14b   :  { %2222 = vmatmul.mubr.msk.bf16.vlgmr.msra.gmra.mrb[4].mxu0 %vm336_vm0, %v505_v7  ;;  %v2069_v7 = vld [vmem:[#allocation12] ss:$0 sm:$0xff] }
 0x14c   :  { %2237 = vmatprep.mubr.msk.bf16.mxu0 %vm2968_vm1, %v2967_v1  ;;  %2234 = vmatpush3.bf16.msra.mxu0 %v2404_v3 }
 0x14d   :  { %2235 = vmatprep.subr.bf16.mxu0 %v2967_v1 }
 0x150   :  { %2236 = vmatpush3.bf16.msra.mxu0 %v2406_v4 }
 0x151   :  { %2249 = vmatprep.subr.bf16.mxu0 %v2967_v1 }
 0x216   :  { %v400_v9 = vpop.f32.mrb[0].mxu0 }
 0x217   :  { %v401_v10 = vadd.f32 %v2060_v8, %v400_v9  ;;  %v2207_v11 = vpop.f32.mrb[1].mxu0 }
 0x218   :  { %v403_v12 = vpop.f32.mrb[2].mxu0 }
 0x219   :  { %v2208_v13 = vpop.f32.mrb[3].mxu0  ;;  %v406_v14 = vsel %vm336_vm0, %v401_v10, 0.0  ;;  %v411_v15 = vmul.f32 %v401_v10, %v401_v10 }
 0x21a   :  { %407 = vadd.xlane.f32.xlu0 %v406_v14  ;;  %v2405_v13 = vld [vmem:[%s3560_s15] sm:$0xff]  }
 0x21b   :  { %v412_v17 = vsel %vm336_vm0, %v411_v15, 0.0  ;;  %v3276_v15 = vld [vmem:[#allocation6] sm:$0xff] }
 0x21e   :  { %413 = vadd.xlane.f32.xlu0 %v412_v17  ;;  %v564_v18 = vpop.f32.mrb[4].mxu0  ;;  %v2079_v17 = vld [vmem:[#allocation15] ss:$0 sm:$0xff] }
 0x21f   :  { %v565_v19 = vadd.f32 %v2070_v16, %v564_v18  ;;  %v2223_v20 = vpop.f32.mrb[5].mxu0  ;;  %v2407_v18 = vld [vmem:[%s3560_s15 + $0x8] sm:$0xff]  }
 0x220   :  { %v567_v21 = vpop.f32.mrb[6].mxu0 }
 0x221   :  { %v2224_v22 = vpop.f32.mrb[7].mxu0  ;;  %v570_v23 = vsel %vm336_vm0, %v565_v19, 0.0  ;;  %v574_v24 = vmul.f32 %v565_v19, %v565_v19 }
 0x222   :  { %571 = vadd.xlane.f32.xlu1 %v570_v23 }
 0x223   :  { %v575_v25 = vsel %vm336_vm0, %v574_v24, 0.0  ;;  %v2408_v24 = vld [vmem:[%s3561_s13] sm:$0xff]  }
 0x226   :  { %576 = vadd.xlane.f32.xlu1 %v575_v25 }
 0x2a7   :  { %v408_v28 = vpop.xlane.xlu0 %407 }
 0x2a8   :  { %v410_v29 = vmul.f32 0.03125, %v408_v28 }
 0x2aa   :  { %v416_v31 = vmul.f32 %v410_v29, %v410_v29  ;;  %v419_v44 = vsub.f32 %v401_v10, %v410_v29 }
 0x2ab   :  { %v414_v30 = vpop.xlane.xlu0 %413 }
 0x2ac   :  { %v415_v32 = vmul.f32 0.03125, %v414_v30 }
 0x2ae   :  { %v417_v33 = vsub.f32 %v415_v32, %v416_v31 }
 0x2af   :  { %v572_v34 = vpop.xlane.xlu1 %571 }
 0x2b0   :  { %v418_v35 = vmax.f32 %v417_v33, 0.0  ;;  %v573_v36 = vmul.f32 0.03125, %v572_v34 }
 0x2b2   :  { %v420_v37 = vadd.f32 1e-05, %v418_v35  ;;  %v579_v39 = vmul.f32 %v573_v36, %v573_v36  ;;  %v582_v51 = vsub.f32 %v565_v19, %v573_v36 }
 0x2b3   :  { %v577_v38 = vpop.xlane.xlu1 %576 }
 0x2b4   :  { %2426 = vrsqrt.f32 %v420_v37  ;;  %v578_v40 = vmul.f32 0.03125, %v577_v38 }
 0x2b6   :  { %v580_v41 = vsub.f32 %v578_v40, %v579_v39  ;;  %v3298_v40 = vld [vmem:[#allocation20] ss:$0 sm:$0xff] }
 0x2b8   :  { %v581_v42 = vmax.f32 %v580_v41, 0.0  ;;  %v2092_v41 = vld [vmem:[#allocation18] ss:$0 sm:$0xff] }
 0x2ba   :  { %v583_v43 = vadd.f32 1e-05, %v581_v42 }
 0x2bc   :  { %2428 = vrsqrt.f32 %v583_v43 }
 0x2be   :  { %v2427_v45 = vpop.eup %2426 }
 0x2bf   :  { %v422_v47 = vmul.f32 %v2427_v45, %v419_v44 }
 0x2c1   :  { %v428_v49 = vmul.f32 %v2064_v46, %v422_v47  ;;  %v3303_v46 = vld [vmem:[#allocation17] ss:$0 sm:$0xff] }
 0x2c3   :  { %v434_v50 = vadd.f32 %v2065_v48, %v428_v49 }
 0x2c5   :  { %v435_v52 = vmax.f32 %v434_v50, 0.0 }
 0x2c6   :  { %v2429_v53 = vpop.eup %2428 }
 0x2c7   :  { %v585_v56 = vmul.f32 %v2429_v53, %v582_v51  ;;  %v436_v57 = vpack.c.bf16 %v435_v52, %v435_v52 }
 0x2c9   :  { %2214 = vmatmul.mubr.msk.bf16.vlgmr.msra.gmra.mrb[0].mxu1 %vm336_vm0, %v436_v57  ;;  %v591_v59 = vmul.f32 %v2074_v55, %v585_v56 }
 0x2ca   :  { %2226 = vmatpush3.bf16.msra.mxu1 %v2400_v54  ;;  %2229 = vmatprep.mubr.msk.bf16.mxu1 %vm2968_vm1, %v2967_v1 }
 0x2cb   :  { %2227 = vmatprep.subr.bf16.mxu1 %v2967_v1  ;;  %v597_v61 = vadd.f32 %v2075_v58, %v591_v59  ;;  %v2410_v59 = vld [vmem:[%s3562_s18] sm:$0xff]  }
 0x2cd   :  { %v598_v62 = vmax.f32 %v597_v61, 0.0  ;;  %v2413_v61 = vld [vmem:[#allocation21] sm:$0xff]  }
 0x2ce   :  { %2228 = vmatpush3.bf16.msra.mxu1 %v2401_v60  ;;  %v2411_v60 = vld [vmem:[%s3562_s18 + $0x8] sm:$0xff]  }
 0x2cf   :  { %v599_v63 = vpack.c.bf16 %v598_v62, %v598_v62  ;;  %2241 = vmatprep.subr.bf16.mxu1 %v2967_v1 }
 0x2d1   :  { %2230 = vmatmul.mubr.msk.bf16.vlgmr.msra.gmra.mrb[4].mxu1 %vm336_vm0, %v599_v63 }
 0x2d2   :  { %2245 = vmatprep.mubr.msk.bf16.mxu1 %vm2968_vm1, %v2967_v1  ;;  %2242 = vmatpush3.bf16.msra.mxu1 %v2402_v0 }
 0x2d3   :  { %2243 = vmatprep.subr.bf16.mxu1 %v2967_v1 }
 0x2d6   :  { %2244 = vmatpush3.bf16.msra.mxu1 %v2403_v2 }
 0x2d7   :  { %2257 = vmatprep.subr.bf16.mxu1 %v2967_v1 }
 0x39c   :  { %v490_v6 = vpop.f32.mrb[0].mxu1 }
 0x39d   :  { %v496_v8 = vadd.f32 %v490_v6, %v3272_v5  ;;  %v2215_v9 = vpop.f32.mrb[1].mxu1 }
 0x39e   :  { %v493_v10 = vpop.f32.mrb[2].mxu1 }
 0x39f   :  { %v504_v11 = vadd.f32 %v2069_v7, %v496_v8  ;;  %v2216_v12 = vpop.f32.mrb[3].mxu1 }
 0x3a1   :  { %v668_v14 = vpack.c.bf16 %v504_v11, %v504_v11 }
 0x3a3   :  { %2246 = vmatmul.mubr.msk.bf16.vlgmr.msra.gmra.mrb[8].mxu1 %vm336_vm0, %v668_v14 }
 0x3a4   :  { %v653_v16 = vpop.f32.mrb[4].mxu1  ;;  %2258 = vmatpush3.bf16.msra.mxu1 %v2405_v13  ;;  %2261 = vmatprep.mubr.msk.bf16.mxu1 %vm2968_vm1, %v2967_v1 }
 0x3a5   :  { %v659_v19 = vadd.f32 %v653_v16, %v3276_v15  ;;  %v2231_v20 = vpop.f32.mrb[5].mxu1  ;;  %2259 = vmatprep.subr.bf16.mxu1 %v2967_v1 }
 0x3a6   :  { %v656_v21 = vpop.f32.mrb[6].mxu1 }
 0x3a7   :  { %v667_v22 = vadd.f32 %v2079_v17, %v659_v19  ;;  %v2232_v23 = vpop.f32.mrb[7].mxu1 }
 0x3a8   :  { %2260 = vmatpush3.bf16.msra.mxu1 %v2407_v18 }
 0x3a9   :  { %v669_v25 = vpack.c.bf16 %v667_v22, %v667_v22  ;;  %2273 = vmatprep.subr.bf16.mxu1 %v2967_v1 }
 0x3ab   :  { %2238 = vmatmul.mubr.msk.bf16.vlgmr.msra.gmra.mrb[8].mxu0 %vm336_vm0, %v669_v25  ;;  %2262 = vmatmul.mubr.msk.bf16.vlgmr.msra.gmra.mrb[12].mxu1 %vm336_vm0, %v669_v25 }
 0x3ac   :  { %2250 = vmatpush3.bf16.msra.mxu0 %v2408_v24  ;;  %2253 = vmatprep.mubr.msk.bf16.mxu0 %vm2968_vm1, %v2967_v1 }
 0x3ad   :  { %2251 = vmatprep.subr.bf16.mxu0 %v2967_v1  ;;  %2275 = vmatprep.mubr.msk.bf16.mxu1 %vm2968_vm1, %v2967_v1 }
 0x3ae   :  { %2274 = vmatpush3.bf16.msra.mxu1 %v2413_v61 }
 0x3af   :  { %2287 = vmatprep.subr.bf16.mxu1 %v2967_v1 }
 0x3b0   :  { %2252 = vmatpush3.bf16.msra.mxu0 %v2409_v26 }
 0x3b1   :  { %2265 = vmatprep.subr.bf16.mxu0 %v2967_v1 }
 0x3b3   :  { %2254 = vmatmul.mubr.msk.bf16.vlgmr.msra.gmra.mrb[12].mxu0 %vm336_vm0, %v668_v14 }
 0x3b4   :  { %2269 = vmatprep.mubr.msk.bf16.mxu0 %vm2968_vm1, %v2967_v1  ;;  %2266 = vmatpush3.bf16.msra.mxu0 %v2410_v59  ;;  %v2416_v59 = vld [vmem:[#allocation24] sm:$0xff]  }
 0x3b5   :  { %2267 = vmatprep.subr.bf16.mxu0 %v2967_v1 }
 0x3b8   :  { %2268 = vmatpush3.bf16.msra.mxu0 %v2411_v60 }
 0x3b9   :  { %2279 = vmatprep.subr.bf16.mxu0 %v2967_v1 }
 0x476   :  { %v782_v27 = vpop.f32.mrb[8].mxu1 }
 0x477   :  { %v2247_v28 = vpop.f32.mrb[9].mxu1 }
 0x478   :  { %v785_v29 = vpop.f32.mrb[10].mxu1 }
 0x479   :  { %v2248_v30 = vpop.f32.mrb[11].mxu1  ;;  %v2097_v29 = vld [vmem:[#allocation18 + $0x2] ss:$0 sm:$0xff] }
 0x47e   :  { %v727_v31 = vpop.f32.mrb[8].mxu0  ;;  %v1000_v32 = vpop.f32.mrb[12].mxu1 }
 0x47f   :  { %v783_v33 = vadd.f32 %v782_v27, %v727_v31  ;;  %v2239_v34 = vpop.f32.mrb[9].mxu0  ;;  %v2263_v35 = vpop.f32.mrb[13].mxu1  ;;  %v3301_v43 = vadd.f32 %v3298_v40, %v1000_v32  ;;  %v2096_v27 = vld [vmem:[#allocation18 + $0x1] ss:$0 sm:$0xff] }
 0x480   :  { %v730_v36 = vpop.f32.mrb[10].mxu0  ;;  %v1003_v37 = vpop.f32.mrb[14].mxu1 }
 0x481   :  { %v2240_v38 = vpop.f32.mrb[11].mxu0  ;;  %v2264_v39 = vpop.f32.mrb[15].mxu1  ;;  %v3307_v51 = vadd.f32 %v3303_v46, %v783_v33  ;;  %v1010_v53 = vmul.f32 %v3301_v43, %v3301_v43  ;;  %v1006_v54 = vsel %vm336_vm0, %v3301_v43, 0.0  ;;  %v3326_v33 = vld [vmem:[#allocation20 + $0x1] ss:$0 sm:$0xff] }
 0x482   :  { %v3328_v36 = vld [vmem:[#allocation20 + $0x2] ss:$0 sm:$0xff] }
 0x483   :  { %v1011_v55 = vsel %vm336_vm0, %v1010_v53, 0.0  ;;  %v800_v56 = vmul.f32 %v3307_v51, %v3307_v51  ;;  %v795_v57 = vsel %vm794_vm2, %v3307_v51, 0.0 }
 0x485   :  { %v801_v58 = vsel %vm794_vm2, %v800_v56, 0.0  ;;  %v2415_v56 = vld [vmem:[%s3560_s15] sm:$0xff]  }
 0x486   :  { %v909_v42 = vpop.f32.mrb[12].mxu0 }
 0x487   :  { %v910_v44 = vadd.f32 %v2092_v41, %v909_v42  ;;  %v2255_v45 = vpop.f32.mrb[13].mxu0  ;;  %v2412_v41 = vld [vmem:[%s3563_s23] sm:$0xff]  }
 0x488   :  { %v912_v47 = vpop.f32.mrb[14].mxu0 }
 0x489   :  { %v2256_v48 = vpop.f32.mrb[15].mxu0  ;;  %v915_v49 = vsel %vm336_vm0, %v910_v44, 0.0  ;;  %v919_v50 = vmul.f32 %v910_v44, %v910_v44 }
 0x48a   :  { %916 = vadd.xlane.f32.xlu0 %v915_v49  ;;  %v3338_v48 = vld [vmem:[#allocation17 + $0x2] ss:$0 sm:$0xff] }
 0x48b   :  { %v920_v52 = vsel %vm336_vm0, %v919_v50, 0.0 }
 0x48c   :  { %921 = vadd.xlane.f32.xlu1 %v920_v52 }
 0x48e   :  { %1007 = vadd.xlane.f32.xlu0 %v1006_v54 }
 0x490   :  { %1012 = vadd.xlane.f32.xlu1 %v1011_v55 }
 0x492   :  { %796 = vadd.xlane.f32.xlu0 %v795_v57 }
 0x494   :  { %802 = vadd.xlane.f32.xlu1 %v801_v58 }
 0x517   :  { %v917_v62 = vpop.xlane.xlu0 %916 }
 0x518   :  { %v918_v63 = vmul.f32 0.03125, %v917_v62 }
 0x519   :  { %v922_v0 = vpop.xlane.xlu1 %921 }
 0x51a   :  { %v924_v2 = vmul.f32 %v918_v63, %v918_v63  ;;  %v923_v3 = vmul.f32 0.03125, %v922_v0  ;;  %v927_v25 = vsub.f32 %v910_v44, %v918_v63  ;;  %v3333_v44 = vld [vmem:[#allocation17 + $0x1] ss:$0 sm:$0xff]  ;;  %v2417_v63 = vld [vmem:[%s3560_s15 + $0x8] sm:$0xff]  }
 0x51b   :  { %v1008_v4 = vpop.xlane.xlu0 %1007 }
 0x51c   :  { %v925_v6 = vsub.f32 %v923_v3, %v924_v2  ;;  %v1009_v7 = vmul.f32 0.03125, %v1008_v4  ;;  %v1365_v2 = vpack.c.bf16 %v3276_v15, %v3276_v15  ;;  %v2418_v4 = vld [vmem:[%s3558_s3] sm:$0xff]  }
 0x51d   :  { %v1013_v8 = vpop.xlane.xlu1 %1012 }
 0x51e   :  { %v926_v9 = vmax.f32 %v925_v6, 0.0  ;;  %v1015_v10 = vmul.f32 %v1009_v7, %v1009_v7  ;;  %v1014_v11 = vmul.f32 0.03125, %v1013_v8  ;;  %v1018_v31 = vsub.f32 %v3301_v43, %v1009_v7  ;;  %v1037_v7 = vld [vmem:[#allocation33 + $0x4] sm:$0x1]  ;;  %v2419_v8 = vld [vmem:[%s3558_s3 + $0x8] sm:$0xff]  }
 0x51f   :  { %v797_v12 = vpop.xlane.xlu0 %796 }
 0x520   :  { %v928_v13 = vadd.f32 1e-05, %v926_v9  ;;  %v1016_v14 = vsub.f32 %v1014_v11, %v1015_v10  ;;  %v799_v16 = vmul.f32 0.0625, %v797_v12  ;;  %v1364_v11 = vpack.c.bf16 %v3272_v5, %v3272_v5  ;;  %v2420_v12 = vld [vmem:[%s3559_s16] sm:$0xff]  }
 0x521   :  { %v803_v17 = vpop.xlane.xlu1 %802 }
 0x522   :  { %2430 = vrsqrt.f32 %v928_v13  ;;  %v1017_v18 = vmax.f32 %v1016_v14, 0.0  ;;  %v805_v19 = vmul.f32 %v799_v16, %v799_v16  ;;  %v804_v20 = vmul.f32 0.0625, %v803_v17  ;;  %v2421_v13 = vld [vmem:[%s3559_s16 + $0x8] sm:$0xff]  }
 0x523   :  { %v808_v39 = vsub.f32 %v3307_v51, %v799_v16  ;;  %v2414_v51 = vld [vmem:[%s3563_s23 + $0x8] sm:$0xff]  }
 0x524   :  { %v1019_v21 = vadd.f32 1e-05, %v1017_v18  ;;  %v806_v22 = vsub.f32 %v804_v20, %v805_v19 }
 0x526   :  { %2432 = vrsqrt.f32 %v1019_v21  ;;  %v807_v23 = vmax.f32 %v806_v22, 0.0 }
 0x528   :  { %v809_v24 = vadd.f32 1e-05, %v807_v23 }
 0x52a   :  { %2434 = vrsqrt.f32 %v809_v24 }
 0x52c   :  { %v2431_v26 = vpop.eup %2430 }
 0x52d   :  { %v930_v28 = vmul.f32 %v2431_v26, %v927_v25 }
 0x52f   :  { %v936_v30 = vmul.f32 %v2096_v27, %v930_v28 }
 0x530   :  { %v2433_v32 = vpop.eup %2432 }
 0x531   :  { %v1021_v34 = vmul.f32 %v2433_v32, %v1018_v31  ;;  %v942_v35 = vadd.f32 %v2097_v29, %v936_v30 }
 0x533   :  { %v1027_v37 = vmul.f32 %v3326_v33, %v1021_v34  ;;  %v943_v38 = vmax.f32 %v942_v35, 0.0 }
 0x534   :  { %v2435_v42 = vpop.eup %2434 }
 0x535   :  { %v1051_v45 = vpack.c.bf16 %v943_v38, %v943_v38  ;;  %944 = vst.msk [vmem:[#allocation27] sm:$0xff] %vm336_vm0, %v943_v38  ;;  %v1033_v43 = vadd.f32 %v3328_v36, %v1027_v37  ;;  %v811_v47 = vmul.f32 %v2435_v42, %v808_v39 }
 0x537   :  { %2270 = vmatmul.mubr.msk.bf16.vlgmr.msra.gmra.mrb[16].mxu0 %vm336_vm0, %v1051_v45  ;;  %v1034_v49 = vmax.f32 %v1033_v43, 0.0  ;;  %v817_v50 = vmul.f32 %v3333_v44, %v811_v47 }
 0x538   :  { %2280 = vmatpush3.bf16.msra.mxu0 %v2412_v41  ;;  %2283 = vmatprep.mubr.msk.bf16.mxu0 %vm2968_vm1, %v2967_v1 }
 0x539   :  { %2281 = vmatprep.subr.bf16.mxu0 %v2967_v1  ;;  %v1036_v52 = vsub.f32 %v943_v38, %v1034_v49  ;;  %1035 = vst.msk [vmem:[#allocation29] sm:$0xff] %vm336_vm0, %v1034_v49  ;;  %v823_v53 = vadd.f32 %v3338_v48, %v817_v50  ;;  %v1210_v58 = vpack.c.bf16 %v1034_v49, %v1034_v49 }
 0x53b   :  { %v1038_v54 = vmul.f32 %v1036_v52, %v1036_v52  ;;  %v3347_v55 = vmax.f32 %v823_v53, 0.0 }
 0x53c   :  { %2282 = vmatpush3.bf16.msra.mxu0 %v2414_v51 }
 0x53d   :  { %v1039_v57 = vsel %vm336_vm0, %v1038_v54, 0.0  ;;  %2293 = vmatprep.subr.bf16.mxu0 %v2967_v1  ;;  %v826_v60 = vpack.c.bf16 %v3347_v55, %v3347_v55  ;;  %825 = vst.msk [vmem:[#allocation26] sm:$0xff] %vm794_vm2, %v3347_v55 }
 0x53e   :  { %v1040_v61 = vrot.slane %v1039_v57, 4 }
 0x53f   :  { %2284 = vmatmul.mubr.msk.bf16.vlgmr.msra.gmra.mrb[20].mxu0 %vm336_vm0, %v1210_v58  ;;  %2276 = vmatmul.mubr.msk.bf16.vlgmr.msra.gmra.mrb[16].mxu1 %vm794_vm2, %v826_v60  ;;  %v2109_v58 = vld [vmem:[#allocation23] ss:$0 sm:$0xff] }
 0x540   :  { %v1041_v62 = vadd.f32 %v1040_v61, %v1039_v57  ;;  %2294 = vmatpush3.bf16.msra.mxu0 %v2415_v56  ;;  %2288 = vmatpush3.bf16.msra.mxu1 %v2416_v59 }
 0x541   :  { %2295 = vmatprep.subr.bf16.mxu0 %v2967_v1  ;;  %2289 = vmatprep.mubr.msk.bf16.mxu1 %vm2968_vm1, %v2967_v1 }
 0x542   :  { %v1042_v0 = vrot.slane %v1041_v62, 2  ;;  %2297 = vmatprep.mubr.msk.bf16.mxu0 %vm2968_vm1, %v2967_v1  ;;  %2301 = vmatprep.subr.bf16.mxu1 %v2967_v1 }
 0x544   :  { %v1043_v3 = vadd.f32 %v1042_v0, %v1041_v62  ;;  %2296 = vmatpush3.bf16.msra.mxu0 %v2417_v63  ;;  %v3408_v62 = vld [vmem:[%s3564_s24] ss:$0 sm:$0xff] }
 0x545   :  { %2309 = vmatprep.subr.bf16.mxu0 %v2967_v1 }
 0x546   :  { %v1044_v6 = vrot.slane %v1043_v3, 1 }
 0x547   :  { %2298 = vmatmul.mubr.msk.bf16.vlgmr.msra.gmra.mrb[24].mxu0 %vm336_vm0, %v1365_v2  ;;  %2290 = vmatmul.mubr.msk.bf16.vlgmr.msra.gmra.mrb[20].mxu1 %vm794_vm2, %v826_v60 }
 0x548   :  { %2310 = vmatpush3.bf16.msra.mxu0 %v2418_v4  ;;  %v1045_v9 = vadd.f32 %v1044_v6, %v1043_v3  ;;  %2313 = vmatprep.mubr.msk.bf16.mxu0 %vm2968_vm1, %v2967_v1 }
 0x549   :  { %2311 = vmatprep.subr.bf16.mxu0 %v2967_v1  ;;  %2305 = vmatprep.mubr.msk.bf16.mxu1 %vm2968_vm1, %v2967_v1 }
 0x54a   :  { %v1046_v10 = vadd.f32 %v1045_v9, %v1037_v7 }
 0x54c   :  { %2312 = vmatpush3.bf16.msra.mxu0 %v2419_v8  ;;  %1048 = vst.msk [vmem:[#allocation33 + $0x4] sm:$0x1] %vm1047_vm3, %v1046_v10 }
 0x54d   :  { %2323 = vmatprep.subr.bf16.mxu0 %v2967_v1 }
 0x54f   :  { %2314 = vmatmul.mubr.msk.bf16.vlgmr.msra.gmra.mrb[28].mxu0 %vm336_vm0, %v1364_v11  ;;  %v2422_v11 = vld [vmem:[%s3563_s23] sm:$0xff]  }
 0x550   :  { %2324 = vmatpush3.bf16.msra.mxu0 %v2420_v12  ;;  %2327 = vmatprep.mubr.msk.bf16.mxu0 %vm2968_vm1, %v2967_v1  ;;  %v2423_v12 = vld [vmem:[%s3563_s23 + $0x8] sm:$0xff]  }
 0x551   :  { %2325 = vmatprep.subr.bf16.mxu0 %v2967_v1  ;;  %2302 = vmatpush3.bf16.msra.mxu1 %v2422_v11 }
 0x552   :  { %2303 = vmatprep.subr.bf16.mxu1 %v2967_v1 }
 0x554   :  { %2326 = vmatpush3.bf16.msra.mxu0 %v2421_v13 }
 0x555   :  { %2304 = vmatpush3.bf16.msra.mxu1 %v2423_v12 }
 0x556   :  { %2317 = vmatprep.subr.bf16.mxu1 %v2967_v1 }
 0x557   :  { %2328 = vmatmul.mubr.msk.bf16.vlgmr.msra.gmra.mrb[32].mxu0 %vm336_vm0, %v1365_v2 }
 0x60a   :  { %v1105_v14 = vpop.f32.mrb[16].mxu0 }
 0x60b   :  { %v2271_v16 = vpop.f32.mrb[17].mxu0 }
 0x60c   :  { %v1108_v17 = vpop.f32.mrb[18].mxu0 }
 0x60d   :  { %v2272_v18 = vpop.f32.mrb[19].mxu0 }
 0x612   :  { %v1264_v19 = vpop.f32.mrb[20].mxu0  ;;  %v1154_v20 = vpop.f32.mrb[16].mxu1 }
 0x613   :  { %v2285_v21 = vpop.f32.mrb[21].mxu0  ;;  %v1155_v22 = vadd.f32 %v1154_v20, %v1105_v14  ;;  %v2277_v23 = vpop.f32.mrb[17].mxu1 }
 0x614   :  { %v1267_v24 = vpop.f32.mrb[22].mxu0  ;;  %v1157_v25 = vpop.f32.mrb[18].mxu1 }
 0x615   :  { %v2286_v26 = vpop.f32.mrb[23].mxu0  ;;  %v2278_v27 = vpop.f32.mrb[19].mxu1  ;;  %v3410_v63 = vadd.f32 %v2109_v58, %v1155_v22 }
 0x617   :  { %v1166_v4 = vsel %vm336_vm0, %v3410_v63, 0.0  ;;  %v1170_v6 = vmul.f32 %v3410_v63, %v3410_v63 }
 0x619   :  { %v1171_v9 = vsel %vm336_vm0, %v1170_v6, 0.0 }
 0x61a   :  { %v1424_v28 = vpop.f32.mrb[24].mxu0  ;;  %v1310_v29 = vpop.f32.mrb[20].mxu1 }
 0x61b   :  { %v3389_v30 = vadd.f32 %v3298_v40, %v1424_v28  ;;  %v2299_v31 = vpop.f32.mrb[25].mxu0  ;;  %v1311_v32 = vadd.f32 %v1310_v29, %v1264_v19  ;;  %v2291_v34 = vpop.f32.mrb[21].mxu1 }
 0x61c   :  { %v1427_v35 = vpop.f32.mrb[26].mxu0  ;;  %v1313_v37 = vpop.f32.mrb[22].mxu1 }
 0x61d   :  { %v2300_v38 = vpop.f32.mrb[27].mxu0  ;;  %v1430_v39 = vsel %vm336_vm0, %v3389_v30, 0.0  ;;  %v1434_v41 = vmul.f32 %v3389_v30, %v3389_v30  ;;  %v2292_v42 = vpop.f32.mrb[23].mxu1  ;;  %v3417_v3 = vadd.f32 %v3408_v62, %v1311_v32 }
 0x61e   :  { %1431 = vadd.xlane.f32.xlu0 %v1430_v39 }
 0x61f   :  { %v1435_v45 = vsel %vm336_vm0, %v1434_v41, 0.0  ;;  %v1322_v7 = vsel %vm336_vm0, %v3417_v3, 0.0  ;;  %v1326_v8 = vmul.f32 %v3417_v3, %v3417_v3 }
 0x620   :  { %1436 = vadd.xlane.f32.xlu1 %v1435_v45 }
 0x621   :  { %v1327_v10 = vsel %vm336_vm0, %v1326_v8, 0.0 }
 0x622   :  { %v1572_v43 = vpop.f32.mrb[28].mxu0 }
 0x623   :  { %v3397_v40 = vadd.f32 %v3303_v46, %v1572_v43  ;;  %v2315_v47 = vpop.f32.mrb[29].mxu0 }
 0x624   :  { %v1575_v49 = vpop.f32.mrb[30].mxu0 }
 0x625   :  { %v2316_v50 = vpop.f32.mrb[31].mxu0  ;;  %v1584_v51 = vsel %vm794_vm2, %v3397_v40, 0.0  ;;  %v1588_v52 = vmul.f32 %v3397_v40, %v3397_v40 }
 0x626   :  { %1585 = vadd.xlane.f32.xlu0 %v1584_v51 }
 0x627   :  { %v1589_v53 = vsel %vm794_vm2, %v1588_v52, 0.0 }
 0x628   :  { %1590 = vadd.xlane.f32.xlu1 %v1589_v53 }
 0x62a   :  { %v1760_v54 = vpop.f32.mrb[32].mxu0 }
 0x62b   :  { %v1766_v56 = vadd.f32 %v1760_v54, %v1572_v43  ;;  %v2329_v57 = vpop.f32.mrb[33].mxu0 }
 0x62c   :  { %v1763_v59 = vpop.f32.mrb[34].mxu0 }
 0x62d   :  { %v3405_v60 = vadd.f32 %v3303_v46, %v1766_v56  ;;  %v2330_v61 = vpop.f32.mrb[35].mxu0 }
 0x62f   :  { %v1773_v0 = vsel %vm794_vm2, %v3405_v60, 0.0  ;;  %v1777_v2 = vmul.f32 %v3405_v60, %v3405_v60 }
 0x630   :  { %1774 = vadd.xlane.f32.xlu0 %v1773_v0 }
 0x631   :  { %v1778_v46 = vsel %vm794_vm2, %v1777_v2, 0.0 }
 0x632   :  { %1779 = vadd.xlane.f32.xlu1 %v1778_v46 }
 0x634   :  { %1167 = vadd.xlane.f32.xlu0 %v1166_v4  ;;  %v2424_v4 = vld [vmem:[#allocation24] sm:$0xff]  }
 0x636   :  { %1323 = vadd.xlane.f32.xlu1 %v1322_v7 }
 0x638   :  { %1172 = vadd.xlane.f32.xlu0 %v1171_v9 }
 0x63a   :  { %1328 = vadd.xlane.f32.xlu1 %v1327_v10 }
 0x6ab   :  { %v1432_v13 = vpop.xlane.xlu0 %1431 }
 0x6ac   :  { %v1433_v14 = vmul.f32 0.03125, %v1432_v13  ;;  %v2425_v13 = vld [vmem:[#allocation24] sm:$0xff]  }
 0x6ad   :  { %v1437_v16 = vpop.xlane.xlu1 %1436 }
 0x6ae   :  { %v1439_v17 = vmul.f32 %v1433_v14, %v1433_v14  ;;  %v1438_v18 = vmul.f32 0.03125, %v1437_v16  ;;  %v1442_v34 = vsub.f32 %v3389_v30, %v1433_v14 }
 0x6b0   :  { %v1440_v19 = vsub.f32 %v1438_v18, %v1439_v17 }
 0x6b2   :  { %v1441_v20 = vmax.f32 %v1440_v19, 0.0 }
 0x6b3   :  { %v1586_v21 = vpop.xlane.xlu0 %1585 }
 0x6b4   :  { %v1443_v22 = vadd.f32 1e-05, %v1441_v20  ;;  %v1587_v23 = vmul.f32 0.0625, %v1586_v21 }
 0x6b5   :  { %v1591_v24 = vpop.xlane.xlu1 %1590 }
 0x6b6   :  { %2436 = vrsqrt.f32 %v1443_v22  ;;  %v1593_v25 = vmul.f32 %v1587_v23, %v1587_v23  ;;  %v1592_v26 = vmul.f32 0.0625, %v1591_v24  ;;  %v1596_v30 = vsub.f32 %v3397_v40, %v1587_v23  ;;  %v2110_v23 = vld [vmem:[#allocation23 + $0x1] ss:$0 sm:$0xff] }
 0x6b8   :  { %v1594_v27 = vsub.f32 %v1592_v26, %v1593_v25 }
 0x6ba   :  { %v1595_v28 = vmax.f32 %v1594_v27, 0.0  ;;  %v3453_v27 = vld [vmem:[%s3564_s24 + $0x1] ss:$0 sm:$0xff] }
 0x6bc   :  { %v1597_v29 = vadd.f32 1e-05, %v1595_v28  ;;  %v2111_v28 = vld [vmem:[#allocation23 + $0x2] ss:$0 sm:$0xff] }
 0x6bd   :  { %v1775_v31 = vpop.xlane.xlu0 %1774 }
 0x6be   :  { %2438 = vrsqrt.f32 %v1597_v29  ;;  %v1776_v32 = vmul.f32 0.0625, %v1775_v31 }
 0x6bf   :  { %v1780_v35 = vpop.xlane.xlu1 %1779 }
 0x6c0   :  { %v2437_v37 = vpop.eup %2436  ;;  %v1782_v38 = vmul.f32 %v1776_v32, %v1776_v32  ;;  %v1781_v39 = vmul.f32 0.0625, %v1780_v35  ;;  %v1785_v14 = vsub.f32 %v3405_v60, %v1776_v32 }
 0x6c1   :  { %v1445_v41 = vmul.f32 %v2437_v37, %v1442_v34  ;;  %v1168_v42 = vpop.xlane.xlu0 %1167 }
 0x6c2   :  { %v1783_v45 = vsub.f32 %v1781_v39, %v1782_v38  ;;  %v1169_v43 = vmul.f32 0.03125, %v1168_v42 }
 0x6c3   :  { %v1324_v47 = vpop.xlane.xlu1 %1323  ;;  %v1451_v49 = vmul.f32 %v3326_v33, %v1445_v41 }
 0x6c4   :  { %v1784_v50 = vmax.f32 %v1783_v45, 0.0  ;;  %v1325_v51 = vmul.f32 0.03125, %v1324_v47  ;;  %v1175_v56 = vmul.f32 %v1169_v43, %v1169_v43  ;;  %v1178_v20 = vsub.f32 %v3410_v63, %v1169_v43 }
 0x6c5   :  { %v1173_v52 = vpop.xlane.xlu0 %1172  ;;  %v1457_v53 = vadd.f32 %v3328_v36, %v1451_v49 }
 0x6c6   :  { %v1786_v54 = vadd.f32 1e-05, %v1784_v50  ;;  %v1174_v57 = vmul.f32 0.03125, %v1173_v52  ;;  %v1331_v0 = vmul.f32 %v1325_v51, %v1325_v51  ;;  %v1334_v60 = vsub.f32 %v3417_v3, %v1325_v51 }
 0x6c7   :  { %v1329_v58 = vpop.xlane.xlu1 %1328  ;;  %v1458_v59 = vmax.f32 %v1457_v53, 0.0 }
 0x6c8   :  { %v2439_v61 = vpop.eup %2438  ;;  %2440 = vrsqrt.f32 %v1786_v54  ;;  %v1176_v2 = vsub.f32 %v1174_v57, %v1175_v56  ;;  %v1330_v46 = vmul.f32 0.03125, %v1329_v58  ;;  %v1197_v54 = vld [vmem:[#allocation33 + $0x2] sm:$0x1] }
 0x6c9   :  { %v1599_v6 = vmul.f32 %v2439_v61, %v1596_v30  ;;  %v1459_v33 = vpack.c.bf16 %v1458_v59, %v1458_v59  ;;  %v1353_v30 = vld [vmem:[#allocation33 + $0x3] sm:$0x1] }
 0x6ca   :  { %v1177_v7 = vmax.f32 %v1176_v2, 0.0  ;;  %v1332_v8 = vsub.f32 %v1330_v46, %v1331_v0 }
 0x6cb   :  { %2306 = vmatmul.mubr.msk.bf16.vlgmr.msra.gmra.mrb[24].mxu1 %vm336_vm0, %v1459_v33  ;;  %v1605_v36 = vmul.f32 %v3333_v44, %v1599_v6 }
 0x6cc   :  { %v1179_v9 = vadd.f32 1e-05, %v1177_v7  ;;  %v1333_v10 = vmax.f32 %v1332_v8, 0.0  ;;  %2318 = vmatpush3.bf16.msra.mxu1 %v2424_v4  ;;  %2319 = vmatprep.mubr.msk.bf16.mxu1 %vm2968_vm1, %v2967_v1 }
 0x6cd   :  { %v1611_v40 = vadd.f32 %v3338_v48, %v1605_v36  ;;  %2331 = vmatprep.subr.bf16.mxu1 %v2967_v1 }
 0x6ce   :  { %2442 = vrsqrt.f32 %v1179_v9  ;;  %v1335_v11 = vadd.f32 1e-05, %v1333_v10 }
 0x6cf   :  { %v1612_v12 = vmax.f32 %v1611_v40, 0.0  ;;  %v2089_v40 = vld [vmem:[%s3565_s25] ss:$0 sm:$0xff] }
 0x6d0   :  { %2444 = vrsqrt.f32 %v1335_v11 }
 0x6d1   :  { %v1613_v16 = vpack.c.bf16 %v1612_v12, %v1612_v12  ;;  %v834_v12 = vmul.f32 %v2089_v40, %v3347_v55 }
 0x6d2   :  { %v2441_v17 = vpop.eup %2440 }
 0x6d3   :  { %v1788_v18 = vmul.f32 %v2441_v17, %v1785_v14  ;;  %2320 = vmatmul.mubr.msk.bf16.vlgmr.msra.gmra.mrb[28].mxu1 %vm794_vm2, %v1613_v16 }
 0x6d4   :  { %2332 = vmatpush3.bf16.msra.mxu1 %v2425_v13  ;;  %2333 = vmatprep.mubr.msk.bf16.mxu1 %vm2968_vm1, %v2967_v1  ;;  %v3456_v1 = vld [vmem:[%s3564_s24 + $0x2] ss:$0 sm:$0xff] }
 0x6d5   :  { %v1794_v19 = vmul.f32 %v3333_v44, %v1788_v18 }
 0x6d7   :  { %v1800_v21 = vadd.f32 %v3338_v48, %v1794_v19 }
 0x6d8   :  { %v2443_v22 = vpop.eup %2442 }
 0x6d9   :  { %v1801_v24 = vmax.f32 %v1800_v21, 0.0  ;;  %v1181_v25 = vmul.f32 %v2443_v22, %v1178_v20  ;;  %v835_v20 = vsel %vm794_vm2, %v834_v12, 0.0 }
 0x6da   :  { %v2445_v26 = vpop.eup %2444 }
 0x6db   :  { %v1802_v29 = vpack.c.bf16 %v1801_v24, %v1801_v24  ;;  %v1187_v31 = vmul.f32 %v2110_v23, %v1181_v25  ;;  %v1337_v32 = vmul.f32 %v2445_v26, %v1334_v60 }
 0x6dd   :  { %2334 = vmatmul.mubr.msk.bf16.vlgmr.msra.gmra.mrb[32].mxu1 %vm794_vm2, %v1802_v29  ;;  %v1193_v44 = vadd.f32 %v2111_v28, %v1187_v31  ;;  %v1343_v48 = vmul.f32 %v3453_v27, %v1337_v32 }
 0x6df   :  { %v1194_v63 = vmax.f32 %v1193_v44, 0.0  ;;  %v1349_v34 = vadd.f32 %v3456_v1, %v1343_v48 }
 0x6e1   :  { %1195 = vst.msk [vmem:[#allocation30] sm:$0xff] %vm336_vm0, %v1194_v63  ;;  %v1196_v3 = vsub.f32 %v1194_v63, %v3272_v5  ;;  %v1350_v35 = vmax.f32 %v1349_v34, 0.0 }
 0x6e3   :  { %v1198_v37 = vmul.f32 %v1196_v3, %v1196_v3  ;;  %1351 = vst.msk [vmem:[#allocation32] sm:$0xff] %vm336_vm0, %v1350_v35  ;;  %v1352_v38 = vsub.f32 %v1350_v35, %v3276_v15 }
 0x6e5   :  { %v1199_v39 = vsel %vm336_vm0, %v1198_v37, 0.0  ;;  %v1354_v41 = vmul.f32 %v1352_v38, %v1352_v38 }
 0x6e6   :  { %v1200_v42 = vrot.slane %v1199_v39, 4 }
 0x6e7   :  { %v1355_v45 = vsel %vm336_vm0, %v1354_v41, 0.0 }
 0x6e8   :  { %v1201_v43 = vadd.f32 %v1200_v42, %v1199_v39  ;;  %v1356_v47 = vrot.slane %v1355_v45, 4 }
 0x6ea   :  { %v1202_v49 = vrot.slane %v1201_v43, 2  ;;  %v1357_v50 = vadd.f32 %v1356_v47, %v1355_v45 }
 0x6ec   :  { %v1203_v51 = vadd.f32 %v1202_v49, %v1201_v43  ;;  %v1358_v52 = vrot.slane %v1357_v50, 2 }
 0x6ee   :  { %v1204_v53 = vrot.slane %v1203_v51, 1  ;;  %v1359_v5 = vadd.f32 %v1358_v52, %v1357_v50 }
 0x6f0   :  { %v1205_v56 = vadd.f32 %v1204_v53, %v1203_v51  ;;  %v1360_v57 = vrot.slane %v1359_v5, 1 }
 0x6f2   :  { %v1206_v58 = vadd.f32 %v1205_v56, %v1197_v54  ;;  %v1361_v15 = vadd.f32 %v1360_v57, %v1359_v5 }
 0x6f4   :  { %v1362_v59 = vadd.f32 %v1361_v15, %v1353_v30  ;;  %1207 = vst.msk [vmem:[#allocation33 + $0x2] sm:$0x1] %vm1047_vm3, %v1206_v58 }
 0x6f6   :  { %1363 = vst.msk [vmem:[#allocation33 + $0x3] sm:$0x1] %vm1047_vm3, %v1362_v59 }
 0x79e   :  { %v1513_v61 = vpop.f32.mrb[24].mxu1 }
 0x79f   :  { %v2307_v0 = vpop.f32.mrb[25].mxu1 }
 0x7a0   :  { %v1516_v2 = vpop.f32.mrb[26].mxu1 }
 0x7a1   :  { %v2308_v46 = vpop.f32.mrb[27].mxu1 }
 0x7a6   :  { %v1659_v4 = vpop.f32.mrb[28].mxu1 }
 0x7a7   :  { %v1660_v6 = vadd.f32 %v1659_v4, %v1513_v61  ;;  %v2321_v33 = vpop.f32.mrb[29].mxu1 }
 0x7a8   :  { %v1662_v7 = vpop.f32.mrb[30].mxu1 }
 0x7a9   :  { %v3470_v8 = vadd.f32 %v3408_v62, %v1660_v6  ;;  %v2322_v36 = vpop.f32.mrb[31].mxu1 }
 0x7ab   :  { %v1671_v9 = vsel %vm336_vm0, %v3470_v8, 0.0  ;;  %v1675_v10 = vmul.f32 %v3470_v8, %v3470_v8 }
 0x7ac   :  { %1672 = vadd.xlane.f32.xlu0 %v1671_v9 }
 0x7ad   :  { %v1676_v11 = vsel %vm336_vm0, %v1675_v10, 0.0 }
 0x7b0   :  { %1677 = vadd.xlane.f32.xlu0 %v1676_v11  ;;  %v1848_v13 = vpop.f32.mrb[32].mxu1 }
 0x7b1   :  { %v1849_v14 = vadd.f32 %v1848_v13, %v1513_v61  ;;  %v2335_v16 = vpop.f32.mrb[33].mxu1 }
 0x7b2   :  { %v1851_v17 = vpop.f32.mrb[34].mxu1 }
 0x7b3   :  { %v3480_v18 = vadd.f32 %v3408_v62, %v1849_v14  ;;  %v2336_v19 = vpop.f32.mrb[35].mxu1 }
 0x7b4   :  { %836 = vadd.xlane.f32.xlu0 %v835_v20 }
 0x7b5   :  { %v1860_v21 = vsel %vm336_vm0, %v3480_v18, 0.0  ;;  %v1864_v22 = vmul.f32 %v3480_v18, %v3480_v18 }
 0x7b6   :  { %1861 = vadd.xlane.f32.xlu1 %v1860_v21 }
 0x7b7   :  { %v1865_v55 = vsel %vm336_vm0, %v1864_v22, 0.0 }
 0x7ba   :  { %1866 = vadd.xlane.f32.xlu1 %v1865_v55 }
 0x7bb   :  { %2773 = shalt.err (!%p2770_p4)
}
 0x7bc   :  { %s3566_s2 = sld [smem:[#allocation61_spill]] }
 0x7c2   :  { %s2774_s21 = scalar_lea.hbm %s3566_s2, 128 }
 0x7c3   :  { %p2775_p5 = scmp.ne.s32.totalorder %s3566_s2, %s2774_s21  ;;  %p2778_p6 = scmp.lt.u32.totalorder %s2774_s21, %s3566_s2 }
 0x7c5   :  { %p2780_p7 = pnand %p2778_p6, %p2775_p5 }
 0x7c7   :  { %2783 = shalt.err (!%p2780_p7)
}
 0x7c8   :  { %1929 = dma.vmem_to_hbm [thread:$0]  %s1927_s9, 128, %s3566_s2, [#allocation28]  }
 0x7c9   :  { %s2784_s12 = scalar_lea.vmem %s1953_s14, 128  ;;  %p2789_p9 = scmp.lt.s32.totalorder %s1953_s14, %s1953_s14 }
 0x7ca   :  { %p2785_p8 = scmp.ne.s32.totalorder %s1953_s14, %s2784_s12  ;;  %p2790_p10 = scmp.lt.s32.totalorder %s2784_s12, %s2784_s12 }
 0x7cc   :  { %p2791_p11 = por %p2790_p10, %p2789_p9 }
 0x7ce   :  { %p2792_p12 = pnand %p2791_p11, %p2785_p8 }
 0x7d0   :  { %2795 = shalt.err (!%p2792_p12)
}
 0x7d1   :  { %s2796_s17 = scalar_lea.hbm %s3131_s19, 128 }
 0x7d2   :  { %p2797_p13 = scmp.ne.s32.totalorder %s3131_s19, %s2796_s17  ;;  %p2800_p0 = scmp.lt.u32.totalorder %s2796_s17, %s3131_s19 }
 0x7d4   :  { %p2802_p1 = pnand %p2800_p0, %p2797_p13 }
 0x7d6   :  { %2805 = shalt.err (!%p2802_p1)
}
 0x7d7   :  { %1955 = dma.vmem_to_hbm [thread:$0]  %s1953_s14, 128, %s3131_s19, [#allocation31]  }
 0x7d8   :  { %s2971_s20 = smov [#allocation26]   ;;  %s2972_s6 = smov [#allocation29]  }
 0x7d9   :  { %s1913_s10 = sshll.u32 %s2971_s20, 4  ;;  %s1939_s0 = sshll.u32 %s2972_s6, 4  ;;  %s1914_s10 = int_to_ptr.vmem [resolvable:$true] %s1913_s10  ;;  %s1940_s0 = int_to_ptr.vmem [resolvable:$true] %s1939_s0 }
 0x7da   :  { %s2806_s11 = scalar_lea.vmem %s1914_s10, 128  ;;  %p2811_p3 = scmp.lt.s32.totalorder %s1914_s10, %s1914_s10 }
 0x7db   :  { %p2807_p2 = scmp.ne.s32.totalorder %s1914_s10, %s2806_s11  ;;  %p2812_p4 = scmp.lt.s32.totalorder %s2806_s11, %s2806_s11 }
 0x7dd   :  { %p2813_p5 = por %p2812_p4, %p2811_p3 }
 0x7df   :  { %p2814_p6 = pnand %p2813_p5, %p2807_p2 }
 0x7e1   :  { %2817 = shalt.err (!%p2814_p6)
}
 0x7e2   :  { %s3567_s4 = sld [smem:[#allocation60_spill]] }
 0x7e8   :  { %s2818_s5 = scalar_lea.hbm %s3567_s4, 128 }
 0x7e9   :  { %p2819_p7 = scmp.ne.s32.totalorder %s3567_s4, %s2818_s5  ;;  %p2822_p8 = scmp.lt.u32.totalorder %s2818_s5, %s3567_s4 }
 0x7eb   :  { %p2824_p9 = pnand %p2822_p8, %p2819_p7 }
 0x7ed   :  { %2827 = shalt.err (!%p2824_p9)
}
 0x7ee   :  { %1916 = dma.vmem_to_hbm [thread:$0]  %s1914_s10, 128, %s3567_s4, [#allocation5]  }
 0x7ef   :  { %s2828_s19 = scalar_lea.vmem %s1940_s0, 128  ;;  %p2833_p11 = scmp.lt.s32.totalorder %s1940_s0, %s1940_s0 }
 0x7f0   :  { %p2829_p10 = scmp.ne.s32.totalorder %s1940_s0, %s2828_s19  ;;  %p2834_p12 = scmp.lt.s32.totalorder %s2828_s19, %s2828_s19 }
 0x7f2   :  { %p2835_p13 = por %p2834_p12, %p2833_p11 }
 0x7f4   :  { %p2836_p0 = pnand %p2835_p13, %p2829_p10 }
 0x7f6   :  { %2839 = shalt.err (!%p2836_p0)
}
 0x7f7   :  { %s2840_s26 = scalar_lea.hbm %s3126_s8, 128 }
 0x7f8   :  { %p2841_p1 = scmp.ne.s32.totalorder %s3126_s8, %s2840_s26  ;;  %p2844_p2 = scmp.lt.u32.totalorder %s2840_s26, %s3126_s8 }
 0x7fa   :  { %p2846_p3 = pnand %p2844_p2, %p2841_p1 }
 0x7fc   :  { %2849 = shalt.err (!%p2846_p3)
}
 0x7fd   :  { %1942 = dma.vmem_to_hbm [thread:$0]  %s1940_s0, 128, %s3126_s8, [#allocation28]  }
 0x7fe   :  { %s2973_s27 = smov [#allocation32]  }
 0x7ff   :  { %s1965_s3 = sshll.u32 %s2973_s27, 4  ;;  %s1966_s3 = int_to_ptr.vmem [resolvable:$true] %s1965_s3 }
 0x800   :  { %s2850_s16 = scalar_lea.vmem %s1966_s3, 128  ;;  %p2855_p5 = scmp.lt.s32.totalorder %s1966_s3, %s1966_s3 }
 0x801   :  { %p2851_p4 = scmp.ne.s32.totalorder %s1966_s3, %s2850_s16  ;;  %p2856_p6 = scmp.lt.s32.totalorder %s2850_s16, %s2850_s16 }
 0x803   :  { %p2857_p7 = por %p2856_p6, %p2855_p5 }
 0x805   :  { %p2858_p8 = pnand %p2857_p7, %p2851_p4 }
 0x807   :  { %2861 = shalt.err (!%p2858_p8)
}
 0x808   :  { %s2862_s15 = scalar_lea.hbm %s3136_s29, 128 }
 0x809   :  { %p2863_p9 = scmp.ne.s32.totalorder %s3136_s29, %s2862_s15  ;;  %p2866_p10 = scmp.lt.u32.totalorder %s2862_s15, %s3136_s29 }
 0x80b   :  { %p2868_p11 = pnand %p2866_p10, %p2863_p9 }
 0x80d   :  { %2871 = shalt.err (!%p2868_p11)
}
 0x80e   :  { %1968 = dma.vmem_to_hbm [thread:$0]  %s1966_s3, 128, %s3136_s29, [#allocation31]   ;;  %v2090_v26 = vld [vmem:[#allocation2] ss:$0 sm:$0xff]  ;;  %vm852_vm4 = vcmask 7168  }
 0x80f   :  { %v1700_v6 = vld [vmem:[#allocation33] sm:$0x1]  ;;  %v1889_v40 = vld [vmem:[#allocation33 + $0x1] sm:$0x1]  ;;  %s2974_s29 = smov [#allocation33]  }
 0x810   :  { %s1978_s8 = sshll.u32 %s2974_s29, 4  ;;  %s1979_s8 = int_to_ptr.vmem [resolvable:$true] %s1978_s8 }
 0x811   :  { %p2877_p13 = scmp.lt.s32.totalorder %s1979_s8, %s1979_s8 }
 0x839   :  { %v1673_v62 = vpop.xlane.xlu0 %1672 }
 0x83a   :  { %v1674_v23 = vmul.f32 0.03125, %v1673_v62 }
 0x83c   :  { %v1680_v24 = vmul.f32 %v1674_v23, %v1674_v23  ;;  %v1683_v42 = vsub.f32 %v3470_v8, %v1674_v23 }
 0x83d   :  { %v1678_v60 = vpop.xlane.xlu0 %1677 }
 0x83e   :  { %v1679_v25 = vmul.f32 0.03125, %v1678_v60 }
 0x840   :  { %v1681_v28 = vsub.f32 %v1679_v25, %v1680_v24 }
 0x841   :  { %v837_v29 = vpop.xlane.xlu0 %836 }
 0x842   :  { %v1682_v31 = vmax.f32 %v1681_v28, 0.0  ;;  %v845_v32 = vadd.f32 %v2090_v26, %v837_v29 }
 0x843   :  { %v1862_v44 = vpop.xlane.xlu1 %1861 }
 0x844   :  { %v1684_v48 = vadd.f32 1e-05, %v1682_v31  ;;  %v2091_v63 = vmul.f32 -1.442695, %v845_v32  ;;  %v1863_v34 = vmul.f32 0.03125, %v1862_v44 }
 0x846   :  { %2446 = vrsqrt.f32 %v1684_v48  ;;  %v1869_v35 = vmul.f32 %v1863_v34, %v1863_v34  ;;  %v1872_v5 = vsub.f32 %v3480_v18, %v1863_v34 }
 0x847   :  { %2448 = vpow2.f32 %v2091_v63  ;;  %v1867_v3 = vpop.xlane.xlu1 %1866 }
 0x848   :  { %v1868_v37 = vmul.f32 0.03125, %v1867_v3 }
 0x84a   :  { %v1870_v38 = vsub.f32 %v1868_v37, %v1869_v35 }
 0x84c   :  { %v1871_v39 = vmax.f32 %v1870_v38, 0.0 }
 0x84e   :  { %v1873_v41 = vadd.f32 1e-05, %v1871_v39 }
 0x850   :  { %v2447_v45 = vpop.eup %2446  ;;  %2450 = vrsqrt.f32 %v1873_v41 }
 0x851   :  { %v2449_v43 = vpop.eup %2448  ;;  %v1686_v47 = vmul.f32 %v2447_v45, %v1683_v42 }
 0x852   :  { %v849_v49 = vadd.f32 1.0, %v2449_v43 }
 0x853   :  { %v1692_v50 = vmul.f32 %v3453_v27, %v1686_v47 }
 0x854   :  { %2452 = vrcp.f32 %v849_v49 }
 0x855   :  { %v1698_v51 = vadd.f32 %v3456_v1, %v1692_v50 }
 0x857   :  { %v1699_v52 = vmax.f32 %v1698_v51, 0.0 }
 0x859   :  { %v1701_v53 = vsel %vm336_vm0, %v1699_v52, 0.0 }
 0x85a   :  { %v2451_v54 = vpop.eup %2450  ;;  %v1702_v56 = vrot.slane %v1701_v53, 4 }
 0x85b   :  { %v1875_v57 = vmul.f32 %v2451_v54, %v1872_v5 }
 0x85c   :  { %v1703_v30 = vadd.f32 %v1702_v56, %v1701_v53 }
 0x85d   :  { %v1881_v58 = vmul.f32 %v3453_v27, %v1875_v57 }
 0x85e   :  { %v2453_v15 = vpop.eup %2452  ;;  %v1704_v59 = vrot.slane %v1703_v30, 2 }
 0x85f   :  { %853 = vst.msk [vmem:[%s3141_s30] sm:$0xff] %vm852_vm4, %v2453_v15  ;;  %v1887_v61 = vadd.f32 %v3456_v1, %v1881_v58  ;;  %s2872_s30 = scalar_lea.vmem %s1979_s8, 128 }
 0x860   :  { %v1705_v0 = vadd.f32 %v1704_v59, %v1703_v30  ;;  %p2873_p12 = scmp.ne.s32.totalorder %s1979_s8, %s2872_s30  ;;  %p2878_p0 = scmp.lt.s32.totalorder %s2872_s30, %s2872_s30 }
 0x861   :  { %v1888_v2 = vmax.f32 %v1887_v61, 0.0 }
 0x862   :  { %v1706_v46 = vrot.slane %v1705_v0, 1  ;;  %p2879_p1 = por %p2878_p0, %p2877_p13 }
 0x863   :  { %v1890_v4 = vsel %vm336_vm0, %v1888_v2, 0.0 }
 0x864   :  { %v1891_v33 = vrot.slane %v1890_v4, 4  ;;  %v1707_v7 = vadd.f32 %v1706_v46, %v1705_v0  ;;  %p2880_p2 = pnand %p2879_p1, %p2873_p12 }
 0x866   :  { %v1892_v8 = vadd.f32 %v1891_v33, %v1890_v4  ;;  %v1708_v36 = vadd.f32 %v1707_v7, %v1700_v6 }
 0x868   :  { %v1893_v9 = vrot.slane %v1892_v8, 2  ;;  %1709 = vst.msk [vmem:[#allocation33] sm:$0x1] %vm1047_vm3, %v1708_v36 }
 0x86a   :  { %v1894_v10 = vadd.f32 %v1893_v9, %v1892_v8 }
 0x86c   :  { %v1895_v27 = vrot.slane %v1894_v10, 1 }
 0x86e   :  { %v1896_v11 = vadd.f32 %v1895_v27, %v1894_v10 }
 0x870   :  { %v1897_v1 = vadd.f32 %v1896_v11, %v1889_v40 }
 0x872   :  { %1898 = vst.msk [vmem:[#allocation33 + $0x1] sm:$0x1] %vm1047_vm3, %v1897_v1 }
 0x873   :  { %2883 = shalt.err (!%p2880_p2)
}
 0x874   :  { %s2884_s13 = scalar_lea.hbm %s3146_s7, 128 }
 0x875   :  { %p2885_p3 = scmp.ne.s32.totalorder %s3146_s7, %s2884_s13  ;;  %p2888_p4 = scmp.lt.u32.totalorder %s2884_s13, %s3146_s7 }
 0x877   :  { %p2890_p5 = pnand %p2888_p4, %p2885_p3 }
 0x879   :  { %2893 = shalt.err (!%p2890_p5)
}
 0x87a   :  { %1981 = dma.vmem_to_hbm [thread:$0]  %s1979_s8, 128, %s3146_s7, [#allocation34]  }
 0x87b   :  { %2910 = dma.done.wait [#allocation5], 128  }
 0x87c   :  { %2911 = vsyncadd [#allocation5], 4294967168 }
 0x87d   :  { %2912 = dma.done.wait [#allocation28], 256  }
 0x87e   :  { %2913 = vsyncadd [#allocation28], 4294967040 }
 0x87f   :  { %2914 = dma.done.wait [#allocation31], 256  }
 0x880   :  { %2915 = vsyncadd [#allocation31], 4294967040 }
 0x881   :  { %2916 = dma.done.wait [#allocation34], 128  }
 0x882   :  { %2917 = vsyncadd [#allocation34], 4294967168 }
 0x883   :  { %2007 = vsyncpa [#allocation4], 1 }
 0x884   :  { %2008 = vsyncpa [#allocation7], 1 }
 0x885   :  { %2009 = vsyncpa [#allocation10], 1 }
 0x886   :  { %2010 = vsyncpa [#allocation13], 1 }
 0x887   :  { %2011 = vsyncpa [#allocation16], 1 }
 0x888   :  { %2012 = vsyncpa [#allocation19], 1 }
 0x889   :  { %2013 = vsyncpa [#allocation22], 1 }
 0x88a   :  { %2014 = vsyncpa [#allocation25], 1 }
 0x88b   :  { %2015 = vsyncpa [#allocation5], 1 }
 0x88c   :  { %2016 = vsyncpa [#allocation28], 1 }
 0x88d   :  { %2017 = vsyncpa [#allocation31], 1 }
 0x88e   :  { %2018 = vsyncpa [#allocation34], 1 }

</bundles_post_ra>
